<compile_context>
chip_gen: v5e
topology: v5e:2x2
jax: 0.10.0
libtpu: 0.0.40
codegen_flags: <defaults>
</compile_context>

<pallas_src>
import functools
import math

import numpy as np

import jax
import jax.numpy as jnp
from jax.experimental import pallas as pl
from jax.experimental.pallas import tpu as pltpu

EPS = 1e-5      # nn.LayerNorm default eps
LANE = 128      # TPU lane width; feature dims are zero-padded to this


def round_up(n, m):
    return ((n + m - 1) // m) * m


def pad_to(a, shape):
    return jnp.pad(a, [(0, s - d) for d, s in zip(a.shape, shape)])


def _vmem_limit_bytes():
    """~70% of this generation's per-core VMEM, clamped to a sane range."""
    cap = 64 * 1024 * 1024
    try:
        info = pltpu.get_tpu_info()
        cap = int(getattr(info, "vmem_capacity_bytes", cap))
    except Exception:
        pass
    return int(min(max(int(cap * 0.7), 32 * 1024 * 1024), 100 * 1024 * 1024))


def _layer_vmem_bytes(tm, tk, hp, outp):
    """Rough per-step VMEM footprint of the streaming GCN-layer kernel."""
    adj = 2 * tm * tk * 2                     # bf16, double-buffered
    hw = 2 * tk * hp * 2                      # bf16
    hrow = 2 * tm * hp * 4                    # f32 residual rows
    prm = 2 * (3 * hp * 4 + hp * hp * 2 + hp * outp * 2 + outp * 4)
    outs = 2 * (tm * hp * 4 + tm * max(hp, outp) * 4)
    acc = tm * hp * 4
    return adj + hw + hrow + prm + outs + acc


def build_block_schedule(adj_pad, tm, tk):
    """Per row-block list of nonzero col-block ids (padded with the last valid
    id so padded steps do not trigger new DMAs) plus per-row counts."""
    a = np.asarray(adj_pad)
    n_pad = a.shape[0]
    nr, nk = n_pad // tm, n_pad // tk
    nzmask = (a.reshape(nr, tm, nk, tk) != 0).any(axis=(1, 3))   # (nr, nk)
    counts = nzmask.sum(axis=1).astype(np.int32)
    max_nz = max(int(counts.max()), 1)
    cols = np.zeros((nr, max_nz), np.int32)
    for r in range(nr):
        ids = np.nonzero(nzmask[r])[0].astype(np.int32)
        if ids.size == 0:
            ids = np.zeros((1,), np.int32)
        cols[r, : ids.size] = ids
        cols[r, ids.size:] = ids[-1]
    return jnp.asarray(cols), jnp.asarray(counts), max_nz, int(counts.sum())


# ---------------------------------------------------------------------------
# Kernels
# ---------------------------------------------------------------------------
def _layer_epilogue(acc, hrow, b, gamma, beta, true_h):
    """bias + relu + residual + LayerNorm (two-pass, lane-masked) for one tile."""
    new = jnp.maximum(acc + b, 0.0)                    # relu, f32 on the VPU
    h = hrow + new                                     # residual, f32
    inv_h = 1.0 / true_h
    mask = jax.lax.broadcasted_iota(jnp.int32, h.shape, 1) < int(true_h)
    mu = jnp.sum(h, axis=-1, keepdims=True) * inv_h
    d = jnp.where(mask, h - mu, 0.0)                   # padded lanes stay 0
    var = jnp.sum(d * d, axis=-1, keepdims=True) * inv_h
    hn = d * jax.lax.rsqrt(var + EPS)
    return hn * gamma + beta                           # padded lanes stay 0


def embed_kernel(x_ref, wemb_ref, bemb_ref, w0_ref, h_ref, hw_ref):
    """h = x @ W_emb + b_emb ; hW0 = h @ W_0 (bf16, for the first GCN layer)."""
    h = jnp.dot(x_ref[...].astype(jnp.bfloat16), wemb_ref[...],
                preferred_element_type=jnp.float32) + bemb_ref[...]
    h_ref[...] = h
    hw_ref[...] = jnp.dot(h.astype(jnp.bfloat16), w0_ref[...],
                          preferred_element_type=jnp.float32
                          ).astype(jnp.bfloat16)


def gcn_mid_kernel(cols_ref, cnt_ref, adj_ref, hw_ref, hrow_ref,
                   b_ref, gamma_ref, beta_ref, wnext_ref,
                   oh_ref, ohw_ref, acc_ref, *, true_h):
    """One GCN layer (not the last), block-sparse over adjacency column blocks:
       out_rows = LN( h_rows + relu( sum_k A_hat[r,k] @ hW[k] + b ) )
       also emits hW_next = out_rows @ W_{i+1} in bf16 for the next layer."""
    r = pl.program_id(0)
    j = pl.program_id(1)

    @pl.when(j == 0)
    def _():
        acc_ref[...] = jnp.zeros_like(acc_ref)

    @pl.when(j < cnt_ref[r])          # skip padded schedule slots
    def _():
        acc_ref[...] += jnp.dot(adj_ref[...], hw_ref[...],
                                preferred_element_type=jnp.float32)

    @pl.when(j == pl.num_programs(1) - 1)
    def _():
        out = _layer_epilogue(acc_ref[...], hrow_ref[...], b_ref[...],
                              gamma_ref[...], beta_ref[...], true_h)
        oh_ref[...] = out
        ohw_ref[...] = jnp.dot(out.astype(jnp.bfloat16), wnext_ref[...],
                               preferred_element_type=jnp.float32
                               ).astype(jnp.bfloat16)


def gcn_last_kernel(cols_ref, cnt_ref, adj_ref, hw_ref, hrow_ref,
                    b_ref, gamma_ref, beta_ref, wout_ref, bout_ref,
                    logits_ref, acc_ref, *, true_h):
    """Last GCN layer with the out_layer Linear fused into the epilogue."""
    r = pl.program_id(0)
    j = pl.program_id(1)

    @pl.when(j == 0)
    def _():
        acc_ref[...] = jnp.zeros_like(acc_ref)

    @pl.when(j < cnt_ref[r])
    def _():
        acc_ref[...] += jnp.dot(adj_ref[...], hw_ref[...],
                                preferred_element_type=jnp.float32)

    @pl.when(j == pl.num_programs(1) - 1)
    def _():
        out = _layer_epilogue(acc_ref[...], hrow_ref[...], b_ref[...],
                              gamma_ref[...], beta_ref[...], true_h)
        logits_ref[...] = jnp.dot(out.astype(jnp.bfloat16), wout_ref[...],
                                  preferred_element_type=jnp.float32
                                  ) + bout_ref[...]


# ---------------------------------------------------------------------------
# Wrapper: embed -> depth x (block-sparse GCN + residual + LN) -> fused readout
# ---------------------------------------------------------------------------
def graph_model_forward(adj, x, params, num_layers, *,
                        tile_rows=None, tile_cols=128):
    """Returns (N, out_dim) logits for all nodes (gather root_mask outside)."""
    n, in_dim = x.shape
    h_dim = params["w_emb"].shape[1]
    out_dim = params["w_out"].shape[1]

    inp = round_up(in_dim, LANE)
    hp = round_up(h_dim, LANE)
    outp = round_up(out_dim, LANE)

    vmem_limit = _vmem_limit_bytes()

    tk = max(LANE, round_up(tile_cols, LANE))
    if tile_rows is None:
        # Largest power-of-two row tile whose per-step footprint fits ~1/3 of
        # the per-generation VMEM budget, clamped for small graphs.
        tile_rows = 1024
        while tile_rows > 128 and _layer_vmem_bytes(tile_rows, tk, hp, outp) > vmem_limit // 3:
            tile_rows //= 2
        tile_rows = min(tile_rows, round_up(max(n, 1), LANE))
    tm = max(16, round_up(tile_rows, 16))
    assert _layer_vmem_bytes(tm, tk, hp, outp) < vmem_limit, "tile too large for VMEM"

    lcm_rt = tm * tk // math.gcd(tm, tk)
    n_pad = round_up(max(n, lcm_rt), lcm_rt)
    nr = n_pad // tm

    # --- Pad everything lane-dense / tile-aligned; MXU operands go bf16, ----
    # --- biases / LayerNorm affine params stay f32. -------------------------
    adj_pad = pad_to(adj, (n_pad, n_pad)).astype(jnp.float32)
    adj_bf = adj_pad.astype(jnp.bfloat16)
    x_p = pad_to(x, (n_pad, inp)).astype(jnp.float32)
    w_emb = pad_to(params["w_emb"], (inp, hp)).astype(jnp.bfloat16)
    b_emb = pad_to(params["b_emb"], (1, hp)).astype(jnp.float32)
    w_lay = pad_to(params["w_lay"], (num_layers, hp, hp)).astype(jnp.bfloat16)
    b_lay = pad_to(params["b_lay"], (num_layers, hp)).astype(jnp.float32)
    gamma = pad_to(params["gamma"], (num_layers, hp)).astype(jnp.float32)
    beta = pad_to(params["beta"], (num_layers, hp)).astype(jnp.float32)
    w_out = pad_to(params["w_out"], (hp, outp)).astype(jnp.bfloat16)
    b_out = pad_to(params["b_out"], (1, outp)).astype(jnp.float32)

    # --- Block-sparse adjacency schedule (static shapes, built on host) -----
    cols, counts, max_nz, total_nz = build_block_schedule(adj_pad, tm, tk)

    cparams_embed = pltpu.CompilerParams(
        dimension_semantics=("parallel",), vmem_limit_bytes=vmem_limit)
    cparams_layer = pltpu.CompilerParams(
        dimension_semantics=("parallel", "arbitrary"),
        vmem_limit_bytes=vmem_limit)

    embed_cost = pl.CostEstimate(
        flops=2 * n_pad * inp * hp + 2 * n_pad * hp * hp,
        transcendentals=0,
        bytes_accessed=(n_pad * inp * 4 + inp * hp * 2 + hp * 4 + hp * hp * 2
                        + n_pad * hp * 4 + n_pad * hp * 2))
    embed_call = pl.pallas_call(
        embed_kernel,
        out_shape=(jax.ShapeDtypeStruct((n_pad, hp), jnp.float32),
                   jax.ShapeDtypeStruct((n_pad, hp), jnp.bfloat16)),
        grid=(nr,),
        in_specs=[pl.BlockSpec((tm, inp), lambda r: (r, 0)),
                  pl.BlockSpec((inp, hp), lambda r: (0, 0)),
                  pl.BlockSpec((1, hp), lambda r: (0, 0)),
                  pl.BlockSpec((hp, hp), lambda r: (0, 0))],
        out_specs=(pl.BlockSpec((tm, hp), lambda r: (r, 0)),
                   pl.BlockSpec((tm, hp), lambda r: (r, 0))),
        compiler_params=cparams_embed,
        cost_estimate=embed_cost,
    )

    # Specs shared by the mid / last layer calls.
    adj_spec = pl.BlockSpec((tm, tk), lambda r, j, cols, cnt: (r, cols[r, j]))
    hw_spec = pl.BlockSpec((tk, hp), lambda r, j, cols, cnt: (cols[r, j], 0))
    hrow_spec = pl.BlockSpec((tm, hp), lambda r, j, cols, cnt: (r, 0))
    vec_spec = pl.BlockSpec((1, hp), lambda r, j, cols, cnt: (0, 0))
    shared_in_specs = [adj_spec, hw_spec, hrow_spec, vec_spec, vec_spec, vec_spec]

    layer_flops = 2 * total_nz * tm * tk * hp + 2 * n_pad * hp * hp + 10 * n_pad * hp
    layer_bytes = (total_nz * (tm * tk * 2 + tk * hp * 2) + n_pad * hp * (4 + 4 + 2)
                   + hp * hp * 2 + 4 * hp * 4)
    layer_cost = pl.CostEstimate(flops=layer_flops, transcendentals=n_pad,
                                 bytes_accessed=layer_bytes)

    mid_call = pl.pallas_call(
        functools.partial(gcn_mid_kernel, true_h=float(h_dim)),
        out_shape=(jax.ShapeDtypeStruct((n_pad, hp), jnp.float32),
                   jax.ShapeDtypeStruct((n_pad, hp), jnp.bfloat16)),
        grid_spec=pltpu.PrefetchScalarGridSpec(
            num_scalar_prefetch=2,
            grid=(nr, max_nz),
            in_specs=shared_in_specs + [
                pl.BlockSpec((hp, hp), lambda r, j, cols, cnt: (0, 0))],  # W_{i+1}
            out_specs=(pl.BlockSpec((tm, hp), lambda r, j, cols, cnt: (r, 0)),
                       pl.BlockSpec((tm, hp), lambda r, j, cols, cnt: (r, 0))),
            scratch_shapes=[pltpu.VMEM((tm, hp), jnp.float32)]),
        compiler_params=cparams_layer,
        cost_estimate=layer_cost,
    )

    last_cost = pl.CostEstimate(
        flops=2 * total_nz * tm * tk * hp + 2 * n_pad * hp * outp + 10 * n_pad * hp,
        transcendentals=n_pad,
        bytes_accessed=(total_nz * (tm * tk * 2 + tk * hp * 2)
                        + n_pad * hp * 4 * 2 + hp * outp * 2 + n_pad * outp * 4))
    last_call = pl.pallas_call(
        functools.partial(gcn_last_kernel, true_h=float(h_dim)),
        out_shape=jax.ShapeDtypeStruct((n_pad, outp), jnp.float32),
        grid_spec=pltpu.PrefetchScalarGridSpec(
            num_scalar_prefetch=2,
            grid=(nr, max_nz),
            in_specs=shared_in_specs + [
                pl.BlockSpec((hp, outp), lambda r, j, cols, cnt: (0, 0)),  # W_out
                pl.BlockSpec((1, outp), lambda r, j, cols, cnt: (0, 0))],  # b_out
            out_specs=pl.BlockSpec((tm, outp), lambda r, j, cols, cnt: (r, 0)),
            scratch_shapes=[pltpu.VMEM((tm, hp), jnp.float32)]),
        compiler_params=cparams_layer,
        cost_estimate=last_cost,
    )

    def forward(cols, counts, adj_bf, x_p, w_emb, b_emb, w_lay, b_lay,
                gamma, beta, w_out, b_out):
        # embed_label: nn.Linear(in_dim, h_dim); also emits hW_0 in bf16.
        h, hw = embed_call(x_p, w_emb, b_emb, w_lay[0])
        for i in range(num_layers - 1):
            h, hw = mid_call(cols, counts, adj_bf, hw, h,
                             b_lay[i:i + 1], gamma[i:i + 1], beta[i:i + 1],
                             w_lay[i + 1])
        # last layer + fused out_layer
        L = num_layers
        logits_pad = last_call(cols, counts, adj_bf, hw, h,
                               b_lay[L - 1:L], gamma[L - 1:L], beta[L - 1:L],
                               w_out, b_out)
        return logits_pad[:n, :out_dim]

    return jax.jit(forward)(cols, counts, adj_bf, x_p, w_emb, b_emb,
                            w_lay, b_lay, gamma, beta, w_out, b_out)


# ---------------------------------------------------------------------------
# Pure-JAX f32 reference (loose tolerance check vs bf16 MXU kernels)
# ---------------------------------------------------------------------------
def reference_forward(adj, x, params, num_layers):
    h = x @ params["w_emb"] + params["b_emb"]
    for i in range(num_layers):
        new = jnp.maximum(adj @ h @ params["w_lay"][i] + params["b_lay"][i], 0.0)
        h = h + new
        mu = jnp.mean(h, axis=-1, keepdims=True)
        var = jnp.mean((h - mu) ** 2, axis=-1, keepdims=True)
        h = (h - mu) / jnp.sqrt(var + EPS)
        h = h * params["gamma"][i] + params["beta"][i]
    return h @ params["w_out"] + params["b_out"]


def xavier_uniform(key, shape):
    fan_in, fan_out = shape[-2], shape[-1]
    bound = jnp.sqrt(6.0 / (fan_in + fan_out))
    return jax.random.uniform(key, shape, jnp.float32, -bound, bound)


def build_normalized_adjacency(edge_index, n_nodes):
    """A_hat = D^{-1/2} (A + I) D^{-1/2}, dense."""
    src, dst = edge_index
    adj = jnp.zeros((n_nodes, n_nodes), jnp.float32)
    adj = adj.at[src, dst].set(1.0)
    adj = adj.at[dst, src].set(1.0)          # undirected
    adj = adj + jnp.eye(n_nodes, dtype=jnp.float32)
    deg = jnp.sum(adj, axis=1)
    d_inv_sqrt = 1.0 / jnp.sqrt(deg)
    return adj * d_inv_sqrt[:, None] * d_inv_sqrt[None, :]


if __name__ == "__main__":
    # Small, module-consistent shapes.  300 nodes -> 3x3 grid of 128x128
    # adjacency blocks; the path graph keeps some blocks exactly zero so the
    # block-sparse schedule (skipped + padded steps) is exercised.
    N, IN_DIM, H_DIM, OUT_DIM, DEPTH = 300, 16, 32, 4, 3

    key = jax.random.PRNGKey(0)
    keys = jax.random.split(key, 8)

    # continuous node features (single-graph dataset -> nn.Linear embedding)
    x = jax.random.normal(keys[0], (N, IN_DIM), jnp.float32)

    # deterministic graph: a path plus a few chords inside the first 100 nodes
    src = jnp.arange(N - 1, dtype=jnp.int32)
    dst = src + 1
    extra_src = jnp.array([0, 3, 7, 2, 11, 40], jnp.int32)
    extra_dst = jnp.array([50, 60, 90, 33, 77, 95], jnp.int32)
    edge_index = (jnp.concatenate([src, extra_src]),
                  jnp.concatenate([dst, extra_dst]))
    adj = build_normalized_adjacency(edge_index, N)

    # root_mask equivalent: static indices of "root" nodes
    root_idx = jnp.array([0, 17, 123, 256, 299], jnp.int32)

    params = {
        "w_emb": xavier_uniform(keys[1], (IN_DIM, H_DIM)),
        "b_emb": jax.random.uniform(keys[2], (1, H_DIM), jnp.float32, -0.1, 0.1),
        "w_lay": xavier_uniform(keys[3], (DEPTH, H_DIM, H_DIM)),
        "b_lay": jax.random.uniform(keys[4], (DEPTH, H_DIM), jnp.float32, -0.1, 0.1),
        "gamma": jnp.ones((DEPTH, H_DIM), jnp.float32),
        "beta": jnp.zeros((DEPTH, H_DIM), jnp.float32),
        "w_out": xavier_uniform(keys[5], (H_DIM, OUT_DIM)),   # xavier as in init_model()
        "b_out": jnp.zeros((1, OUT_DIM), jnp.float32),
    }

    logits_all = graph_model_forward(adj, x, params, DEPTH,
                                     tile_rows=128, tile_cols=128)
    out = logits_all[root_idx]                      # == out_layer(x)[root_mask]
    jax.block_until_ready(out)

    ref = reference_forward(adj, x, params, DEPTH)[root_idx]

    assert out.shape == (root_idx.shape[0], OUT_DIM)
    assert bool(jnp.all(jnp.isfinite(out)))
    # bf16 MXU inputs with f32 accumulation -> loose tolerance vs f32 reference
    err = float(jnp.max(jnp.abs(out - ref)))
    assert bool(jnp.allclose(out, ref, atol=0.15, rtol=0.1)), err
    print("KERNEL_OK")
</pallas_src>

<mosaic_0001>
module attributes {stable_mosaic.version = 11 : i64} {
  func.func @embed_kernel(%arg0: i32, %arg1: memref<128x128xf32, #tpu.memory_space<vmem>>, %arg2: memref<128x128xbf16, #tpu.memory_space<vmem>>, %arg3: memref<1x128xf32, #tpu.memory_space<vmem>>, %arg4: memref<128x128xbf16, #tpu.memory_space<vmem>>, %arg5: memref<128x128xf32, #tpu.memory_space<vmem>>, %arg6: memref<128x128xbf16, #tpu.memory_space<vmem>>) attributes {dimension_semantics = [#tpu.dimension_semantics<parallel>], iteration_bounds = array<i64: 3>, scalar_prefetch = 0 : i64, scratch_operands = 0 : i64, tpu.core_type = #tpu.core_type<tc>, window_params = [{transform_indices = @transform_0, window_bounds = array<i64: 128, 128>}, {pipeline_mode = #tpu.pipeline_mode<synchronous>, transform_indices = @transform_1, window_bounds = array<i64: 128, 128>}, {pipeline_mode = #tpu.pipeline_mode<synchronous>, transform_indices = @transform_2, window_bounds = array<i64: 1, 128>}, {pipeline_mode = #tpu.pipeline_mode<synchronous>, transform_indices = @transform_3, window_bounds = array<i64: 128, 128>}, {transform_indices = @transform_4, window_bounds = array<i64: 128, 128>}, {transform_indices = @transform_5, window_bounds = array<i64: 128, 128>}]} {
    %c0 = arith.constant 0 : index
    %c0_0 = arith.constant 0 : index
    %0 = vector.load %arg1[%c0, %c0_0] : memref<128x128xf32, #tpu.memory_space<vmem>>, vector<128x128xf32>
    %1 = arith.truncf %0 : vector<128x128xf32> to vector<128x128xbf16>
    %c0_1 = arith.constant 0 : index
    %c0_2 = arith.constant 0 : index
    %2 = vector.load %arg2[%c0_1, %c0_2] : memref<128x128xbf16, #tpu.memory_space<vmem>>, vector<128x128xbf16>
    %cst = arith.constant dense<0.000000e+00> : vector<128x128xf32>
    %3 = tpu.matmul %1, %2, %cst {dimension_numbers = #tpu.dot_dimension_numbers<[1], [0], [0], [1], [0, 0, 1, 1], [], []>} : vector<128x128xbf16>, vector<128x128xbf16>, vector<128x128xf32> -> vector<128x128xf32>
    %c0_3 = arith.constant 0 : index
    %c0_4 = arith.constant 0 : index
    %4 = vector.load %arg3[%c0_3, %c0_4] : memref<1x128xf32, #tpu.memory_space<vmem>>, vector<1x128xf32>
    %5 = vector.broadcast %4 : vector<1x128xf32> to vector<128x128xf32>
    %6 = arith.addf %3, %5 : vector<128x128xf32>
    %c0_5 = arith.constant 0 : index
    %c0_6 = arith.constant 0 : index
    %7 = vector.load %arg5[%c0_5, %c0_6] : memref<128x128xf32, #tpu.memory_space<vmem>>, vector<128x128xf32>
    tpu.vector_store %arg5[%c0_5, %c0_6], %6 {strides = array<i32>} : memref<128x128xf32, #tpu.memory_space<vmem>>, vector<128x128xf32>,
    %8 = arith.truncf %6 : vector<128x128xf32> to vector<128x128xbf16>
    %c0_7 = arith.constant 0 : index
    %c0_8 = arith.constant 0 : index
    %9 = vector.load %arg4[%c0_7, %c0_8] : memref<128x128xbf16, #tpu.memory_space<vmem>>, vector<128x128xbf16>
    %cst_9 = arith.constant dense<0.000000e+00> : vector<128x128xf32>
    %10 = tpu.matmul %8, %9, %cst_9 {dimension_numbers = #tpu.dot_dimension_numbers<[1], [0], [0], [1], [0, 0, 1, 1], [], []>} : vector<128x128xbf16>, vector<128x128xbf16>, vector<128x128xf32> -> vector<128x128xf32>
    %11 = arith.truncf %10 : vector<128x128xf32> to vector<128x128xbf16>
    %c0_10 = arith.constant 0 : index
    %c0_11 = arith.constant 0 : index
    %12 = vector.load %arg6[%c0_10, %c0_11] : memref<128x128xbf16, #tpu.memory_space<vmem>>, vector<128x128xbf16>
    tpu.vector_store %arg6[%c0_10, %c0_11], %11 {strides = array<i32>} : memref<128x128xbf16, #tpu.memory_space<vmem>>, vector<128x128xbf16>,
    return
  }
  func.func @transform_0(%arg0: i32) -> (i32, i32) {
    %c0_i32 = arith.constant 0 : i32
    %c0_i32_0 = arith.constant 0 : i32
    return %arg0, %c0_i32 : i32, i32
  }
  func.func @transform_1(%arg0: i32) -> (i32, i32) {
    %c0_i32 = arith.constant 0 : i32
    %c0_i32_0 = arith.constant 0 : i32
    %c0_i32_1 = arith.constant 0 : i32
    return %c0_i32, %c0_i32_0 : i32, i32
  }
  func.func @transform_2(%arg0: i32) -> (i32, i32) {
    %c0_i32 = arith.constant 0 : i32
    %c0_i32_0 = arith.constant 0 : i32
    %c0_i32_1 = arith.constant 0 : i32
    return %c0_i32, %c0_i32_0 : i32, i32
  }
  func.func @transform_3(%arg0: i32) -> (i32, i32) {
    %c0_i32 = arith.constant 0 : i32
    %c0_i32_0 = arith.constant 0 : i32
    %c0_i32_1 = arith.constant 0 : i32
    return %c0_i32, %c0_i32_0 : i32, i32
  }
  func.func @transform_4(%arg0: i32) -> (i32, i32) {
    %c0_i32 = arith.constant 0 : i32
    %c0_i32_0 = arith.constant 0 : i32
    return %arg0, %c0_i32 : i32, i32
  }
  func.func @transform_5(%arg0: i32) -> (i32, i32) {
    %c0_i32 = arith.constant 0 : i32
    %c0_i32_0 = arith.constant 0 : i32
    return %arg0, %c0_i32 : i32, i32
  }
}

module attributes {stable_mosaic.version = 11 : i64} {
  func.func @gcn_last_kernel(%arg0: i32, %arg1: i32, %arg2: memref<3x3xi32, #tpu.memory_space<smem>>, %arg3: memref<3xi32, #tpu.memory_space<smem>>, %arg4: memref<128x128xbf16, #tpu.memory_space<vmem>>, %arg5: memref<128x128xbf16, #tpu.memory_space<vmem>>, %arg6: memref<128x128xf32, #tpu.memory_space<vmem>>, %arg7: memref<1x128xf32, #tpu.memory_space<vmem>>, %arg8: memref<1x128xf32, #tpu.memory_space<vmem>>, %arg9: memref<1x128xf32, #tpu.memory_space<vmem>>, %arg10: memref<128x128xbf16, #tpu.memory_space<vmem>>, %arg11: memref<1x128xf32, #tpu.memory_space<vmem>>, %arg12: memref<128x128xf32, #tpu.memory_space<vmem>>, %arg13: memref<128x128xf32, #tpu.memory_space<vmem>>) attributes {dimension_semantics = [#tpu.dimension_semantics<parallel>, #tpu.dimension_semantics<arbitrary>], iteration_bounds = array<i64: 3, 3>, scalar_prefetch = 2 : i64, scratch_operands = 1 : i64, tpu.core_type = #tpu.core_type<tc>, window_params = [{transform_indices = @transform_0, window_bounds = array<i64: 128, 128>}, {transform_indices = @transform_1, window_bounds = array<i64: 128, 128>}, {transform_indices = @transform_2, window_bounds = array<i64: 128, 128>}, {pipeline_mode = #tpu.pipeline_mode<synchronous>, transform_indices = @transform_3, window_bounds = array<i64: 1, 128>}, {pipeline_mode = #tpu.pipeline_mode<synchronous>, transform_indices = @transform_4, window_bounds = array<i64: 1, 128>}, {pipeline_mode = #tpu.pipeline_mode<synchronous>, transform_indices = @transform_5, window_bounds = array<i64: 1, 128>}, {pipeline_mode = #tpu.pipeline_mode<synchronous>, transform_indices = @transform_6, window_bounds = array<i64: 128, 128>}, {pipeline_mode = #tpu.pipeline_mode<synchronous>, transform_indices = @transform_7, window_bounds = array<i64: 1, 128>}, {transform_indices = @transform_8, window_bounds = array<i64: 128, 128>}]} {
    %c0_i32 = arith.constant 0 : i32
    %0 = arith.cmpi eq, %arg1, %c0_i32 : i32
    %1 = arith.extui %0 : i1 to i32
    %c0_i32_0 = arith.constant 0 : i32
    %2 = arith.cmpi ne, %1, %c0_i32_0 : i32
    scf.if %2 {
      %cst = arith.constant 0.000000e+00 : f32
      %11 = vector.broadcast %cst : f32 to vector<128x128xf32>
      %c0 = arith.constant 0 : index
      %c0_3 = arith.constant 0 : index
      %12 = vector.load %arg13[%c0, %c0_3] : memref<128x128xf32, #tpu.memory_space<vmem>>, vector<128x128xf32>
      tpu.vector_store %arg13[%c0, %c0_3], %11 {strides = array<i32>} : memref<128x128xf32, #tpu.memory_space<vmem>>, vector<128x128xf32>,
    } else {
    }
    %3 = arith.index_cast %arg0 : i32 to index
    %4 = memref.load %arg3[%3] : memref<3xi32, #tpu.memory_space<smem>>
    %5 = arith.cmpi slt, %arg1, %4 : i32
    %6 = arith.extui %5 : i1 to i32
    %c0_i32_1 = arith.constant 0 : i32
    %7 = arith.cmpi ne, %6, %c0_i32_1 : i32
    scf.if %7 {
      %c0 = arith.constant 0 : index
      %c0_3 = arith.constant 0 : index
      %11 = vector.load %arg13[%c0, %c0_3] : memref<128x128xf32, #tpu.memory_space<vmem>>, vector<128x128xf32>
      %c0_4 = arith.constant 0 : index
      %c0_5 = arith.constant 0 : index
      %12 = vector.load %arg4[%c0_4, %c0_5] : memref<128x128xbf16, #tpu.memory_space<vmem>>, vector<128x128xbf16>
      %c0_6 = arith.constant 0 : index
      %c0_7 = arith.constant 0 : index
      %13 = vector.load %arg5[%c0_6, %c0_7] : memref<128x128xbf16, #tpu.memory_space<vmem>>, vector<128x128xbf16>
      %cst = arith.constant dense<0.000000e+00> : vector<128x128xf32>
      %14 = tpu.matmul %12, %13, %cst {dimension_numbers = #tpu.dot_dimension_numbers<[1], [0], [0], [1], [0, 0, 1, 1], [], []>} : vector<128x128xbf16>, vector<128x128xbf16>, vector<128x128xf32> -> vector<128x128xf32>
      %15 = arith.addf %11, %14 : vector<128x128xf32>
      %c0_8 = arith.constant 0 : index
      %c0_9 = arith.constant 0 : index
      %16 = vector.load %arg13[%c0_8, %c0_9] : memref<128x128xf32, #tpu.memory_space<vmem>>, vector<128x128xf32>
      tpu.vector_store %arg13[%c0_8, %c0_9], %15 {strides = array<i32>} : memref<128x128xf32, #tpu.memory_space<vmem>>, vector<128x128xf32>,
    } else {
    }
    %c2_i32 = arith.constant 2 : i32
    %8 = arith.cmpi eq, %arg1, %c2_i32 : i32
    %9 = arith.extui %8 : i1 to i32
    %c0_i32_2 = arith.constant 0 : i32
    %10 = arith.cmpi ne, %9, %c0_i32_2 : i32
    scf.if %10 {
      %c0 = arith.constant 0 : index
      %c0_3 = arith.constant 0 : index
      %11 = vector.load %arg13[%c0, %c0_3] : memref<128x128xf32, #tpu.memory_space<vmem>>, vector<128x128xf32>
      %c0_4 = arith.constant 0 : index
      %c0_5 = arith.constant 0 : index
      %12 = vector.load %arg6[%c0_4, %c0_5] : memref<128x128xf32, #tpu.memory_space<vmem>>, vector<128x128xf32>
      %c0_6 = arith.constant 0 : index
      %c0_7 = arith.constant 0 : index
      %13 = vector.load %arg7[%c0_6, %c0_7] : memref<1x128xf32, #tpu.memory_space<vmem>>, vector<1x128xf32>
      %c0_8 = arith.constant 0 : index
      %c0_9 = arith.constant 0 : index
      %14 = vector.load %arg8[%c0_8, %c0_9] : memref<1x128xf32, #tpu.memory_space<vmem>>, vector<1x128xf32>
      %c0_10 = arith.constant 0 : index
      %c0_11 = arith.constant 0 : index
      %15 = vector.load %arg9[%c0_10, %c0_11] : memref<1x128xf32, #tpu.memory_space<vmem>>, vector<1x128xf32>
      %16 = vector.broadcast %13 : vector<1x128xf32> to vector<128x128xf32>
      %17 = arith.addf %11, %16 : vector<128x128xf32>
      %cst = arith.constant 0.000000e+00 : f32
      %18 = vector.broadcast %cst : f32 to vector<128x128xf32>
      %19 = arith.maximumf %17, %18 : vector<128x128xf32>
      %20 = arith.addf %12, %19 : vector<128x128xf32>
      %21 = tpu.iota {dimensions = array<i32: 1>} : vector<128x128xi32>
      %c32_i32 = arith.constant 32 : i32
      %22 = vector.broadcast %c32_i32 : i32 to vector<128x128xi32>
      %23 = arith.cmpi slt, %21, %22 : vector<128x128xi32>
      %cst_12 = arith.constant dense<0.000000e+00> : vector<128xf32>
      %24 = vector.multi_reduction <add>, %20, %cst_12 [1] : vector<128x128xf32> to vector<128xf32>
      %25 = vector.shape_cast %24 : vector<128xf32> to vector<128x1xf32>
      %cst_13 = arith.constant 3.125000e-02 : f32
      %26 = vector.broadcast %cst_13 : f32 to vector<128x1xf32>
      %27 = arith.mulf %25, %26 : vector<128x1xf32>
      %28 = vector.broadcast %27 : vector<128x1xf32> to vector<128x128xf32>
      %29 = arith.subf %20, %28 : vector<128x128xf32>
      %cst_14 = arith.constant 0.000000e+00 : f32
      %30 = vector.broadcast %cst_14 : f32 to vector<128x128xf32>
      %31 = arith.select %23, %29, %30 : vector<128x128xi1>, vector<128x128xf32>
      %32 = arith.mulf %31, %31 : vector<128x128xf32>
      %cst_15 = arith.constant dense<0.000000e+00> : vector<128xf32>
      %33 = vector.multi_reduction <add>, %32, %cst_15 [1] : vector<128x128xf32> to vector<128xf32>
      %34 = vector.shape_cast %33 : vector<128xf32> to vector<128x1xf32>
      %cst_16 = arith.constant 3.125000e-02 : f32
      %35 = vector.broadcast %cst_16 : f32 to vector<128x1xf32>
      %36 = arith.mulf %34, %35 : vector<128x1xf32>
      %cst_17 = arith.constant 9.99999974E-6 : f32
      %37 = vector.broadcast %cst_17 : f32 to vector<128x1xf32>
      %38 = arith.addf %36, %37 : vector<128x1xf32>
      %39 = math.rsqrt %38 : vector<128x1xf32>
      %40 = vector.broadcast %39 : vector<128x1xf32> to vector<128x128xf32>
      %41 = arith.mulf %31, %40 : vector<128x128xf32>
      %42 = vector.broadcast %14 : vector<1x128xf32> to vector<128x128xf32>
      %43 = arith.mulf %41, %42 : vector<128x128xf32>
      %44 = vector.broadcast %15 : vector<1x128xf32> to vector<128x128xf32>
      %45 = arith.addf %43, %44 : vector<128x128xf32>
      %46 = arith.truncf %45 : vector<128x128xf32> to vector<128x128xbf16>
      %c0_18 = arith.constant 0 : index
      %c0_19 = arith.constant 0 : index
      %47 = vector.load %arg10[%c0_18, %c0_19] : memref<128x128xbf16, #tpu.memory_space<vmem>>, vector<128x128xbf16>
      %cst_20 = arith.constant dense<0.000000e+00> : vector<128x128xf32>
      %48 = tpu.matmul %46, %47, %cst_20 {dimension_numbers = #tpu.dot_dimension_numbers<[1], [0], [0], [1], [0, 0, 1, 1], [], []>} : vector<128x128xbf16>, vector<128x128xbf16>, vector<128x128xf32> -> vector<128x128xf32>
      %c0_21 = arith.constant 0 : index
      %c0_22 = arith.constant 0 : index
      %49 = vector.load %arg11[%c0_21, %c0_22] : memref<1x128xf32, #tpu.memory_space<vmem>>, vector<1x128xf32>
      %50 = vector.broadcast %49 : vector<1x128xf32> to vector<128x128xf32>
      %51 = arith.addf %48, %50 : vector<128x128xf32>
      %c0_23 = arith.constant 0 : index
      %c0_24 = arith.constant 0 : index
      %52 = vector.load %arg12[%c0_23, %c0_24] : memref<128x128xf32, #tpu.memory_space<vmem>>, vector<128x128xf32>
      tpu.vector_store %arg12[%c0_23, %c0_24], %51 {strides = array<i32>} : memref<128x128xf32, #tpu.memory_space<vmem>>, vector<128x128xf32>,
    } else {
    }
    return
  }
  func.func @transform_0(%arg0: i32, %arg1: i32, %arg2: memref<3x3xi32, #tpu.memory_space<smem>>, %arg3: memref<3xi32, #tpu.memory_space<smem>>) -> (i32, i32) {
    %0 = arith.index_cast %arg0 : i32 to index
    %1 = arith.index_cast %arg1 : i32 to index
    %2 = memref.load %arg2[%0, %1] : memref<3x3xi32, #tpu.memory_space<smem>>
    %c0_i32 = arith.constant 0 : i32
    return %arg0, %2 : i32, i32
  }
  func.func @transform_1(%arg0: i32, %arg1: i32, %arg2: memref<3x3xi32, #tpu.memory_space<smem>>, %arg3: memref<3xi32, #tpu.memory_space<smem>>) -> (i32, i32) {
    %0 = arith.index_cast %arg0 : i32 to index
    %1 = arith.index_cast %arg1 : i32 to index
    %2 = memref.load %arg2[%0, %1] : memref<3x3xi32, #tpu.memory_space<smem>>
    %c0_i32 = arith.constant 0 : i32
    %c0_i32_0 = arith.constant 0 : i32
    return %2, %c0_i32 : i32, i32
  }
  func.func @transform_2(%arg0: i32, %arg1: i32, %arg2: memref<3x3xi32, #tpu.memory_space<smem>>, %arg3: memref<3xi32, #tpu.memory_space<smem>>) -> (i32, i32) {
    %c0_i32 = arith.constant 0 : i32
    %c0_i32_0 = arith.constant 0 : i32
    return %arg0, %c0_i32 : i32, i32
  }
  func.func @transform_3(%arg0: i32, %arg1: i32, %arg2: memref<3x3xi32, #tpu.memory_space<smem>>, %arg3: memref<3xi32, #tpu.memory_space<smem>>) -> (i32, i32) {
    %c0_i32 = arith.constant 0 : i32
    %c0_i32_0 = arith.constant 0 : i32
    %c0_i32_1 = arith.constant 0 : i32
    return %c0_i32, %c0_i32_0 : i32, i32
  }
  func.func @transform_4(%arg0: i32, %arg1: i32, %arg2: memref<3x3xi32, #tpu.memory_space<smem>>, %arg3: memref<3xi32, #tpu.memory_space<smem>>) -> (i32, i32) {
    %c0_i32 = arith.constant 0 : i32
    %c0_i32_0 = arith.constant 0 : i32
    %c0_i32_1 = arith.constant 0 : i32
    return %c0_i32, %c0_i32_0 : i32, i32
  }
  func.func @transform_5(%arg0: i32, %arg1: i32, %arg2: memref<3x3xi32, #tpu.memory_space<smem>>, %arg3: memref<3xi32, #tpu.memory_space<smem>>) -> (i32, i32) {
    %c0_i32 = arith.constant 0 : i32
    %c0_i32_0 = arith.constant 0 : i32
    %c0_i32_1 = arith.constant 0 : i32
    return %c0_i32, %c0_i32_0 : i32, i32
  }
  func.func @transform_6(%arg0: i32, %arg1: i32, %arg2: memref<3x3xi32, #tpu.memory_space<smem>>, %arg3: memref<3xi32, #tpu.memory_space<smem>>) -> (i32, i32) {
    %c0_i32 = arith.constant 0 : i32
    %c0_i32_0 = arith.constant 0 : i32
    %c0_i32_1 = arith.constant 0 : i32
    return %c0_i32, %c0_i32_0 : i32, i32
  }
  func.func @transform_7(%arg0: i32, %arg1: i32, %arg2: memref<3x3xi32, #tpu.memory_space<smem>>, %arg3: memref<3xi32, #tpu.memory_space<smem>>) -> (i32, i32) {
    %c0_i32 = arith.constant 0 : i32
    %c0_i32_0 = arith.constant 0 : i32
    %c0_i32_1 = arith.constant 0 : i32
    return %c0_i32, %c0_i32_0 : i32, i32
  }
  func.func @transform_8(%arg0: i32, %arg1: i32, %arg2: memref<3x3xi32, #tpu.memory_space<smem>>, %arg3: memref<3xi32, #tpu.memory_space<smem>>) -> (i32, i32) {
    %c0_i32 = arith.constant 0 : i32
    %c0_i32_0 = arith.constant 0 : i32
    return %arg0, %c0_i32 : i32, i32
  }
}

module attributes {stable_mosaic.version = 11 : i64} {
  func.func @gcn_mid_kernel(%arg0: i32, %arg1: i32, %arg2: memref<3x3xi32, #tpu.memory_space<smem>>, %arg3: memref<3xi32, #tpu.memory_space<smem>>, %arg4: memref<128x128xbf16, #tpu.memory_space<vmem>>, %arg5: memref<128x128xbf16, #tpu.memory_space<vmem>>, %arg6: memref<128x128xf32, #tpu.memory_space<vmem>>, %arg7: memref<1x128xf32, #tpu.memory_space<vmem>>, %arg8: memref<1x128xf32, #tpu.memory_space<vmem>>, %arg9: memref<1x128xf32, #tpu.memory_space<vmem>>, %arg10: memref<128x128xbf16, #tpu.memory_space<vmem>>, %arg11: memref<128x128xf32, #tpu.memory_space<vmem>>, %arg12: memref<128x128xbf16, #tpu.memory_space<vmem>>, %arg13: memref<128x128xf32, #tpu.memory_space<vmem>>) attributes {dimension_semantics = [#tpu.dimension_semantics<parallel>, #tpu.dimension_semantics<arbitrary>], iteration_bounds = array<i64: 3, 3>, scalar_prefetch = 2 : i64, scratch_operands = 1 : i64, tpu.core_type = #tpu.core_type<tc>, window_params = [{transform_indices = @transform_0, window_bounds = array<i64: 128, 128>}, {transform_indices = @transform_1, window_bounds = array<i64: 128, 128>}, {transform_indices = @transform_2, window_bounds = array<i64: 128, 128>}, {pipeline_mode = #tpu.pipeline_mode<synchronous>, transform_indices = @transform_3, window_bounds = array<i64: 1, 128>}, {pipeline_mode = #tpu.pipeline_mode<synchronous>, transform_indices = @transform_4, window_bounds = array<i64: 1, 128>}, {pipeline_mode = #tpu.pipeline_mode<synchronous>, transform_indices = @transform_5, window_bounds = array<i64: 1, 128>}, {pipeline_mode = #tpu.pipeline_mode<synchronous>, transform_indices = @transform_6, window_bounds = array<i64: 128, 128>}, {transform_indices = @transform_7, window_bounds = array<i64: 128, 128>}, {transform_indices = @transform_8, window_bounds = array<i64: 128, 128>}]} {
    %c0_i32 = arith.constant 0 : i32
    %0 = arith.cmpi eq, %arg1, %c0_i32 : i32
    %1 = arith.extui %0 : i1 to i32
    %c0_i32_0 = arith.constant 0 : i32
    %2 = arith.cmpi ne, %1, %c0_i32_0 : i32
    scf.if %2 {
      %cst = arith.constant 0.000000e+00 : f32
      %11 = vector.broadcast %cst : f32 to vector<128x128xf32>
      %c0 = arith.constant 0 : index
      %c0_3 = arith.constant 0 : index
      %12 = vector.load %arg13[%c0, %c0_3] : memref<128x128xf32, #tpu.memory_space<vmem>>, vector<128x128xf32>
      tpu.vector_store %arg13[%c0, %c0_3], %11 {strides = array<i32>} : memref<128x128xf32, #tpu.memory_space<vmem>>, vector<128x128xf32>,
    } else {
    }
    %3 = arith.index_cast %arg0 : i32 to index
    %4 = memref.load %arg3[%3] : memref<3xi32, #tpu.memory_space<smem>>
    %5 = arith.cmpi slt, %arg1, %4 : i32
    %6 = arith.extui %5 : i1 to i32
    %c0_i32_1 = arith.constant 0 : i32
    %7 = arith.cmpi ne, %6, %c0_i32_1 : i32
    scf.if %7 {
      %c0 = arith.constant 0 : index
      %c0_3 = arith.constant 0 : index
      %11 = vector.load %arg13[%c0, %c0_3] : memref<128x128xf32, #tpu.memory_space<vmem>>, vector<128x128xf32>
      %c0_4 = arith.constant 0 : index
      %c0_5 = arith.constant 0 : index
      %12 = vector.load %arg4[%c0_4, %c0_5] : memref<128x128xbf16, #tpu.memory_space<vmem>>, vector<128x128xbf16>
      %c0_6 = arith.constant 0 : index
      %c0_7 = arith.constant 0 : index
      %13 = vector.load %arg5[%c0_6, %c0_7] : memref<128x128xbf16, #tpu.memory_space<vmem>>, vector<128x128xbf16>
      %cst = arith.constant dense<0.000000e+00> : vector<128x128xf32>
      %14 = tpu.matmul %12, %13, %cst {dimension_numbers = #tpu.dot_dimension_numbers<[1], [0], [0], [1], [0, 0, 1, 1], [], []>} : vector<128x128xbf16>, vector<128x128xbf16>, vector<128x128xf32> -> vector<128x128xf32>
      %15 = arith.addf %11, %14 : vector<128x128xf32>
      %c0_8 = arith.constant 0 : index
      %c0_9 = arith.constant 0 : index
      %16 = vector.load %arg13[%c0_8, %c0_9] : memref<128x128xf32, #tpu.memory_space<vmem>>, vector<128x128xf32>
      tpu.vector_store %arg13[%c0_8, %c0_9], %15 {strides = array<i32>} : memref<128x128xf32, #tpu.memory_space<vmem>>, vector<128x128xf32>,
    } else {
    }
    %c2_i32 = arith.constant 2 : i32
    %8 = arith.cmpi eq, %arg1, %c2_i32 : i32
    %9 = arith.extui %8 : i1 to i32
    %c0_i32_2 = arith.constant 0 : i32
    %10 = arith.cmpi ne, %9, %c0_i32_2 : i32
    scf.if %10 {
      %c0 = arith.constant 0 : index
      %c0_3 = arith.constant 0 : index
      %11 = vector.load %arg13[%c0, %c0_3] : memref<128x128xf32, #tpu.memory_space<vmem>>, vector<128x128xf32>
      %c0_4 = arith.constant 0 : index
      %c0_5 = arith.constant 0 : index
      %12 = vector.load %arg6[%c0_4, %c0_5] : memref<128x128xf32, #tpu.memory_space<vmem>>, vector<128x128xf32>
      %c0_6 = arith.constant 0 : index
      %c0_7 = arith.constant 0 : index
      %13 = vector.load %arg7[%c0_6, %c0_7] : memref<1x128xf32, #tpu.memory_space<vmem>>, vector<1x128xf32>
      %c0_8 = arith.constant 0 : index
      %c0_9 = arith.constant 0 : index
      %14 = vector.load %arg8[%c0_8, %c0_9] : memref<1x128xf32, #tpu.memory_space<vmem>>, vector<1x128xf32>
      %c0_10 = arith.constant 0 : index
      %c0_11 = arith.constant 0 : index
      %15 = vector.load %arg9[%c0_10, %c0_11] : memref<1x128xf32, #tpu.memory_space<vmem>>, vector<1x128xf32>
      %16 = vector.broadcast %13 : vector<1x128xf32> to vector<128x128xf32>
      %17 = arith.addf %11, %16 : vector<128x128xf32>
      %cst = arith.constant 0.000000e+00 : f32
      %18 = vector.broadcast %cst : f32 to vector<128x128xf32>
      %19 = arith.maximumf %17, %18 : vector<128x128xf32>
      %20 = arith.addf %12, %19 : vector<128x128xf32>
      %21 = tpu.iota {dimensions = array<i32: 1>} : vector<128x128xi32>
      %c32_i32 = arith.constant 32 : i32
      %22 = vector.broadcast %c32_i32 : i32 to vector<128x128xi32>
      %23 = arith.cmpi slt, %21, %22 : vector<128x128xi32>
      %cst_12 = arith.constant dense<0.000000e+00> : vector<128xf32>
      %24 = vector.multi_reduction <add>, %20, %cst_12 [1] : vector<128x128xf32> to vector<128xf32>
      %25 = vector.shape_cast %24 : vector<128xf32> to vector<128x1xf32>
      %cst_13 = arith.constant 3.125000e-02 : f32
      %26 = vector.broadcast %cst_13 : f32 to vector<128x1xf32>
      %27 = arith.mulf %25, %26 : vector<128x1xf32>
      %28 = vector.broadcast %27 : vector<128x1xf32> to vector<128x128xf32>
      %29 = arith.subf %20, %28 : vector<128x128xf32>
      %cst_14 = arith.constant 0.000000e+00 : f32
      %30 = vector.broadcast %cst_14 : f32 to vector<128x128xf32>
      %31 = arith.select %23, %29, %30 : vector<128x128xi1>, vector<128x128xf32>
      %32 = arith.mulf %31, %31 : vector<128x128xf32>
      %cst_15 = arith.constant dense<0.000000e+00> : vector<128xf32>
      %33 = vector.multi_reduction <add>, %32, %cst_15 [1] : vector<128x128xf32> to vector<128xf32>
      %34 = vector.shape_cast %33 : vector<128xf32> to vector<128x1xf32>
      %cst_16 = arith.constant 3.125000e-02 : f32
      %35 = vector.broadcast %cst_16 : f32 to vector<128x1xf32>
      %36 = arith.mulf %34, %35 : vector<128x1xf32>
      %cst_17 = arith.constant 9.99999974E-6 : f32
      %37 = vector.broadcast %cst_17 : f32 to vector<128x1xf32>
      %38 = arith.addf %36, %37 : vector<128x1xf32>
      %39 = math.rsqrt %38 : vector<128x1xf32>
      %40 = vector.broadcast %39 : vector<128x1xf32> to vector<128x128xf32>
      %41 = arith.mulf %31, %40 : vector<128x128xf32>
      %42 = vector.broadcast %14 : vector<1x128xf32> to vector<128x128xf32>
      %43 = arith.mulf %41, %42 : vector<128x128xf32>
      %44 = vector.broadcast %15 : vector<1x128xf32> to vector<128x128xf32>
      %45 = arith.addf %43, %44 : vector<128x128xf32>
      %c0_18 = arith.constant 0 : index
      %c0_19 = arith.constant 0 : index
      %46 = vector.load %arg11[%c0_18, %c0_19] : memref<128x128xf32, #tpu.memory_space<vmem>>, vector<128x128xf32>
      tpu.vector_store %arg11[%c0_18, %c0_19], %45 {strides = array<i32>} : memref<128x128xf32, #tpu.memory_space<vmem>>, vector<128x128xf32>,
      %47 = arith.truncf %45 : vector<128x128xf32> to vector<128x128xbf16>
      %c0_20 = arith.constant 0 : index
      %c0_21 = arith.constant 0 : index
      %48 = vector.load %arg10[%c0_20, %c0_21] : memref<128x128xbf16, #tpu.memory_space<vmem>>, vector<128x128xbf16>
      %cst_22 = arith.constant dense<0.000000e+00> : vector<128x128xf32>
      %49 = tpu.matmul %47, %48, %cst_22 {dimension_numbers = #tpu.dot_dimension_numbers<[1], [0], [0], [1], [0, 0, 1, 1], [], []>} : vector<128x128xbf16>, vector<128x128xbf16>, vector<128x128xf32> -> vector<128x128xf32>
      %50 = arith.truncf %49 : vector<128x128xf32> to vector<128x128xbf16>
      %c0_23 = arith.constant 0 : index
      %c0_24 = arith.constant 0 : index
      %51 = vector.load %arg12[%c0_23, %c0_24] : memref<128x128xbf16, #tpu.memory_space<vmem>>, vector<128x128xbf16>
      tpu.vector_store %arg12[%c0_23, %c0_24], %50 {strides = array<i32>} : memref<128x128xbf16, #tpu.memory_space<vmem>>, vector<128x128xbf16>,
    } else {
    }
    return
  }
  func.func @transform_0(%arg0: i32, %arg1: i32, %arg2: memref<3x3xi32, #tpu.memory_space<smem>>, %arg3: memref<3xi32, #tpu.memory_space<smem>>) -> (i32, i32) {
    %0 = arith.index_cast %arg0 : i32 to index
    %1 = arith.index_cast %arg1 : i32 to index
    %2 = memref.load %arg2[%0, %1] : memref<3x3xi32, #tpu.memory_space<smem>>
    %c0_i32 = arith.constant 0 : i32
    return %arg0, %2 : i32, i32
  }
  func.func @transform_1(%arg0: i32, %arg1: i32, %arg2: memref<3x3xi32, #tpu.memory_space<smem>>, %arg3: memref<3xi32, #tpu.memory_space<smem>>) -> (i32, i32) {
    %0 = arith.index_cast %arg0 : i32 to index
    %1 = arith.index_cast %arg1 : i32 to index
    %2 = memref.load %arg2[%0, %1] : memref<3x3xi32, #tpu.memory_space<smem>>
    %c0_i32 = arith.constant 0 : i32
    %c0_i32_0 = arith.constant 0 : i32
    return %2, %c0_i32 : i32, i32
  }
  func.func @transform_2(%arg0: i32, %arg1: i32, %arg2: memref<3x3xi32, #tpu.memory_space<smem>>, %arg3: memref<3xi32, #tpu.memory_space<smem>>) -> (i32, i32) {
    %c0_i32 = arith.constant 0 : i32
    %c0_i32_0 = arith.constant 0 : i32
    return %arg0, %c0_i32 : i32, i32
  }
  func.func @transform_3(%arg0: i32, %arg1: i32, %arg2: memref<3x3xi32, #tpu.memory_space<smem>>, %arg3: memref<3xi32, #tpu.memory_space<smem>>) -> (i32, i32) {
    %c0_i32 = arith.constant 0 : i32
    %c0_i32_0 = arith.constant 0 : i32
    %c0_i32_1 = arith.constant 0 : i32
    return %c0_i32, %c0_i32_0 : i32, i32
  }
  func.func @transform_4(%arg0: i32, %arg1: i32, %arg2: memref<3x3xi32, #tpu.memory_space<smem>>, %arg3: memref<3xi32, #tpu.memory_space<smem>>) -> (i32, i32) {
    %c0_i32 = arith.constant 0 : i32
    %c0_i32_0 = arith.constant 0 : i32
    %c0_i32_1 = arith.constant 0 : i32
    return %c0_i32, %c0_i32_0 : i32, i32
  }
  func.func @transform_5(%arg0: i32, %arg1: i32, %arg2: memref<3x3xi32, #tpu.memory_space<smem>>, %arg3: memref<3xi32, #tpu.memory_space<smem>>) -> (i32, i32) {
    %c0_i32 = arith.constant 0 : i32
    %c0_i32_0 = arith.constant 0 : i32
    %c0_i32_1 = arith.constant 0 : i32
    return %c0_i32, %c0_i32_0 : i32, i32
  }
  func.func @transform_6(%arg0: i32, %arg1: i32, %arg2: memref<3x3xi32, #tpu.memory_space<smem>>, %arg3: memref<3xi32, #tpu.memory_space<smem>>) -> (i32, i32) {
    %c0_i32 = arith.constant 0 : i32
    %c0_i32_0 = arith.constant 0 : i32
    %c0_i32_1 = arith.constant 0 : i32
    return %c0_i32, %c0_i32_0 : i32, i32
  }
  func.func @transform_7(%arg0: i32, %arg1: i32, %arg2: memref<3x3xi32, #tpu.memory_space<smem>>, %arg3: memref<3xi32, #tpu.memory_space<smem>>) -> (i32, i32) {
    %c0_i32 = arith.constant 0 : i32
    %c0_i32_0 = arith.constant 0 : i32
    return %arg0, %c0_i32 : i32, i32
  }
  func.func @transform_8(%arg0: i32, %arg1: i32, %arg2: memref<3x3xi32, #tpu.memory_space<smem>>, %arg3: memref<3xi32, #tpu.memory_space<smem>>) -> (i32, i32) {
    %c0_i32 = arith.constant 0 : i32
    %c0_i32_0 = arith.constant 0 : i32
    return %arg0, %c0_i32 : i32, i32
  }
}

</mosaic_0001>

<bundles_post_ra>
// kernel: forward.4
= control target key start
LH: loop header
LB: loop body
LE: loop exit
PB: predicated region body
PF: predicated region fallthrough
CT: control target
= control target key end

     0   :  { %11 = vsyncpa [#allocation3], 0  ;;  %s926_s18 = smov 0   ;;  %s1030_s0 = inlined_call_operand.vmem [shape: f32[384,128], index: 0, kind: input, shape index: {}]   ;;  %s1031_s1 = inlined_call_operand.hbm [shape: bf16[128,128], index: 1, kind: input, shape index: {}]   ;;  %s1032_s2 = inlined_call_operand.vmem [shape: f32[1,128], index: 2, kind: input, shape index: {}]   ;;  %s1033_s3 = inlined_call_operand.vmem [shape: bf16[128,128], index: 3, kind: input, shape index: {}]   ;;  %s1034_s4 = inlined_call_operand.vmem [shape: f32[384,128], index: 4, kind: output, shape index: {0}]   ;;  %s1035_s5 = inlined_call_operand.vmem [shape: bf16[384,128], index: 5, kind: output, shape index: {1}]  }
   0x1 LB: > { %s174_s21 = sshll.u32 %s1031_s1, 4  ;;  %s671_s22 = sadd.s32 4294967295, %s891_s18   ;;  %s891_s18 = sphi %s926_s18, %s17_s18   ;;  %s175_s21 = int_to_ptr.hbm [resolvable:$true] %s174_s21 }
   0x2   : > { %p673_p0 = scmp.ge.s32.totalorder %s891_s18, 1  ;;  %p163_p1 = scmp.lt.s32.totalorder %s891_s18, 4 }
   0x3   : > { %p837_p2 = scmp.eq.s32.totalorder %s671_s22, 0  ;;  %s893_s23 = smov [#allocation2]  }
   0x4   : > { %p164_p3 = pnand %p673_p0, %p163_p1  ;;  %s176_s24 = sshll.u32 %s893_s23, 4  ;;  %s177_s24 = int_to_ptr.vmem [resolvable:$true] %s176_s24 }
   0x5   : > { %s894_s25 = smov 64   ;;  %s895_s26 = smov 4  }
   0x6   : > { %p833_p4 = pneg %p164_p3  ;;  %207 = sbr.rel (%p164_p3) target bundleno = 379 (0x17b), region = 36 }
   0x8   : > { %p834_p5 = pnand %p837_p2, %p833_p4 }
   0xa   : > { %836 = dma.hbm_to_vmem [thread:$0]  (!%p834_p5), %s175_s21, 1024, %s177_s24, [#allocation3], %s894_s25, %s894_s25, %s895_s26  }
   0xb   : > { %886 = dma.done.wait (%p837_p2), [#allocation3], 1024  }
   0xc   : > { %888 = vsyncadd (%p837_p2), [#allocation3], 4294966272  ;;  %v757_v0 = vld [vmem:[#allocation2 + $0x38] sm:$0xff]  ;;  %v756_v1 = vld [vmem:[#allocation2 + $0x30] sm:$0xff]  ;;  %s678_s27 = sshll.u32 %s671_s22, 4 }
   0xd   : > { %351 = vmatpush.bf16.msra.mxu0 %v757_v0  ;;  %813 = vmatpush.bf16.msra.mxu2 %v757_v0  ;;  %v755_v2 = vld [vmem:[#allocation2 + $0x28] sm:$0xff]  ;;  %v754_v3 = vld [vmem:[#allocation2 + $0x20] sm:$0xff]  ;;  %p242_p6 = scmp.lt.s32.totalorder %s678_s27, 47  ;;  %v753_v4 = vld [vmem:[#allocation2 + $0x18] sm:$0xff] }
   0xe   : > { %v752_v5 = vld [vmem:[#allocation2 + $0x10] sm:$0xff]  ;;  %v751_v6 = vld [vmem:[#allocation2 + $0x8] sm:$0xff]  ;;  %v750_v7 = vld [vmem:[#allocation2] sm:$0xff] }
   0xf   : > { %s1037_s27 = smov (!%p242_p6, %s678_s27), 47  ;;  %v765_v20 = vld [vmem:[%s1033_s3 + $0x38] sm:$0xff]  ;;  %v764_v21 = vld [vmem:[%s1033_s3 + $0x30] sm:$0xff]  ;;  %v763_v22 = vld [vmem:[%s1033_s3 + $0x28] sm:$0xff] }
  0x10   : > { %s679_s28 = sshll.u32 %s1037_s27, 3  ;;  %488 = vmatpush.bf16.msra.mxu1 %v765_v20  ;;  %821 = vmatpush.bf16.msra.mxu3 %v765_v20  ;;  %v762_v27 = vld [vmem:[%s1033_s3 + $0x20] sm:$0xff]  ;;  %v761_v30 = vld [vmem:[%s1033_s3 + $0x18] sm:$0xff]  ;;  %v760_v37 = vld [vmem:[%s1033_s3 + $0x10] sm:$0xff] }
  0x11   : > { %352 = vmatpush.bf16.msra.mxu0 %v756_v1  ;;  %814 = vmatpush.bf16.msra.mxu2 %v756_v1  ;;  %s945_s6 = scalar_lea.vmem %s1030_s0, %s679_s28  ;;  %v759_v38 = vld [vmem:[%s1033_s3 + $0x8] sm:$0xff]  ;;  %v758_v39 = vld [vmem:[%s1033_s3] sm:$0xff]  ;;  %s995_s30 = scalar_lea.vmem %s1034_s4, %s679_s28 }
  0x12   : > { %v259_v8 = vld [vmem:[%s945_s6] sm:$0xff]  ;;  %v260_v9 = vld [vmem:[%s945_s6 + $0x8] sm:$0xff]  ;;  %v261_v14 = vld [vmem:[%s945_s6 + $0x10] sm:$0xff]  ;;  %s683_s28 = sshll.u32 %s1037_s27, 2 }
  0x13   : > { %v267_v10 = vld [vmem:[%s945_s6 + $0x40] sm:$0xff]  ;;  %v268_v11 = vld [vmem:[%s945_s6 + $0x48] sm:$0xff]  ;;  %v275_v12 = vpack.c.bf16 %v260_v9, %v259_v8  ;;  %v262_v15 = vld [vmem:[%s945_s6 + $0x18] sm:$0xff]  ;;  %s1017_s8 = scalar_lea.vmem %s1035_s5, %s683_s28 }
  0x14   : > { %v279_v13 = vpack.c.bf16 %v268_v11, %v267_v10  ;;  %v269_v16 = vld [vmem:[%s945_s6 + $0x50] sm:$0xff]  ;;  %v270_v17 = vld [vmem:[%s945_s6 + $0x58] sm:$0xff]  ;;  %v276_v18 = vpack.c.bf16 %v262_v15, %v261_v14  ;;  %489 = vmatpush.bf16.msra.mxu1 %v764_v21  ;;  %822 = vmatpush.bf16.msra.mxu3 %v764_v21  ;;  %v263_v23 = vld [vmem:[%s945_s6 + $0x20] sm:$0xff] }
  0x15   : > { %353 = vmatpush.bf16.msra.mxu0 %v755_v2  ;;  %815 = vmatpush.bf16.msra.mxu2 %v755_v2  ;;  %v280_v19 = vpack.c.bf16 %v270_v17, %v269_v16  ;;  %v264_v24 = vld [vmem:[%s945_s6 + $0x28] sm:$0xff]  ;;  %v271_v25 = vld [vmem:[%s945_s6 + $0x60] sm:$0xff]  ;;  %v265_v31 = vld [vmem:[%s945_s6 + $0x30] sm:$0xff] }
  0x16   : > { %v272_v26 = vld [vmem:[%s945_s6 + $0x68] sm:$0xff]  ;;  %v277_v28 = vpack.c.bf16 %v264_v24, %v263_v23  ;;  %v266_v32 = vld [vmem:[%s945_s6 + $0x38] sm:$0xff]  ;;  %v273_v33 = vld [vmem:[%s945_s6 + $0x70] sm:$0xff] }
  0x17   : > { %v281_v29 = vpack.c.bf16 %v272_v26, %v271_v25  ;;  %v274_v34 = vld [vmem:[%s945_s6 + $0x78] sm:$0xff]  ;;  %v278_v35 = vpack.c.bf16 %v266_v32, %v265_v31  ;;  %v850_v40 = vld [vmem:[%s1032_s2] ss:$0 sm:$0xff] }
  0x18   : > { %490 = vmatpush.bf16.msra.mxu1 %v763_v22  ;;  %823 = vmatpush.bf16.msra.mxu3 %v763_v22  ;;  %v282_v36 = vpack.c.bf16 %v274_v34, %v273_v33 }
  0x19   : > { %354 = vmatpush.bf16.msra.mxu0 %v754_v3  ;;  %816 = vmatpush.bf16.msra.mxu2 %v754_v3 }
  0x1c   : > { %491 = vmatpush.bf16.msra.mxu1 %v762_v27  ;;  %824 = vmatpush.bf16.msra.mxu3 %v762_v27 }
  0x1d   : > { %355 = vmatpush.bf16.msra.mxu0 %v753_v4  ;;  %817 = vmatpush.bf16.msra.mxu2 %v753_v4 }
  0x20   : > { %492 = vmatpush.bf16.msra.mxu1 %v761_v30  ;;  %825 = vmatpush.bf16.msra.mxu3 %v761_v30 }
  0x21   : > { %356 = vmatpush.bf16.msra.mxu0 %v752_v5  ;;  %818 = vmatpush.bf16.msra.mxu2 %v752_v5 }
  0x24   : > { %493 = vmatpush.bf16.msra.mxu1 %v760_v37  ;;  %826 = vmatpush.bf16.msra.mxu3 %v760_v37 }
  0x25   : > { %357 = vmatpush.bf16.msra.mxu0 %v751_v6  ;;  %819 = vmatpush.bf16.msra.mxu2 %v751_v6 }
  0x28   : > { %494 = vmatpush.bf16.msra.mxu1 %v759_v38  ;;  %827 = vmatpush.bf16.msra.mxu3 %v759_v38 }
  0x29   : > { %358 = vmatpush.bf16.msra.mxu0 %v750_v7  ;;  %820 = vmatpush.bf16.msra.mxu2 %v750_v7 }
  0x2c   : > { %359 = vmatmul.bf16.vlgmr.msra.gmra.mxu0 %v275_v12  ;;  %379 = vmatmul.bf16.vlgmr.msra.gmra.mxu2 %v279_v13 }
  0x2d   : > { %495 = vmatpush.bf16.msra.mxu1 %v758_v39  ;;  %828 = vmatpush.bf16.msra.mxu3 %v758_v39 }
  0x3c   : > { %364 = vmatmul.bf16.gmra.mxu0 %v276_v18  ;;  %384 = vmatmul.bf16.gmra.mxu2 %v280_v19 }
  0x4c   : > { %369 = vmatmul.bf16.gmra.mxu0 %v277_v28  ;;  %389 = vmatmul.bf16.gmra.mxu2 %v281_v29 }
  0x5c   : > { %374 = vmatmul.bf16.gmra.mxu0 %v278_v35  ;;  %394 = vmatmul.bf16.gmra.mxu2 %v282_v36 }
  0xa9   : > { %v360_v41 = vpop.f32.mrf.mxu0 }
  0xaa   : > { %v361_v42 = vadd.f32 %v850_v40, %v360_v41 }
  0xac   : > { %400 = vst [vmem:[%s995_s30] sm:$0xff] %v361_v42 }
  0xaf   : > { %v380_v43 = vpop.f32.mrf.mxu2 }
  0xb0   : > { %v381_v44 = vadd.f32 %v850_v40, %v380_v43 }
  0xb1   : > { %v362_v45 = vpop.f32.mrf.mxu0 }
  0xb2   : > { %408 = vst [vmem:[%s995_s30 + $0x40] sm:$0xff] %v381_v44  ;;  %v363_v46 = vadd.f32 %v850_v40, %v362_v45 }
  0xb4   : > { %401 = vst [vmem:[%s995_s30 + $0x8] sm:$0xff] %v363_v46  ;;  %v416_v47 = vpack.c.bf16 %v363_v46, %v361_v42 }
  0xb6   : > { %496 = vmatmul.bf16.vlgmr.msra.gmra.mxu1 %v416_v47 }
  0xb7   : > { %v382_v48 = vpop.f32.mrf.mxu2 }
  0xb8   : > { %v383_v49 = vadd.f32 %v850_v40, %v382_v48 }
  0xb9   : > { %v365_v50 = vpop.f32.mrf.mxu0 }
  0xba   : > { %409 = vst [vmem:[%s995_s30 + $0x48] sm:$0xff] %v383_v49  ;;  %v366_v51 = vadd.f32 %v850_v40, %v365_v50  ;;  %v420_v52 = vpack.c.bf16 %v383_v49, %v381_v44 }
  0xbc   : > { %402 = vst [vmem:[%s995_s30 + $0x10] sm:$0xff] %v366_v51  ;;  %516 = vmatmul.bf16.vlgmr.msra.gmra.mxu3 %v420_v52 }
  0xbf   : > { %v385_v53 = vpop.f32.mrf.mxu2 }
  0xc0   : > { %v386_v54 = vadd.f32 %v850_v40, %v385_v53 }
  0xc1   : > { %v367_v55 = vpop.f32.mrf.mxu0 }
  0xc2   : > { %410 = vst [vmem:[%s995_s30 + $0x50] sm:$0xff] %v386_v54  ;;  %v368_v56 = vadd.f32 %v850_v40, %v367_v55 }
  0xc4   : > { %403 = vst [vmem:[%s995_s30 + $0x18] sm:$0xff] %v368_v56  ;;  %v417_v57 = vpack.c.bf16 %v368_v56, %v366_v51 }
  0xc6   : > { %501 = vmatmul.bf16.gmra.mxu1 %v417_v57 }
  0xc7   : > { %v387_v58 = vpop.f32.mrf.mxu2 }
  0xc8   : > { %v388_v59 = vadd.f32 %v850_v40, %v387_v58 }
  0xc9   : > { %v370_v60 = vpop.f32.mrf.mxu0 }
  0xca   : > { %411 = vst [vmem:[%s995_s30 + $0x58] sm:$0xff] %v388_v59  ;;  %v371_v61 = vadd.f32 %v850_v40, %v370_v60  ;;  %v421_v62 = vpack.c.bf16 %v388_v59, %v386_v54 }
  0xcc   : > { %404 = vst [vmem:[%s995_s30 + $0x20] sm:$0xff] %v371_v61  ;;  %521 = vmatmul.bf16.gmra.mxu3 %v421_v62 }
  0xcf   : > { %v390_v63 = vpop.f32.mrf.mxu2 }
  0xd0   : > { %v391_v0 = vadd.f32 %v850_v40, %v390_v63 }
  0xd1   : > { %v372_v1 = vpop.f32.mrf.mxu0 }
  0xd2   : > { %412 = vst [vmem:[%s995_s30 + $0x60] sm:$0xff] %v391_v0  ;;  %v373_v2 = vadd.f32 %v850_v40, %v372_v1 }
  0xd4   : > { %405 = vst [vmem:[%s995_s30 + $0x28] sm:$0xff] %v373_v2  ;;  %v418_v3 = vpack.c.bf16 %v373_v2, %v371_v61 }
  0xd6   : > { %506 = vmatmul.bf16.gmra.mxu1 %v418_v3 }
  0xd7   : > { %v392_v4 = vpop.f32.mrf.mxu2 }
  0xd8   : > { %v393_v5 = vadd.f32 %v850_v40, %v392_v4 }
  0xd9   : > { %v375_v6 = vpop.f32.mrf.mxu0 }
  0xda   : > { %413 = vst [vmem:[%s995_s30 + $0x68] sm:$0xff] %v393_v5  ;;  %v376_v7 = vadd.f32 %v850_v40, %v375_v6  ;;  %v422_v8 = vpack.c.bf16 %v393_v5, %v391_v0 }
  0xdc   : > { %406 = vst [vmem:[%s995_s30 + $0x30] sm:$0xff] %v376_v7  ;;  %526 = vmatmul.bf16.gmra.mxu3 %v422_v8 }
  0xdf   : > { %v395_v9 = vpop.f32.mrf.mxu2 }
  0xe0   : > { %v396_v10 = vadd.f32 %v850_v40, %v395_v9 }
  0xe1   : > { %v377_v11 = vpop.f32.mrf.mxu0 }
  0xe2   : > { %414 = vst [vmem:[%s995_s30 + $0x70] sm:$0xff] %v396_v10  ;;  %v378_v12 = vadd.f32 %v850_v40, %v377_v11 }
  0xe4   : > { %407 = vst [vmem:[%s995_s30 + $0x38] sm:$0xff] %v378_v12  ;;  %v419_v13 = vpack.c.bf16 %v378_v12, %v376_v7 }
  0xe6   : > { %511 = vmatmul.bf16.gmra.mxu1 %v419_v13 }
  0xe7   : > { %v397_v14 = vpop.f32.mrf.mxu2 }
  0xe8   : > { %v398_v15 = vadd.f32 %v850_v40, %v397_v14 }
  0xea   : > { %415 = vst [vmem:[%s995_s30 + $0x78] sm:$0xff] %v398_v15  ;;  %v423_v16 = vpack.c.bf16 %v398_v15, %v396_v10 }
  0xec   : > { %531 = vmatmul.bf16.gmra.mxu3 %v423_v16 }
 0x133   : > { %v497_v17 = vpop.f32.mrf.mxu1 }
 0x13b   : > { %v499_v18 = vpop.f32.mrf.mxu1 }
 0x13c   : > { %v769_v19 = vpack.c.bf16 %v499_v18, %v497_v17 }
 0x13e   : > { %770 = vst [vmem:[%s1017_s8] sm:$0xff] %v769_v19  }
 0x13f   : > { %v517_v20 = vpop.f32.mrf.mxu3 }
 0x143   : > { %v502_v21 = vpop.f32.mrf.mxu1 }
 0x147   : > { %v519_v22 = vpop.f32.mrf.mxu3 }
 0x148   : > { %v789_v23 = vpack.c.bf16 %v519_v22, %v517_v20 }
 0x14a   : > { %809 = vst [vmem:[%s1017_s8 + $0x20] sm:$0xff] %v789_v23  }
 0x14b   : > { %v504_v24 = vpop.f32.mrf.mxu1 }
 0x14c   : > { %v774_v25 = vpack.c.bf16 %v504_v24, %v502_v21 }
 0x14e   : > { %806 = vst [vmem:[%s1017_s8 + $0x8] sm:$0xff] %v774_v25  }
 0x14f   : > { %v522_v26 = vpop.f32.mrf.mxu3 }
 0x153   : > { %v507_v27 = vpop.f32.mrf.mxu1 }
 0x157   : > { %v524_v28 = vpop.f32.mrf.mxu3 }
 0x158   : > { %v794_v29 = vpack.c.bf16 %v524_v28, %v522_v26 }
 0x15a   : > { %810 = vst [vmem:[%s1017_s8 + $0x28] sm:$0xff] %v794_v29  }
 0x15b   : > { %v509_v30 = vpop.f32.mrf.mxu1 }
 0x15c   : > { %v779_v31 = vpack.c.bf16 %v509_v30, %v507_v27 }
 0x15e   : > { %807 = vst [vmem:[%s1017_s8 + $0x10] sm:$0xff] %v779_v31  }
 0x15f   : > { %v527_v32 = vpop.f32.mrf.mxu3 }
 0x163   : > { %v512_v33 = vpop.f32.mrf.mxu1 }
 0x167   : > { %v529_v34 = vpop.f32.mrf.mxu3 }
 0x168   : > { %v799_v35 = vpack.c.bf16 %v529_v34, %v527_v32 }
 0x16a   : > { %811 = vst [vmem:[%s1017_s8 + $0x30] sm:$0xff] %v799_v35  }
 0x16b   : > { %v514_v36 = vpop.f32.mrf.mxu1 }
 0x16c   : > { %v784_v37 = vpack.c.bf16 %v514_v36, %v512_v33 }
 0x16e   : > { %808 = vst [vmem:[%s1017_s8 + $0x18] sm:$0xff] %v784_v37  }
 0x16f   : > { %v532_v38 = vpop.f32.mrf.mxu3 }
 0x177   : > { %v534_v39 = vpop.f32.mrf.mxu3 }
 0x178   : > { %v804_v40 = vpack.c.bf16 %v534_v39, %v532_v38 }
 0x17a   : > { %812 = vst [vmem:[%s1017_s8 + $0x38] sm:$0xff] %v804_v40  }
 0x17b PF: > { %s17_s18 = sadd.s32 1, %s891_s18  }
 0x17c   : > { %p14_p7 = scmp.ge.s32.totalorder %s17_s18, 5  }
 0x17e   :  { %16 = sbr.rel (!%p14_p7) target bundleno = 1 (0x1), region = 83 }
 0x183   :  { %608 = vsyncpa [#allocation3], 1 }
 0x184   :  { %610 = vsyncpa [#allocation3 + $0x1], 1 }

// kernel: forward.7
= control target key start
LH: loop header
LB: loop body
LE: loop exit
PB: predicated region body
PF: predicated region fallthrough
CT: control target
= control target key end

     0   :  { %s1906_s19 = smov [#allocation4]   ;;  %s1907_s20 = smov [#allocation5]   ;;  %s2743_s0 = inlined_call_operand.vmem [shape: s32[3,3], index: 0, kind: input, shape index: {}]   ;;  %s2744_s2 = inlined_call_operand.vmem [shape: bf16[384,384], index: 2, kind: input, shape index: {}]   ;;  %s2745_s3 = inlined_call_operand.vmem [shape: bf16[384,128], index: 3, kind: input, shape index: {}]   ;;  %s2746_s4 = inlined_call_operand.vmem [shape: f32[384,128], index: 4, kind: input, shape index: {}]   ;;  %s2747_s5 = inlined_call_operand.vmem [shape: f32[1,128], index: 5, kind: input, shape index: {}]   ;;  %s2748_s6 = inlined_call_operand.vmem [shape: f32[1,128], index: 6, kind: input, shape index: {}]   ;;  %s2749_s7 = inlined_call_operand.vmem [shape: f32[1,128], index: 7, kind: input, shape index: {}]   ;;  %s2750_s8 = inlined_call_operand.vmem [shape: bf16[128,128], index: 8, kind: input, shape index: {}]   ;;  %s2751_s9 = inlined_call_operand.vmem [shape: f32[1,128], index: 9, kind: input, shape index: {}]   ;;  %s2752_s10 = inlined_call_operand.vmem [shape: f32[384,128], index: 10, kind: output, shape index: {}]   ;;  %s2753_s1 = inlined_call_operand.vmem [shape: s32[3], index: 1, kind: input, shape index: {}]  }
   0x1   :  { %s16_s15 = sshll.u32 %s2743_s0, 4  ;;  %s21_s18 = sshll.u32 %s2753_s1, 4  ;;  %s17_s15 = int_to_ptr.vmem [resolvable:$true] %s16_s15  ;;  %s22_s18 = int_to_ptr.vmem [resolvable:$true] %s21_s18 }
   0x2   :  { %19 = dma.vmem_to_smem %s17_s15, 64, %s1906_s19, [#allocation3] }
   0x3   :  { %24 = dma.vmem_to_smem %s22_s18, 16, %s1907_s20, [#allocation3] }
   0x4   :  { %1876 = dma.done.wait [#allocation3], 80 }
   0x5   :  { %1877 = vsyncadd [#allocation3], 4294967216 }
   0x6   :  { %27 = sfence }
   0x7   :  { %s1970_s21 = smov 0   ;;  %s1972_s22 = smov 0  }
   0x8   :  { %s1974_s23 = smov 0   ;;  %s1976_s0 = smov 0  }
   0x9   :  { %s1978_s24 = smov 0   ;;  %s1980_s1 = smov 0  }
   0xa   :  { %s1982_s25 = smov 0  }
   0xb LB: > { %2757 = sst [smem:[#allocation8_spill]] %s1896_s24  ;;  %s42_s26 = sadd.s32 1, %s1896_s24  ;;  %s1904_s25 = sphi %s1982_s25, %s33_s25   ;;  %s1900_s1 = sphi %s1980_s1, %s2795_s1   ;;  %s1896_s24 = sphi %s1978_s24, %s2790_s24   ;;  %s1892_s0 = sphi %s1976_s0, %s2794_s0   ;;  %s1888_s23 = sphi %s1974_s23, %s2789_s23   ;;  %s1884_s22 = sphi %s1972_s22, %s2793_s22   ;;  %s1880_s21 = sphi %s1970_s21, %s2792_s21  }
   0xc   : > { %s45_s27 = sadd.s32 1, %s1900_s1  ;;  %p43_p0 = scmp.ge.s32.totalorder %s42_s26, 3 }
   0xd   : > { %s49_s28 = sshra.s32 %s1896_s24, 7  ;;  %s54_s30 = sand.u32 127, %s1896_s24 }
   0xe   : > { %s51_s29 = sadd.s32 %s1900_s1, %s49_s28  ;;  %s2797_s26 = smov (%p43_p0, %s42_s26), 0 }
   0xf   : > { %2758 = sst [smem:[#allocation9_spill]] %s2797_s26  ;;  %s2799_s27 = smov (!%p43_p0, %s45_s27), %s1900_s1 }
  0x10   : > { %s1535_s11 = sshll.u32 %s51_s29, 7  ;;  %p47_p1 = scmp.ge.s32.totalorder %s2799_s27, 3 }
  0x11   : > { %s55_s12 = sadd.s32 %s1535_s11, %s54_s30  ;;  %s57_s13 = sshra.s32 %s2797_s26, 7 }
  0x12   : > { %s2801_s27 = smov (%p47_p1, %s2799_s27), 0  ;;  %s62_s14 = sand.u32 127, %s2797_s26 }
  0x13   : > { %2759 = sst [smem:[#allocation10_spill]] %s2801_s27  ;;  %p77_p2 = scmp.ne.s32.totalorder %s1884_s22, %s1880_s21 }
  0x14   : > { %s56_s15 = sld [smem:[#allocation4 + %s55_s12]]  ;;  %s59_s16 = sadd.s32 %s57_s13, %s2801_s27 }
  0x15   : > { %s1536_s17 = sshll.u32 %s59_s16, 7  ;;  %p78_p3 = scmp.eq.s32.totalorder %s1904_s25, 0 }
  0x16   : > { %s63_s18 = sadd.s32 %s1536_s17, %s62_s14  ;;  %s65_s20 = ssub.s32 %s1900_s1, %s2801_s27 }
  0x17   : > { %s64_s19 = sld [smem:[#allocation4 + %s63_s18]]  ;;  %p79_p4 = por %p78_p3, %p77_p2 }
  0x18   : > { %s70_s24 = sadd.s32 1, %s1884_s22  ;;  %p1540_p6 = scmp.ge.s32.totalorder %s1904_s25, 9 }
  0x1d   : > { %s66_s28 = ssub.s32 %s56_s15, %s64_s19  ;;  %317 = sbr.rel (%p1540_p6) target bundleno = 60 (0x3c), region = 36 }
  0x1e   : > { %s67_s29 = sor.u32 %s66_s28, %s65_s20 }
  0x1f   : > { %p68_p5 = scmp.eq.s32.totalorder %s67_s29, 0 }
  0x21   : > { %s2025_s30 = scalar_select %p68_p5, %s1884_s22, %s70_s24  }
  0x22   : > { %320 = sbr.rel (!%p79_p4) target bundleno = 60 (0x3c), region = 40  ;;  %s332_s11 = sld [smem:[#allocation4 + %s55_s12]] (%p79_p4) }
  0x23   : > { %s322_s13 = sand.u32 (%p79_p4), 1, %s1884_s22   ;;  %s1728_s16 = smul.u32 (%p79_p4), 48, %s1900_s1 }
  0x24   : > { %s1541_s26 = sshll.u32 (%p79_p4), %s322_s13, 6 }
  0x25   : > { %s324_s24 = scalar_lea.vmem (%p79_p4), [#allocation6], %s1541_s26 }
  0x28   : > { %s335_s14 = sadd.s32 %s1728_s16, %s332_s11 }
  0x29   : > { %s1545_s17 = sshll.u32 %s335_s14, 2 }
  0x2a   : > { %s2033_s15 = scalar_lea.vmem %s2744_s2, %s1545_s17 }
  0x2b   : > { %v354_v0 = vld [vmem:[%s2033_s15] sm:$0xf]  ;;  %v356_v1 = vld [vmem:[%s2033_s15 + $0xc] sm:$0xf]  ;;  %v358_v2 = vld [vmem:[%s2033_s15 + $0x18] sm:$0xf] }
  0x2c   : > { %355 = vst [vmem:[%s324_s24] sm:$0xf] %v354_v0  ;;  %v360_v3 = vld [vmem:[%s2033_s15 + $0x24] sm:$0xf]  ;;  %v362_v4 = vld [vmem:[%s2033_s15 + $0x30] sm:$0xf] }
  0x2d   : > { %357 = vst [vmem:[%s324_s24 + $0x4] sm:$0xf] %v356_v1  ;;  %v364_v5 = vld [vmem:[%s2033_s15 + $0x3c] sm:$0xf]  ;;  %v366_v6 = vld [vmem:[%s2033_s15 + $0x48] sm:$0xf] }
  0x2e   : > { %359 = vst [vmem:[%s324_s24 + $0x8] sm:$0xf] %v358_v2  ;;  %v368_v7 = vld [vmem:[%s2033_s15 + $0x54] sm:$0xf]  ;;  %v370_v8 = vld [vmem:[%s2033_s15 + $0x60] sm:$0xf] }
  0x2f   : > { %361 = vst [vmem:[%s324_s24 + $0xc] sm:$0xf] %v360_v3  ;;  %v372_v9 = vld [vmem:[%s2033_s15 + $0x6c] sm:$0xf]  ;;  %v374_v10 = vld [vmem:[%s2033_s15 + $0x78] sm:$0xf] }
  0x30   : > { %363 = vst [vmem:[%s324_s24 + $0x10] sm:$0xf] %v362_v4  ;;  %v376_v11 = vld [vmem:[%s2033_s15 + $0x84] sm:$0xf]  ;;  %v378_v12 = vld [vmem:[%s2033_s15 + $0x90] sm:$0xf] }
  0x31   : > { %365 = vst [vmem:[%s324_s24 + $0x14] sm:$0xf] %v364_v5  ;;  %v380_v13 = vld [vmem:[%s2033_s15 + $0x9c] sm:$0xf]  ;;  %v382_v14 = vld [vmem:[%s2033_s15 + $0xa8] sm:$0xf] }
  0x32   : > { %367 = vst [vmem:[%s324_s24 + $0x18] sm:$0xf] %v366_v6  ;;  %v384_v15 = vld [vmem:[%s2033_s15 + $0xb4] sm:$0xf] }
  0x33   : > { %369 = vst [vmem:[%s324_s24 + $0x1c] sm:$0xf] %v368_v7 }
  0x34   : > { %371 = vst [vmem:[%s324_s24 + $0x20] sm:$0xf] %v370_v8 }
  0x35   : > { %373 = vst [vmem:[%s324_s24 + $0x24] sm:$0xf] %v372_v9 }
  0x36   : > { %375 = vst [vmem:[%s324_s24 + $0x28] sm:$0xf] %v374_v10 }
  0x37   : > { %377 = vst [vmem:[%s324_s24 + $0x2c] sm:$0xf] %v376_v11 }
  0x38   : > { %379 = vst [vmem:[%s324_s24 + $0x30] sm:$0xf] %v378_v12 }
  0x39   : > { %381 = vst [vmem:[%s324_s24 + $0x34] sm:$0xf] %v380_v13 }
  0x3a   : > { %383 = vst [vmem:[%s324_s24 + $0x38] sm:$0xf] %v382_v14 }
  0x3b   : > { %385 = vst [vmem:[%s324_s24 + $0x3c] sm:$0xf] %v384_v15 }
  0x3c PF: > { %p1546_p7 = scmp.ge.s32.totalorder %s1904_s25, 1  ;;  %p474_p8 = scmp.lt.s32.totalorder %s1904_s25, 10 }
  0x3e   : > { %p475_p9 = pnand %p1546_p7, %p474_p8 }
  0x3f   : > { %s481_s26 = sand.u32 (!%p475_p9), 1, %s1880_s21   ;;  %s541_s27 = sshra.s32 (!%p475_p9), %s1888_s23, 7 }
  0x40   : > { %478 = sbr.rel (%p475_p9) target bundleno = 772 (0x304), region = 89  ;;  %s1547_s12 = sshll.u32 (!%p475_p9), %s481_s26, 6 }
  0x41   : > { %s543_s19 = sadd.s32 (!%p475_p9), %s1892_s0, %s541_s27  ;;  %s546_s28 = sand.u32 (!%p475_p9), 127, %s1888_s23 }
  0x42   : > { %s1548_s20 = sshll.u32 (!%p475_p9), %s543_s19, 7  ;;  %s1551_s29 = sshll.u32 (!%p475_p9), %s1892_s0, 4 }
  0x43   : > { %s547_s11 = sadd.s32 (!%p475_p9), %s1548_s20, %s546_s28  ;;  %p564_p10 = scmp.lt.s32.totalorder (!%p475_p9), %s1551_s29, 47 }
  0x44   : > { %s548_s13 = sld [smem:[#allocation4 + %s547_s11]] (!%p475_p9)  ;;  %p1555_p12 = scmp.ne.s32.totalorder (!%p475_p9), %s1888_s23, 0 }
  0x45   : > { %s2803_s29 = smov (!%p564_p10, %s1551_s29), 47 }
  0x46   : > { %s1552_s16 = sshll.u32 %s2803_s29, 3  ;;  %s2073_s29 = scalar_lea.vmem [#allocation6], %s1547_s12 }
  0x47   : > { %s2061_s18 = scalar_lea.vmem %s2746_s4, %s1552_s16  ;;  %s2066_s21 = scalar_lea.vmem %s2752_s10, %s1552_s16 }
  0x4a   : > { %s1549_s26 = sshll.u32 %s548_s13, 4 }
  0x4b   : > { %p550_p11 = scmp.lt.s32.totalorder %s1549_s26, 47  ;;  %578 = sbr.rel (%p1555_p12) target bundleno = 97 (0x61), region = 97 }
  0x4d   : > { %s2805_s26 = smov (!%p550_p11, %s1549_s26), 47 }
  0x4e   : > { %s1550_s27 = sshll.u32 %s2805_s26, 2 }
  0x4f   : > { %s2071_s28 = scalar_lea.vmem %s2745_s3, %s1550_s27 }
  0x50   : > { %v1908_v16 = vmov 0.0  }
  0x51   : > { %579 = vst [vmem:[#allocation2 + $0x30] sm:$0xff] %v1908_v16 }
  0x52   : > { %580 = vst [vmem:[#allocation2] sm:$0xff] %v1908_v16 }
  0x53   : > { %581 = vst [vmem:[#allocation2 + $0x58] sm:$0xff] %v1908_v16 }
  0x54   : > { %582 = vst [vmem:[#allocation2 + $0x18] sm:$0xff] %v1908_v16 }
  0x55   : > { %583 = vst [vmem:[#allocation2 + $0x50] sm:$0xff] %v1908_v16 }
  0x56   : > { %584 = vst [vmem:[#allocation2 + $0x68] sm:$0xff] %v1908_v16 }
  0x57   : > { %585 = vst [vmem:[#allocation2 + $0x8] sm:$0xff] %v1908_v16 }
  0x58   : > { %586 = vst [vmem:[#allocation2 + $0x48] sm:$0xff] %v1908_v16 }
  0x59   : > { %587 = vst [vmem:[#allocation2 + $0x40] sm:$0xff] %v1908_v16 }
  0x5a   : > { %588 = vst [vmem:[#allocation2 + $0x20] sm:$0xff] %v1908_v16 }
  0x5b   : > { %589 = vst [vmem:[#allocation2 + $0x10] sm:$0xff] %v1908_v16 }
  0x5c   : > { %590 = vst [vmem:[#allocation2 + $0x38] sm:$0xff] %v1908_v16 }
  0x5d   : > { %591 = vst [vmem:[#allocation2 + $0x60] sm:$0xff] %v1908_v16 }
  0x5e   : > { %592 = vst [vmem:[#allocation2 + $0x70] sm:$0xff] %v1908_v16 }
  0x5f   : > { %593 = vst [vmem:[#allocation2 + $0x78] sm:$0xff] %v1908_v16 }
  0x60   : > { %594 = vst [vmem:[#allocation2 + $0x28] sm:$0xff] %v1908_v16 }
  0x61 PF: > { %s595_s12 = sld [smem:[#allocation5 + %s1892_s0]] }
  0x67   : > { %p1556_p13 = scmp.ge.s32.totalorder %s1888_s23, %s595_s12 }
  0x69   : > { %599 = sbr.rel (%p1556_p13) target bundleno = 303 (0x12f), region = 101 }
  0x6e   : > { %v1671_v17 = vld [vmem:[%s2071_s28 + $0x38] sm:$0xff]  ;;  %v1670_v18 = vld [vmem:[%s2071_s28 + $0x30] sm:$0xff]  ;;  %v1669_v19 = vld [vmem:[%s2071_s28 + $0x28] sm:$0xff] }
  0x6f   : > { %744 = vmatpush.bf16.msra.mxu0 %v1671_v17  ;;  %1680 = vmatpush.bf16.msra.mxu1 %v1671_v17  ;;  %v1668_v20 = vld [vmem:[%s2071_s28 + $0x20] sm:$0xff]  ;;  %v1667_v21 = vld [vmem:[%s2071_s28 + $0x18] sm:$0xff]  ;;  %v1666_v22 = vld [vmem:[%s2071_s28 + $0x10] sm:$0xff] }
  0x70   : > { %1681 = vmatpush.bf16.msra.mxu2 %v1671_v17  ;;  %1682 = vmatpush.bf16.msra.mxu3 %v1671_v17  ;;  %v1665_v23 = vld [vmem:[%s2071_s28 + $0x8] sm:$0xff]  ;;  %v1664_v24 = vld [vmem:[%s2071_s28] sm:$0xff]  ;;  %v1658_v26 = vld [vmem:[%s2073_s29 + $0x10] sm:$0xff] }
  0x71   : > { %v1656_v25 = vld [vmem:[%s2073_s29] sm:$0xff]  ;;  %v1662_v28 = vld [vmem:[%s2073_s29 + $0x30] sm:$0xff]  ;;  %v1657_v29 = vld [vmem:[%s2073_s29 + $0x8] sm:$0xff] }
  0x72   : > { %v1660_v27 = vld [vmem:[%s2073_s29 + $0x20] sm:$0xff]  ;;  %v1659_v30 = vld [vmem:[%s2073_s29 + $0x18] sm:$0xff]  ;;  %v1661_v31 = vld [vmem:[%s2073_s29 + $0x28] sm:$0xff] }
  0x73   : > { %745 = vmatpush.bf16.msra.mxu0 %v1670_v18  ;;  %1683 = vmatpush.bf16.msra.mxu1 %v1670_v18  ;;  %v1663_v32 = vld [vmem:[%s2073_s29 + $0x38] sm:$0xff]  ;;  %v600_v33 = vld [vmem:[#allocation2 + $0x30] sm:$0xff]  ;;  %v608_v39 = vld [vmem:[#allocation2 + $0x40] sm:$0xff] }
  0x74   : > { %1684 = vmatpush.bf16.msra.mxu2 %v1670_v18  ;;  %1685 = vmatpush.bf16.msra.mxu3 %v1670_v18  ;;  %v604_v34 = vld [vmem:[#allocation2 + $0x50] sm:$0xff]  ;;  %v612_v40 = vld [vmem:[#allocation2 + $0x60] sm:$0xff]  ;;  %v605_v42 = vld [vmem:[#allocation2 + $0x68] sm:$0xff] }
  0x75   : > { %v601_v41 = vld [vmem:[#allocation2] sm:$0xff]  ;;  %v613_v52 = vld [vmem:[#allocation2 + $0x70] sm:$0xff]  ;;  %v602_v53 = vld [vmem:[#allocation2 + $0x58] sm:$0xff] }
  0x76   : > { %v609_v51 = vld [vmem:[#allocation2 + $0x20] sm:$0xff]  ;;  %v606_v54 = vld [vmem:[#allocation2 + $0x8] sm:$0xff]  ;;  %v610_v63 = vld [vmem:[#allocation2 + $0x10] sm:$0xff] }
  0x77   : > { %746 = vmatpush.bf16.msra.mxu0 %v1669_v19  ;;  %1686 = vmatpush.bf16.msra.mxu1 %v1669_v19  ;;  %v614_v0 = vld [vmem:[#allocation2 + $0x78] sm:$0xff]  ;;  %v607_v2 = vld [vmem:[#allocation2 + $0x48] sm:$0xff] }
  0x78   : > { %1687 = vmatpush.bf16.msra.mxu2 %v1669_v19  ;;  %1688 = vmatpush.bf16.msra.mxu3 %v1669_v19  ;;  %v603_v1 = vld [vmem:[#allocation2 + $0x18] sm:$0xff]  ;;  %v615_v12 = vld [vmem:[#allocation2 + $0x28] sm:$0xff] }
  0x79   : > { %v611_v11 = vld [vmem:[#allocation2 + $0x38] sm:$0xff] }
  0x7b   : > { %747 = vmatpush.bf16.msra.mxu0 %v1668_v20  ;;  %1689 = vmatpush.bf16.msra.mxu1 %v1668_v20 }
  0x7c   : > { %1690 = vmatpush.bf16.msra.mxu2 %v1668_v20  ;;  %1691 = vmatpush.bf16.msra.mxu3 %v1668_v20 }
  0x7f   : > { %748 = vmatpush.bf16.msra.mxu0 %v1667_v21  ;;  %1692 = vmatpush.bf16.msra.mxu1 %v1667_v21 }
  0x80   : > { %1693 = vmatpush.bf16.msra.mxu2 %v1667_v21  ;;  %1694 = vmatpush.bf16.msra.mxu3 %v1667_v21 }
  0x83   : > { %749 = vmatpush.bf16.msra.mxu0 %v1666_v22  ;;  %1695 = vmatpush.bf16.msra.mxu1 %v1666_v22 }
  0x84   : > { %1696 = vmatpush.bf16.msra.mxu2 %v1666_v22  ;;  %1697 = vmatpush.bf16.msra.mxu3 %v1666_v22 }
  0x87   : > { %750 = vmatpush.bf16.msra.mxu0 %v1665_v23  ;;  %1698 = vmatpush.bf16.msra.mxu1 %v1665_v23 }
  0x88   : > { %1699 = vmatpush.bf16.msra.mxu2 %v1665_v23  ;;  %1700 = vmatpush.bf16.msra.mxu3 %v1665_v23 }
  0x8b   : > { %751 = vmatpush.bf16.msra.mxu0 %v1664_v24  ;;  %1701 = vmatpush.bf16.msra.mxu1 %v1664_v24 }
  0x8c   : > { %1702 = vmatpush.bf16.msra.mxu2 %v1664_v24  ;;  %1703 = vmatpush.bf16.msra.mxu3 %v1664_v24 }
  0x8e   : > { %752 = vmatmul.bf16.vlgmr.msra.gmra.mxu0 %v1656_v25  ;;  %762 = vmatmul.bf16.vlgmr.msra.gmra.mxu1 %v1658_v26 }
  0x8f   : > { %772 = vmatmul.bf16.vlgmr.msra.gmra.mxu2 %v1660_v27  ;;  %782 = vmatmul.bf16.vlgmr.msra.gmra.mxu3 %v1662_v28 }
  0x9e   : > { %757 = vmatmul.bf16.gmra.mxu0 %v1657_v29  ;;  %767 = vmatmul.bf16.gmra.mxu1 %v1659_v30 }
  0x9f   : > { %777 = vmatmul.bf16.gmra.mxu2 %v1661_v31  ;;  %787 = vmatmul.bf16.gmra.mxu3 %v1663_v32 }
 0x10b   : > { %v753_v35 = vpop.f32.mrf.mxu0  ;;  %v763_v36 = vpop.f32.mrf.mxu1 }
 0x10c   : > { %v793_v37 = vadd.f32 %v753_v35, %v600_v33  ;;  %v797_v38 = vadd.f32 %v763_v36, %v604_v34 }
 0x10e   : > { %809 = vst [vmem:[#allocation2 + $0x30] sm:$0xff] %v793_v37 }
 0x10f   : > { %813 = vst [vmem:[#allocation2 + $0x50] sm:$0xff] %v797_v38 }
 0x112   : > { %v773_v43 = vpop.f32.mrf.mxu2  ;;  %v783_v44 = vpop.f32.mrf.mxu3 }
 0x113   : > { %v801_v45 = vadd.f32 %v773_v43, %v608_v39  ;;  %v805_v46 = vadd.f32 %v783_v44, %v612_v40  ;;  %v755_v47 = vpop.f32.mrf.mxu0  ;;  %v765_v48 = vpop.f32.mrf.mxu1 }
 0x114   : > { %v794_v49 = vadd.f32 %v755_v47, %v601_v41  ;;  %v798_v50 = vadd.f32 %v765_v48, %v605_v42 }
 0x115   : > { %817 = vst [vmem:[#allocation2 + $0x40] sm:$0xff] %v801_v45 }
 0x116   : > { %821 = vst [vmem:[#allocation2 + $0x60] sm:$0xff] %v805_v46 }
 0x117   : > { %810 = vst [vmem:[#allocation2] sm:$0xff] %v794_v49 }
 0x118   : > { %814 = vst [vmem:[#allocation2 + $0x68] sm:$0xff] %v798_v50 }
 0x11a   : > { %v775_v55 = vpop.f32.mrf.mxu2  ;;  %v785_v56 = vpop.f32.mrf.mxu3 }
 0x11b   : > { %v802_v57 = vadd.f32 %v775_v55, %v609_v51  ;;  %v806_v58 = vadd.f32 %v785_v56, %v613_v52  ;;  %v758_v59 = vpop.f32.mrf.mxu0  ;;  %v768_v60 = vpop.f32.mrf.mxu1 }
 0x11c   : > { %v795_v61 = vadd.f32 %v758_v59, %v602_v53  ;;  %v799_v62 = vadd.f32 %v768_v60, %v606_v54 }
 0x11d   : > { %818 = vst [vmem:[#allocation2 + $0x20] sm:$0xff] %v802_v57 }
 0x11e   : > { %822 = vst [vmem:[#allocation2 + $0x70] sm:$0xff] %v806_v58 }
 0x11f   : > { %811 = vst [vmem:[#allocation2 + $0x58] sm:$0xff] %v795_v61 }
 0x120   : > { %815 = vst [vmem:[#allocation2 + $0x8] sm:$0xff] %v799_v62 }
 0x122   : > { %v778_v3 = vpop.f32.mrf.mxu2  ;;  %v788_v4 = vpop.f32.mrf.mxu3 }
 0x123   : > { %v803_v5 = vadd.f32 %v778_v3, %v610_v63  ;;  %v807_v6 = vadd.f32 %v788_v4, %v614_v0  ;;  %v760_v7 = vpop.f32.mrf.mxu0  ;;  %v770_v8 = vpop.f32.mrf.mxu1 }
 0x124   : > { %v796_v9 = vadd.f32 %v760_v7, %v603_v1  ;;  %v800_v10 = vadd.f32 %v770_v8, %v607_v2 }
 0x125   : > { %819 = vst [vmem:[#allocation2 + $0x10] sm:$0xff] %v803_v5 }
 0x126   : > { %823 = vst [vmem:[#allocation2 + $0x78] sm:$0xff] %v807_v6 }
 0x127   : > { %812 = vst [vmem:[#allocation2 + $0x18] sm:$0xff] %v796_v9 }
 0x128   : > { %816 = vst [vmem:[#allocation2 + $0x48] sm:$0xff] %v800_v10 }
 0x12a   : > { %v780_v13 = vpop.f32.mrf.mxu2  ;;  %v790_v14 = vpop.f32.mrf.mxu3 }
 0x12b   : > { %v804_v15 = vadd.f32 %v780_v13, %v611_v11  ;;  %v808_v16 = vadd.f32 %v790_v14, %v615_v12 }
 0x12d   : > { %820 = vst [vmem:[#allocation2 + $0x38] sm:$0xff] %v804_v15 }
 0x12e   : > { %824 = vst [vmem:[#allocation2 + $0x28] sm:$0xff] %v808_v16 }
 0x12f PF: > { %p1621_p0 = scmp.ne.s32.totalorder %s1888_s23, 2 }
 0x131   : > { %828 = sbr.rel (%p1621_p0) target bundleno = 772 (0x304), region = 105 }
 0x136   : > { %v841_v17 = vld [vmem:[#allocation2 + $0x60] sm:$0xff]  ;;  %v829_v20 = vld [vmem:[#allocation2 + $0x30] sm:$0xff]  ;;  %v858_v39 = vld [vmem:[%s2061_s18 + $0x68] sm:$0xff] }
 0x137   : > { %v2098_v18 = vld [vmem:[%s2747_s5] ss:$0 sm:$0xff]  ;;  %v842_v21 = vld [vmem:[#allocation2 + $0x70] sm:$0xff]  ;;  %v854_v42 = vld [vmem:[%s2061_s18 + $0x48] sm:$0xff] }
 0x138   : > { %v837_v19 = vld [vmem:[#allocation2 + $0x40] sm:$0xff]  ;;  %v879_v23 = vadd.f32 %v2098_v18, %v841_v17  ;;  %v867_v25 = vadd.f32 %v2098_v18, %v829_v20  ;;  %v880_v29 = vadd.f32 %v2098_v18, %v842_v21  ;;  %v833_v44 = vld [vmem:[#allocation2 + $0x50] sm:$0xff]  ;;  %v834_v45 = vld [vmem:[#allocation2 + $0x68] sm:$0xff] }
 0x139   : > { %v857_v22 = vld [vmem:[%s2061_s18 + $0x60] sm:$0xff]  ;;  %v875_v24 = vadd.f32 %v2098_v18, %v837_v19  ;;  %v846_v46 = vld [vmem:[%s2061_s18 + $0x8] sm:$0xff]  ;;  %v839_v47 = vld [vmem:[#allocation2 + $0x10] sm:$0xff]  ;;  %v871_v50 = vadd.f32 %v2098_v18, %v833_v44  ;;  %v872_v51 = vadd.f32 %v2098_v18, %v834_v45 }
 0x13a   : > { %v838_v26 = vld [vmem:[#allocation2 + $0x20] sm:$0xff]  ;;  %v895_v31 = vmax.f32 %v879_v23, 0.0  ;;  %v883_v33 = vmax.f32 %v867_v25, 0.0  ;;  %v896_v40 = vmax.f32 %v880_v29, 0.0  ;;  %v877_v53 = vadd.f32 %v2098_v18, %v839_v47  ;;  %v850_v58 = vld [vmem:[%s2061_s18 + $0x28] sm:$0xff]  ;;  %v840_v59 = vld [vmem:[#allocation2 + $0x38] sm:$0xff] }
 0x13b   : > { %v853_v27 = vld [vmem:[%s2061_s18 + $0x40] sm:$0xff]  ;;  %v891_v32 = vmax.f32 %v875_v24, 0.0  ;;  %v876_v34 = vadd.f32 %v2098_v18, %v838_v26  ;;  %v887_v55 = vmax.f32 %v871_v50, 0.0  ;;  %v888_v56 = vmax.f32 %v872_v51, 0.0  ;;  %v843_v60 = vld [vmem:[#allocation2 + $0x78] sm:$0xff]  ;;  %v855_v61 = vld [vmem:[%s2061_s18 + $0x50] sm:$0xff] }
 0x13c   : > { %v845_v28 = vld [vmem:[%s2061_s18] sm:$0xff]  ;;  %v2109_v36 = vadd.f32 %v895_v31, %v857_v22  ;;  %v2121_v48 = vadd.f32 %v896_v40, %v858_v39  ;;  %v893_v57 = vmax.f32 %v877_v53, 0.0  ;;  %v844_v62 = vld [vmem:[#allocation2 + $0x28] sm:$0xff]  ;;  %v878_v1 = vadd.f32 %v2098_v18, %v840_v59  ;;  %v856_v5 = vld [vmem:[%s2061_s18 + $0x58] sm:$0xff] }
 0x13d   : > { %v830_v30 = vld [vmem:[#allocation2] sm:$0xff]  ;;  %v2111_v37 = vadd.f32 %v891_v32, %v853_v27  ;;  %v2113_v38 = vadd.f32 %v883_v33, %v845_v28  ;;  %v892_v41 = vmax.f32 %v876_v34, 0.0  ;;  %v2138_v0 = vadd.f32 %v888_v56, %v850_v58  ;;  %v859_v9 = vld [vmem:[%s2061_s18 + $0x70] sm:$0xff]  ;;  %v831_v10 = vld [vmem:[#allocation2 + $0x58] sm:$0xff] }
 0x13e   : > { %v868_v35 = vadd.f32 %v2098_v18, %v830_v30  ;;  %942 = vadd.xlane.f32.xlu1 %v2109_v36  ;;  %v849_v54 = vld [vmem:[%s2061_s18 + $0x20] sm:$0xff]  ;;  %v881_v2 = vadd.f32 %v2098_v18, %v843_v60  ;;  %v2142_v3 = vadd.f32 %v893_v57, %v855_v61  ;;  %v882_v4 = vadd.f32 %v2098_v18, %v844_v62  ;;  %v832_v11 = vld [vmem:[#allocation2 + $0x18] sm:$0xff]  ;;  %v835_v13 = vld [vmem:[#allocation2 + $0x8] sm:$0xff] }
 0x13f   : > { %934 = vadd.xlane.f32.xlu0 %v2111_v37  ;;  %918 = vadd.xlane.f32.xlu2 %v2113_v38  ;;  %v2123_v49 = vadd.f32 %v892_v41, %v854_v42  ;;  %v2136_v63 = vadd.f32 %v887_v55, %v849_v54  ;;  %v894_v6 = vmax.f32 %v878_v1, 0.0  ;;  %v860_v12 = vld [vmem:[%s2061_s18 + $0x78] sm:$0xff]  ;;  %v869_v16 = vadd.f32 %v2098_v18, %v831_v10  ;;  %v847_v23 = vld [vmem:[%s2061_s18 + $0x10] sm:$0xff]  ;;  %v836_v26 = vld [vmem:[#allocation2 + $0x48] sm:$0xff] }
 0x140   : > { %v884_v43 = vmax.f32 %v868_v35, 0.0  ;;  %v897_v7 = vmax.f32 %v881_v2, 0.0  ;;  %v898_v8 = vmax.f32 %v882_v4, 0.0  ;;  %v870_v17 = vadd.f32 %v2098_v18, %v832_v11  ;;  %v848_v25 = vld [vmem:[%s2061_s18 + $0x18] sm:$0xff]  ;;  %v851_v27 = vld [vmem:[%s2061_s18 + $0x30] sm:$0xff] }
 0x141   : > { %v2151_v14 = vadd.f32 %v894_v6, %v856_v5  ;;  %v873_v20 = vadd.f32 %v2098_v18, %v835_v13  ;;  %v885_v21 = vmax.f32 %v869_v16, 0.0  ;;  %v874_v30 = vadd.f32 %v2098_v18, %v836_v26  ;;  %v852_v33 = vld [vmem:[%s2061_s18 + $0x38] sm:$0xff] }
 0x142   : > { %v2127_v52 = vadd.f32 %v884_v43, %v846_v46  ;;  %v2153_v15 = vadd.f32 %v897_v7, %v859_v9  ;;  %v2157_v19 = vadd.f32 %v898_v8, %v860_v12  ;;  %v886_v22 = vmax.f32 %v870_v17, 0.0 }
 0x143   : > { %v889_v24 = vmax.f32 %v873_v20, 0.0  ;;  %v2166_v28 = vadd.f32 %v885_v21, %v847_v23  ;;  %v890_v32 = vmax.f32 %v874_v30, 0.0  ;;  %v915_v35 = vlaneseq }
 0x144   : > { %v2168_v29 = vadd.f32 %v886_v22, %v848_v25 }
 0x145   : > { %v2171_v31 = vadd.f32 %v889_v24, %v851_v27  ;;  %v2177_v34 = vadd.f32 %v890_v32, %v852_v33  ;;  %v2180_v39 = vand.u32 127, %v915_v35 }
 0x146   : > { %944 = vadd.xlane.f32.xlu1 %v2121_v48 }
 0x147   : > { %936 = vadd.xlane.f32.xlu0 %v2123_v49  ;;  %920 = vadd.xlane.f32.xlu2 %v2127_v52  ;;  %vm917_vm0 = vcmp.lt.s32.totalorder %v2180_v39, 32  ;;  %v1677_v39 = vld [vmem:[%s2750_s8 + $0x28] sm:$0xff] }
 0x14e   : > { %928 = vadd.xlane.f32.xlu1 %v2138_v0 }
 0x14f   : > { %926 = vadd.xlane.f32.xlu0 %v2136_v63  ;;  %938 = vadd.xlane.f32.xlu2 %v2142_v3 }
 0x156   : > { %946 = vadd.xlane.f32.xlu1 %v2153_v15 }
 0x157   : > { %940 = vadd.xlane.f32.xlu0 %v2151_v14  ;;  %948 = vadd.xlane.f32.xlu2 %v2157_v19 }
 0x15e   : > { %924 = vadd.xlane.f32.xlu1 %v2168_v29 }
 0x15f   : > { %922 = vadd.xlane.f32.xlu0 %v2166_v28  ;;  %930 = vadd.xlane.f32.xlu2 %v2171_v31 }
 0x167   : > { %932 = vadd.xlane.f32.xlu0 %v2177_v34 }
 0x1b1   : > { %v943_v40 = vpop.xlane.xlu1 %942 }
 0x1b2   : > { %v935_v41 = vpop.xlane.xlu0 %934  ;;  %v962_v18 = vmul.f32 0.03125, %v943_v40  ;;  %v919_v43 = vpop.xlane.xlu2 %918 }
 0x1b3   : > { %v958_v42 = vmul.f32 0.03125, %v935_v41  ;;  %v950_v57 = vmul.f32 0.03125, %v919_v43 }
 0x1b4   : > { %v978_v44 = vsub.f32 %v2109_v36, %v962_v18 }
 0x1b5   : > { %v974_v45 = vsub.f32 %v2111_v37, %v958_v42 }
 0x1b6   : > { %v2191_v47 = vsel %vm917_vm0, %v978_v44, 0.0 }
 0x1b7   : > { %v2187_v46 = vsel %vm917_vm0, %v974_v45, 0.0  ;;  %v1010_v51 = vmul.f32 %v2191_v47, %v2191_v47 }
 0x1b8   : > { %v1006_v50 = vmul.f32 %v2187_v46, %v2187_v46 }
 0x1b9   : > { %v945_v53 = vpop.xlane.xlu1 %944  ;;  %1038 = vadd.xlane.f32.xlu0 %v1010_v51 }
 0x1ba   : > { %v937_v54 = vpop.xlane.xlu0 %936  ;;  %1030 = vadd.xlane.f32.xlu1 %v1006_v50  ;;  %v963_v36 = vmul.f32 0.03125, %v945_v53  ;;  %v921_v55 = vpop.xlane.xlu2 %920 }
 0x1bb   : > { %v959_v37 = vmul.f32 0.03125, %v937_v54  ;;  %v951_v56 = vmul.f32 0.03125, %v921_v55 }
 0x1bc   : > { %v979_v58 = vsub.f32 %v2121_v48, %v963_v36 }
 0x1bd   : > { %v975_v59 = vsub.f32 %v2123_v49, %v959_v37  ;;  %v967_v60 = vsub.f32 %v2127_v52, %v951_v56  ;;  %v966_v49 = vsub.f32 %v2113_v38, %v950_v57 }
 0x1be   : > { %v2202_v61 = vsel %vm917_vm0, %v979_v58, 0.0 }
 0x1bf   : > { %v2206_v62 = vsel %vm917_vm0, %v975_v59, 0.0  ;;  %v1011_v1 = vmul.f32 %v2202_v61, %v2202_v61  ;;  %v2214_v48 = vsel %vm917_vm0, %v967_v60, 0.0  ;;  %v2222_v11 = vsel %vm917_vm0, %v966_v49, 0.0  ;;  %v1679_v60 = vld [vmem:[%s2750_s8 + $0x38] sm:$0xff]  ;;  %v1674_v49 = vld [vmem:[%s2750_s8 + $0x10] sm:$0xff] }
 0x1c0   : > { %v1007_v2 = vmul.f32 %v2206_v62, %v2206_v62  ;;  %v999_v52 = vmul.f32 %v2214_v48, %v2214_v48  ;;  %v998_v17 = vmul.f32 %v2222_v11, %v2222_v11  ;;  %1705 = vmatpush.bf16.msra.mxu2 %v1679_v60  ;;  %1706 = vmatpush.bf16.msra.mxu3 %v1679_v60 }
 0x1c1   : > { %v929_v5 = vpop.xlane.xlu1 %928  ;;  %1368 = vmatpush.bf16.msra.mxu0 %v1679_v60  ;;  %1704 = vmatpush.bf16.msra.mxu1 %v1679_v60 }
 0x1c2   : > { %v927_v4 = vpop.xlane.xlu0 %926  ;;  %1040 = vadd.xlane.f32.xlu1 %v1011_v1  ;;  %1032 = vadd.xlane.f32.xlu2 %v1007_v2  ;;  %v939_v7 = vpop.xlane.xlu2 %938  ;;  %v955_v8 = vmul.f32 0.03125, %v929_v5  ;;  %v1676_v1 = vld [vmem:[%s2750_s8 + $0x20] sm:$0xff]  ;;  %v1675_v2 = vld [vmem:[%s2750_s8 + $0x18] sm:$0xff] }
 0x1c3   : > { %v954_v6 = vmul.f32 0.03125, %v927_v4  ;;  %1016 = vadd.xlane.f32.xlu0 %v999_v52  ;;  %v960_v9 = vmul.f32 0.03125, %v939_v7  ;;  %v1673_v7 = vld [vmem:[%s2750_s8 + $0x8] sm:$0xff] }
 0x1c4   : > { %v971_v12 = vsub.f32 %v2138_v0, %v955_v8 }
 0x1c5   : > { %v970_v10 = vsub.f32 %v2136_v63, %v954_v6  ;;  %v976_v38 = vsub.f32 %v2142_v3, %v960_v9 }
 0x1c6   : > { %v2242_v24 = vsel %vm917_vm0, %v971_v12, 0.0 }
 0x1c7   : > { %v2228_v13 = vsel %vm917_vm0, %v970_v10, 0.0  ;;  %v2236_v63 = vsel %vm917_vm0, %v976_v38, 0.0  ;;  %v1003_v30 = vmul.f32 %v2242_v24, %v2242_v24  ;;  %v1672_v10 = vld [vmem:[%s2750_s8] sm:$0xff] }
 0x1c8   : > { %v1002_v16 = vmul.f32 %v2228_v13, %v2228_v13  ;;  %v1008_v20 = vmul.f32 %v2236_v63, %v2236_v63 }
 0x1c9   : > { %v947_v0 = vpop.xlane.xlu1 %946 }
 0x1ca   : > { %v941_v3 = vpop.xlane.xlu0 %940  ;;  %1022 = vadd.xlane.f32.xlu1 %v1002_v16  ;;  %1014 = vadd.xlane.f32.xlu2 %v998_v17  ;;  %v949_v22 = vpop.xlane.xlu2 %948  ;;  %v964_v23 = vmul.f32 0.03125, %v947_v0 }
 0x1cb   : > { %v961_v21 = vmul.f32 0.03125, %v941_v3  ;;  %1034 = vadd.xlane.f32.xlu0 %v1008_v20  ;;  %v965_v25 = vmul.f32 0.03125, %v949_v22 }
 0x1cc   : > { %v980_v32 = vsub.f32 %v2153_v15, %v964_v23 }
 0x1cd   : > { %v977_v26 = vsub.f32 %v2151_v14, %v961_v21  ;;  %v981_v27 = vsub.f32 %v2157_v19, %v965_v25 }
 0x1ce   : > { %v2263_v43 = vsel %vm917_vm0, %v980_v32, 0.0 }
 0x1cf   : > { %v2251_v33 = vsel %vm917_vm0, %v977_v26, 0.0  ;;  %v2257_v40 = vsel %vm917_vm0, %v981_v27, 0.0  ;;  %v1012_v51 = vmul.f32 %v2263_v43, %v2263_v43 }
 0x1d0   : > { %v1009_v35 = vmul.f32 %v2251_v33, %v2251_v33  ;;  %v1013_v14 = vmul.f32 %v2257_v40, %v2257_v40 }
 0x1d1   : > { %v925_v41 = vpop.xlane.xlu1 %924 }
 0x1d2   : > { %1036 = vadd.xlane.f32.xlu1 %v1009_v35  ;;  %v923_v19 = vpop.xlane.xlu0 %922  ;;  %1024 = vadd.xlane.f32.xlu2 %v1003_v30  ;;  %v931_v15 = vpop.xlane.xlu2 %930  ;;  %v953_v42 = vmul.f32 0.03125, %v925_v41 }
 0x1d3   : > { %v952_v18 = vmul.f32 0.03125, %v923_v19  ;;  %1044 = vadd.xlane.f32.xlu0 %v1013_v14  ;;  %v956_v44 = vmul.f32 0.03125, %v931_v15 }
 0x1d4   : > { %v969_v53 = vsub.f32 %v2168_v29, %v953_v42 }
 0x1d5   : > { %v968_v45 = vsub.f32 %v2166_v28, %v952_v18  ;;  %v972_v50 = vsub.f32 %v2171_v31, %v956_v44 }
 0x1d6   : > { %v2284_v29 = vsel %vm917_vm0, %v969_v53, 0.0 }
 0x1d7   : > { %v2272_v54 = vsel %vm917_vm0, %v968_v45, 0.0  ;;  %v2278_v37 = vsel %vm917_vm0, %v972_v50, 0.0  ;;  %v1001_v57 = vmul.f32 %v2284_v29, %v2284_v29 }
 0x1d8   : > { %v1000_v36 = vmul.f32 %v2272_v54, %v2272_v54  ;;  %v1004_v28 = vmul.f32 %v2278_v37, %v2278_v37 }
 0x1da   : > { %1018 = vadd.xlane.f32.xlu1 %v1000_v36  ;;  %v933_v31 = vpop.xlane.xlu0 %932  ;;  %1042 = vadd.xlane.f32.xlu2 %v1012_v51 }
 0x1db   : > { %v957_v55 = vmul.f32 0.03125, %v933_v31  ;;  %1026 = vadd.xlane.f32.xlu0 %v1004_v28 }
 0x1dd   : > { %v973_v56 = vsub.f32 %v2177_v34, %v957_v55  ;;  %v1678_v34 = vld [vmem:[%s2750_s8 + $0x30] sm:$0xff] }
 0x1de   : > { %1708 = vmatpush.bf16.msra.mxu2 %v1678_v34  ;;  %1709 = vmatpush.bf16.msra.mxu3 %v1678_v34 }
 0x1df   : > { %v2291_v58 = vsel %vm917_vm0, %v973_v56, 0.0  ;;  %1369 = vmatpush.bf16.msra.mxu0 %v1678_v34  ;;  %1707 = vmatpush.bf16.msra.mxu1 %v1678_v34 }
 0x1e0   : > { %v1005_v59 = vmul.f32 %v2291_v58, %v2291_v58 }
 0x1e2   : > { %1028 = vadd.xlane.f32.xlu1 %v1005_v59  ;;  %1020 = vadd.xlane.f32.xlu2 %v1001_v57 }
 0x1e3   : > { %1711 = vmatpush.bf16.msra.mxu2 %v1677_v39  ;;  %1712 = vmatpush.bf16.msra.mxu3 %v1677_v39 }
 0x1e4   : > { %1370 = vmatpush.bf16.msra.mxu0 %v1677_v39  ;;  %1710 = vmatpush.bf16.msra.mxu1 %v1677_v39 }
 0x1e7   : > { %1714 = vmatpush.bf16.msra.mxu2 %v1676_v1  ;;  %1715 = vmatpush.bf16.msra.mxu3 %v1676_v1 }
 0x1e8   : > { %1371 = vmatpush.bf16.msra.mxu0 %v1676_v1  ;;  %1713 = vmatpush.bf16.msra.mxu1 %v1676_v1 }
 0x1eb   : > { %1717 = vmatpush.bf16.msra.mxu2 %v1675_v2  ;;  %1718 = vmatpush.bf16.msra.mxu3 %v1675_v2 }
 0x1ec   : > { %1372 = vmatpush.bf16.msra.mxu0 %v1675_v2  ;;  %1716 = vmatpush.bf16.msra.mxu1 %v1675_v2 }
 0x1ef   : > { %1720 = vmatpush.bf16.msra.mxu2 %v1674_v49  ;;  %1721 = vmatpush.bf16.msra.mxu3 %v1674_v49 }
 0x1f0   : > { %1373 = vmatpush.bf16.msra.mxu0 %v1674_v49  ;;  %1719 = vmatpush.bf16.msra.mxu1 %v1674_v49 }
 0x1f3   : > { %1723 = vmatpush.bf16.msra.mxu2 %v1673_v7  ;;  %1724 = vmatpush.bf16.msra.mxu3 %v1673_v7 }
 0x1f4   : > { %1374 = vmatpush.bf16.msra.mxu0 %v1673_v7  ;;  %1722 = vmatpush.bf16.msra.mxu1 %v1673_v7 }
 0x1f7   : > { %1726 = vmatpush.bf16.msra.mxu2 %v1672_v10  ;;  %1727 = vmatpush.bf16.msra.mxu3 %v1672_v10 }
 0x1f8   : > { %1375 = vmatpush.bf16.msra.mxu0 %v1672_v10  ;;  %1725 = vmatpush.bf16.msra.mxu1 %v1672_v10 }
 0x22c   : > { %v1039_v4 = vpop.xlane.xlu0 %1038 }
 0x22d   : > { %v1031_v52 = vpop.xlane.xlu1 %1030  ;;  %v1058_v6 = vmul.f32 0.03125, %v1039_v4 }
 0x22e   : > { %v1054_v5 = vmul.f32 0.03125, %v1031_v52 }
 0x22f   : > { %v2318_v9 = vadd.f32 1e-05, %v1058_v6 }
 0x230   : > { %v2316_v8 = vadd.f32 1e-05, %v1054_v5 }
 0x231   : > { %vm1204_vm3 = vweird.f32 %v2318_v9 }
 0x232   : > { %1792 = vrsqrt.f32 %v2316_v8  ;;  %vm1164_vm2 = vweird.f32 %v2316_v8 }
 0x233   : > { %1794 = vrsqrt.f32 %v2318_v9 }
 0x235   : > { %v1041_v38 = vpop.xlane.xlu1 %1040  ;;  %v1033_v12 = vpop.xlane.xlu2 %1032 }
 0x236   : > { %v1059_v16 = vmul.f32 0.03125, %v1041_v38  ;;  %v1017_v17 = vpop.xlane.xlu0 %1016  ;;  %v1055_v20 = vmul.f32 0.03125, %v1033_v12 }
 0x237   : > { %v1047_v3 = vmul.f32 0.03125, %v1017_v17 }
 0x238   : > { %v2325_v0 = vpop.eup %1792  ;;  %v2327_v21 = vadd.f32 1e-05, %v1059_v16  ;;  %v2329_v22 = vadd.f32 1e-05, %v1055_v20 }
 0x239   : > { %v2331_v23 = vpop.eup %1794  ;;  %v1159_v25 = vmul.f32 %v2325_v0, %v2316_v8  ;;  %v2335_v26 = vadd.f32 1e-05, %v1047_v3  ;;  %vm1165_vm1 = vweird.f32 %v2325_v0 }
 0x23a   : > { %1796 = vrsqrt.f32 %v2327_v21  ;;  %v1199_v30 = vmul.f32 %v2331_v23, %v2318_v9  ;;  %vm2378_vm4 = vmor %vm1164_vm2, %vm1165_vm1  ;;  %vm1205_vm5 = vweird.f32 %v2331_v23  ;;  %vm1214_vm7 = vweird.f32 %v2327_v21 }
 0x23b   : > { %v1160_v27 = vmul.f32 %v2325_v0, %v1159_v25  ;;  %1798 = vrsqrt.f32 %v2335_v26  ;;  %vm1174_vm8 = vweird.f32 %v2329_v22  ;;  %vm2429_vm10 = vmor %vm1204_vm3, %vm1205_vm5  ;;  %vm1094_vm12 = vweird.f32 %v2335_v26 }
 0x23c   : > { %1800 = vrsqrt.f32 %v2329_v22  ;;  %v1200_v44 = vmul.f32 %v2331_v23, %v1199_v30 }
 0x23d   : > { %v1023_v32 = vpop.xlane.xlu1 %1022  ;;  %v1015_v35 = vpop.xlane.xlu2 %1014  ;;  %v1161_v14 = vmul.f32 0.5, %v1160_v27 }
 0x23e   : > { %v1050_v19 = vmul.f32 0.03125, %v1023_v32  ;;  %v1035_v41 = vpop.xlane.xlu0 %1034  ;;  %v1046_v18 = vmul.f32 0.03125, %v1015_v35  ;;  %v1201_v56 = vmul.f32 0.5, %v1200_v44 }
 0x23f   : > { %v1056_v15 = vmul.f32 0.03125, %v1035_v41  ;;  %v1162_v28 = vsub.f32 1.5, %v1161_v14 }
 0x240   : > { %v2343_v42 = vpop.eup %1796  ;;  %v2346_v45 = vadd.f32 1e-05, %v1050_v19  ;;  %v2352_v53 = vadd.f32 1e-05, %v1046_v18  ;;  %v1202_v7 = vsub.f32 1.5, %v1201_v56 }
 0x241   : > { %v2348_v50 = vpop.eup %1798  ;;  %v2350_v51 = vadd.f32 1e-05, %v1056_v15  ;;  %v1209_v31 = vmul.f32 %v2343_v42, %v2327_v21  ;;  %v1163_v39 = vmul.f32 %v2325_v0, %v1162_v28  ;;  %vm1215_vm11 = vweird.f32 %v2343_v42 }
 0x242   : > { %v2354_v36 = vpop.eup %1800  ;;  %1802 = vrsqrt.f32 %v2346_v45  ;;  %v1089_v57 = vmul.f32 %v2348_v50, %v2335_v26  ;;  %v2403_v19 = vmul.f32 %v2331_v23, %v1202_v7  ;;  %vm1095_vm13 = vweird.f32 %v2348_v50  ;;  %vm2482_vm1 = vmor %vm1214_vm7, %vm1215_vm11 }
 0x243   : > { %v1169_v55 = vmul.f32 %v2354_v36, %v2329_v22  ;;  %1804 = vrsqrt.f32 %v2350_v51  ;;  %v1210_v1 = vmul.f32 %v2343_v42, %v1209_v31  ;;  %v1167_v27 = vsel %vm2378_vm4, %v2325_v0, %v1163_v39  ;;  %v2416_v31 = vld [vmem:[%s2748_s6] ss:$0 sm:$0xff]  ;;  %vm2530_vm11 = vmor %vm1094_vm12, %vm1095_vm13 }
 0x244   : > { %1806 = vrsqrt.f32 %v2352_v53  ;;  %v1090_v10 = vmul.f32 %v2348_v50, %v1089_v57  ;;  %vm1175_vm6 = vweird.f32 %v2354_v36  ;;  %v1246_v28 = vmul.f32 %v1167_v27, %v2187_v46 }
 0x245   : > { %v1170_v59 = vmul.f32 %v2354_v36, %v1169_v55  ;;  %v1037_v60 = vpop.xlane.xlu1 %1036  ;;  %v1025_v34 = vpop.xlane.xlu2 %1024  ;;  %v1211_v3 = vmul.f32 0.5, %v1210_v1  ;;  %vm2420_vm9 = vmor %vm1174_vm8, %vm1175_vm6  ;;  %v1207_v9 = vsel %vm2429_vm10, %v2331_v23, %v2403_v19  ;;  %vm1084_vm15 = vweird.f32 %v2352_v53 }
 0x246   : > { %v1057_v2 = vmul.f32 0.03125, %v1037_v60  ;;  %v1045_v49 = vpop.xlane.xlu0 %1044  ;;  %v1051_v52 = vmul.f32 0.03125, %v1025_v34  ;;  %v1091_v41 = vmul.f32 0.5, %v1090_v10  ;;  %v1265_v10 = vmul.f32 %v2416_v31, %v1246_v28 }
 0x247   : > { %v1171_v4 = vmul.f32 0.5, %v1170_v59  ;;  %v1061_v5 = vmul.f32 0.03125, %v1045_v49  ;;  %v1212_v55 = vsub.f32 1.5, %v1211_v3  ;;  %v2462_v3 = vld [vmem:[%s2749_s7] ss:$0 sm:$0xff]  ;;  %vm1184_vm2 = vweird.f32 %v2350_v51 }
 0x248   : > { %v2370_v6 = vpop.eup %1802  ;;  %v2374_v38 = vadd.f32 1e-05, %v1057_v2  ;;  %v2385_v17 = vadd.f32 1e-05, %v1051_v52  ;;  %v1092_v52 = vsub.f32 1.5, %v1091_v41  ;;  %vm1124_vm4 = vweird.f32 %v2346_v45 }
 0x249   : > { %v1172_v8 = vsub.f32 1.5, %v1171_v4  ;;  %v1119_v16 = vmul.f32 %v2370_v6, %v2346_v45  ;;  %v2387_v20 = vpop.eup %1804  ;;  %v2390_v25 = vadd.f32 1e-05, %v1061_v5  ;;  %vm1125_vm14 = vweird.f32 %v2370_v6 }
 0x24a   : > { %1808 = vrsqrt.f32 %v2374_v38  ;;  %v2395_v30 = vpop.eup %1806  ;;  %v1179_v14 = vmul.f32 %v2387_v20, %v2350_v51  ;;  %v2470_v41 = vmul.f32 %v2348_v50, %v1092_v52  ;;  %vm1185_vm3 = vweird.f32 %v2387_v20  ;;  %vm2566_vm12 = vmor %vm1124_vm4, %vm1125_vm14 }
 0x24b   : > { %v1173_v32 = vmul.f32 %v2354_v36, %v1172_v8  ;;  %v1120_v35 = vmul.f32 %v2370_v6, %v1119_v16  ;;  %v1079_v0 = vmul.f32 %v2395_v30, %v2352_v53  ;;  %1810 = vrsqrt.f32 %v2390_v25 }
 0x24c   : > { %v1180_v18 = vmul.f32 %v2387_v20, %v1179_v14  ;;  %1812 = vrsqrt.f32 %v2385_v17  ;;  %v1213_v8 = vmul.f32 %v2343_v42, %v1212_v55  ;;  %vm1085_vm0 = vweird.f32 %v2395_v30 }
 0x24d   : > { %v1019_v15 = vpop.xlane.xlu1 %1018  ;;  %v1043_v44 = vpop.xlane.xlu2 %1042  ;;  %v1080_v22 = vmul.f32 %v2395_v30, %v1079_v0  ;;  %v1121_v34 = vmul.f32 0.5, %v1120_v35  ;;  %v1177_v2 = vsel %vm2420_vm9, %v2354_v36, %v1173_v32  ;;  %v1284_v55 = vadd.f32 %v2462_v3, %v1265_v10  ;;  %vm2543_vm8 = vmor %vm1084_vm15, %vm1085_vm0 }
 0x24e   : > { %v1048_v57 = vmul.f32 0.03125, %v1019_v15  ;;  %v1027_v59 = vpop.xlane.xlu0 %1026  ;;  %v1060_v60 = vmul.f32 0.03125, %v1043_v44  ;;  %v1181_v39 = vmul.f32 0.5, %v1180_v18  ;;  %v1247_v23 = vmul.f32 %v1177_v2, %v2206_v62  ;;  %vm2576_vm15 = vmor %vm1184_vm2, %vm1185_vm3 }
 0x24f   : > { %v1052_v1 = vmul.f32 0.03125, %v1027_v59  ;;  %v1081_v5 = vmul.f32 0.5, %v1080_v22  ;;  %v1122_v32 = vsub.f32 1.5, %v1121_v34  ;;  %v1217_v56 = vsel %vm2482_vm1, %v2343_v42, %v1213_v8 }
 0x250   : > { %v2436_v49 = vpop.eup %1808  ;;  %v2439_v4 = vadd.f32 1e-05, %v1048_v57  ;;  %v2449_v7 = vadd.f32 1e-05, %v1060_v60  ;;  %v1182_v35 = vsub.f32 1.5, %v1181_v39  ;;  %v1266_v21 = vmul.f32 %v2416_v31, %v1247_v23 }
 0x251   : > { %v1189_v36 = vmul.f32 %v2436_v49, %v2374_v38  ;;  %v2452_v12 = vpop.eup %1810  ;;  %v2456_v16 = vadd.f32 1e-05, %v1052_v1  ;;  %v1082_v18 = vsub.f32 1.5, %v1081_v5  ;;  %v2498_v59 = vmul.f32 %v2370_v6, %v1122_v32 }
 0x252   : > { %1814 = vrsqrt.f32 %v2439_v4  ;;  %v2464_v27 = vpop.eup %1812  ;;  %v1229_v19 = vmul.f32 %v2452_v12, %v2390_v25  ;;  %v2501_v60 = vmul.f32 %v2387_v20, %v1182_v35  ;;  %v1250_v46 = vmul.f32 %v1207_v9, %v2191_v47 }
 0x253   : > { %v1190_v14 = vmul.f32 %v2436_v49, %v1189_v36  ;;  %v1129_v62 = vmul.f32 %v2464_v27, %v2385_v17  ;;  %1816 = vrsqrt.f32 %v2456_v16  ;;  %v1251_v34 = vmul.f32 %v1217_v56, %v2202_v61 }
 0x254   : > { %v1230_v44 = vmul.f32 %v2452_v12, %v1229_v19  ;;  %1818 = vrsqrt.f32 %v2449_v7  ;;  %vm1195_vm5 = vweird.f32 %v2436_v49  ;;  %vm1134_vm6 = vweird.f32 %v2385_v17 }
 0x255   : > { %v1191_v15 = vmul.f32 0.5, %v1190_v14  ;;  %v1130_v28 = vmul.f32 %v2464_v27, %v1129_v62  ;;  %v1029_v22 = vpop.xlane.xlu1 %1028  ;;  %v1021_v57 = vpop.xlane.xlu2 %1020  ;;  %v1285_v42 = vadd.f32 %v2462_v3, %v1266_v21  ;;  %v1083_v5 = vmul.f32 %v2395_v30, %v1082_v18 }
 0x256   : > { %v1231_v2 = vmul.f32 0.5, %v1230_v44  ;;  %v1053_v10 = vmul.f32 0.03125, %v1029_v22  ;;  %v1049_v47 = vmul.f32 0.03125, %v1021_v57  ;;  %vm1194_vm7 = vweird.f32 %v2374_v38 }
 0x257   : > { %v1192_v1 = vsub.f32 1.5, %v1191_v15  ;;  %v1131_v52 = vmul.f32 0.5, %v1130_v28  ;;  %v1296_v8 = vpack.c.bf16 %v1285_v42, %v1284_v55  ;;  %v1269_v23 = vmul.f32 %v2416_v31, %v1250_v46  ;;  %vm2610_vm4 = vmor %vm1194_vm7, %vm1195_vm5 }
 0x258   : > { %v2505_v39 = vpop.eup %1814  ;;  %v1270_v32 = vmul.f32 %v2416_v31, %v1251_v34  ;;  %vm1235_vm9 = vweird.f32 %v2452_v12  ;;  %vm1135_vm10 = vweird.f32 %v2464_v27  ;;  %v1232_v18 = vsub.f32 1.5, %v1231_v2 }
 0x259   : > { %v1099_v36 = vmul.f32 %v2505_v39, %v2439_v4  ;;  %v2513_v9 = vpop.eup %1816  ;;  %v1132_v61 = vsub.f32 1.5, %v1131_v52  ;;  %v1193_v0 = vmul.f32 %v2436_v49, %v1192_v1  ;;  %vm1144_vm1 = vweird.f32 %v2456_v16  ;;  %1396 = vmatmul.bf16.vlgmr.msra.gmra.mxu2 %v1296_v8  ;;  %vm2587_vm0 = vmor %vm1134_vm6, %vm1135_vm10 }
 0x25a   : > { %v2518_v35 = vpop.eup %1818  ;;  %v1139_v19 = vmul.f32 %v2513_v9, %v2456_v16  ;;  %v1288_v21 = vadd.f32 %v2462_v3, %v1269_v23  ;;  %v1289_v55 = vadd.f32 %v2462_v3, %v1270_v32  ;;  %v2550_v56 = vadd.f32 1e-05, %v1053_v10 }
 0x25b   : > { %v1100_v14 = vmul.f32 %v2505_v39, %v1099_v36  ;;  %v1133_v15 = vmul.f32 %v2464_v27, %v1132_v61  ;;  %v1219_v44 = vmul.f32 %v2518_v35, %v2449_v7  ;;  %v2553_v57 = vadd.f32 1e-05, %v1049_v47 }
 0x25c   : > { %v1140_v28 = vmul.f32 %v2513_v9, %v1139_v19  ;;  %v1087_v53 = vsel %vm2543_vm8, %v2395_v30, %v1083_v5  ;;  %v1097_v46 = vsel %vm2530_vm11, %v2348_v50, %v2470_v41  ;;  %vm1224_vm13 = vweird.f32 %v2449_v7 }
 0x25d   : > { %v1220_v22 = vmul.f32 %v2518_v35, %v1219_v44  ;;  %v1101_v1 = vmul.f32 0.5, %v1100_v14  ;;  %v1298_v52 = vpack.c.bf16 %v1289_v55, %v1288_v21  ;;  %1820 = vrsqrt.f32 %v2550_v56 }
 0x25e   : > { %v1141_v2 = vmul.f32 0.5, %v1140_v28  ;;  %v1233_v45 = vmul.f32 %v2452_v12, %v1232_v18  ;;  %vm1145_vm14 = vweird.f32 %v2513_v9  ;;  %1822 = vrsqrt.f32 %v2553_v57 }
 0x25f   : > { %v1221_v30 = vmul.f32 0.5, %v1220_v22  ;;  %vm1104_vm2 = vweird.f32 %v2439_v4  ;;  %vm1225_vm3 = vweird.f32 %v2518_v35  ;;  %1406 = vmatmul.bf16.vlgmr.msra.gmra.mxu3 %v1298_v52  ;;  %v1238_v42 = vmul.f32 %v1087_v53, %v2222_v11  ;;  %vm2644_vm8 = vmor %vm1144_vm1, %vm1145_vm14 }
 0x260   : > { %v1142_v51 = vsub.f32 1.5, %v1141_v2  ;;  %v1239_v5 = vmul.f32 %v1097_v46, %v2214_v48  ;;  %v1127_v17 = vsel %vm2566_vm12, %v2370_v6, %v2498_v59  ;;  %v1137_v10 = vsel %vm2587_vm0, %v2464_v27, %v1133_v15 }
 0x261   : > { %v1222_v36 = vsub.f32 1.5, %v1221_v30  ;;  %v1187_v47 = vsel %vm2576_vm15, %v2387_v20, %v2501_v60  ;;  %v1102_v11 = vsub.f32 1.5, %v1101_v1  ;;  %v1257_v6 = vmul.f32 %v2416_v31, %v1238_v42 }
 0x262   : > { %v1258_v59 = vmul.f32 %v2416_v31, %v1239_v5  ;;  %v1242_v27 = vmul.f32 %v1127_v17, %v2228_v13  ;;  %v1143_v61 = vmul.f32 %v2513_v9, %v1142_v51  ;;  %v1243_v8 = vmul.f32 %v1137_v10, %v2242_v24 }
 0x263   : > { %v1197_v20 = vsel %vm2610_vm4, %v2436_v49, %v1193_v0  ;;  %v1248_v38 = vmul.f32 %v1187_v47, %v2236_v63  ;;  %v1821_v60 = vpop.eup %1820  ;;  %v1223_v23 = vmul.f32 %v2518_v35, %v1222_v36  ;;  %v1276_v32 = vadd.f32 %v2462_v3, %v1257_v6 }
 0x264   : > { %v1277_v14 = vadd.f32 %v2462_v3, %v1258_v59  ;;  %v1261_v19 = vmul.f32 %v2416_v31, %v1242_v27  ;;  %v1823_v13 = vpop.eup %1822  ;;  %vm2780_vm5 = vweird.f32 %v2390_v25  ;;  %vm1105_vm7 = vweird.f32 %v2505_v39 }
 0x265   : > { %vm2631_vm6 = vmor %vm2780_vm5, %vm1235_vm9  ;;  %v1149_v63 = vmul.f32 %v1821_v60, %v2550_v56  ;;  %v1262_v49 = vmul.f32 %v2416_v31, %v1243_v8  ;;  %v1249_v62 = vmul.f32 %v1197_v20, %v2251_v33  ;;  %v1103_v0 = vmul.f32 %v2505_v39, %v1102_v11  ;;  %v1791_v8 = vld [vmem:[%s2751_s9] ss:$0 sm:$0xff] }
 0x266   : > { %v1109_v18 = vmul.f32 %v1823_v13, %v2553_v57  ;;  %v1292_v15 = vpack.c.bf16 %v1277_v14, %v1276_v32  ;;  %v1280_v44 = vadd.f32 %v2462_v3, %v1261_v19  ;;  %vm2654_vm9 = vmor %vm1224_vm13, %vm1225_vm3  ;;  %v1267_v28 = vmul.f32 %v2416_v31, %v1248_v38 }
 0x267   : > { %v1150_v26 = vmul.f32 %v1821_v60, %v1149_v63  ;;  %v1281_v16 = vadd.f32 %v2462_v3, %v1262_v49  ;;  %v1268_v21 = vmul.f32 %v2416_v31, %v1249_v62  ;;  %v1147_v55 = vsel %vm2644_vm8, %v2513_v9, %v1143_v61  ;;  %vm2674_vm10 = vmor %vm1104_vm2, %vm1105_vm7 }
 0x268   : > { %v1110_v22 = vmul.f32 %v1823_v13, %v1109_v18  ;;  %1376 = vmatmul.bf16.vlgmr.msra.gmra.mxu0 %v1292_v15  ;;  %v1227_v7 = vsel %vm2654_vm9, %v2518_v35, %v1223_v23  ;;  %v1237_v53 = vsel %vm2631_vm6, %v2452_v12, %v1233_v45  ;;  %v1286_v1 = vadd.f32 %v2462_v3, %v1267_v28 }
 0x269   : > { %v1151_v34 = vmul.f32 0.5, %v1150_v26  ;;  %v1294_v9 = vpack.c.bf16 %v1281_v16, %v1280_v44  ;;  %v1287_v2 = vadd.f32 %v2462_v3, %v1268_v21  ;;  %v1252_v35 = vmul.f32 %v1227_v7, %v2263_v43 }
 0x26a   : > { %v1111_v52 = vmul.f32 0.5, %v1110_v22  ;;  %v1253_v50 = vmul.f32 %v1237_v53, %v2257_v40  ;;  %v1107_v12 = vsel %vm2674_vm10, %v2505_v39, %v1103_v0  ;;  %vm1155_vm11 = vweird.f32 %v1821_v60 }
 0x26b   : > { %v1152_v4 = vsub.f32 1.5, %v1151_v34  ;;  %1386 = vmatmul.bf16.vlgmr.msra.gmra.mxu1 %v1294_v9  ;;  %v1297_v45 = vpack.c.bf16 %v1287_v2, %v1286_v1  ;;  %vm1115_vm1 = vweird.f32 %v1823_v13  ;;  %v1271_v41 = vmul.f32 %v2416_v31, %v1252_v35 }
 0x26c   : > { %v1112_v30 = vsub.f32 1.5, %v1111_v52  ;;  %v1272_v51 = vmul.f32 %v2416_v31, %v1253_v50  ;;  %vm1154_vm12 = vweird.f32 %v2550_v56  ;;  %v1240_v40 = vmul.f32 %v1107_v12, %v2272_v54 }
 0x26d   : > { %v1153_v42 = vmul.f32 %v1821_v60, %v1152_v4  ;;  %1401 = vmatmul.bf16.gmra.mxu2 %v1297_v45  ;;  %v1244_v43 = vmul.f32 %v1147_v55, %v2278_v37  ;;  %vm1156_vm13 = vmor %vm1154_vm12, %vm1155_vm11  ;;  %vm1114_vm15 = vweird.f32 %v2553_v57  ;;  %v1290_v5 = vadd.f32 %v2462_v3, %v1271_v41 }
 0x26e   : > { %v1113_v39 = vmul.f32 %v1823_v13, %v1112_v30  ;;  %v1291_v36 = vadd.f32 %v2462_v3, %v1272_v51  ;;  %vm1116_vm14 = vmor %vm1114_vm15, %vm1115_vm1  ;;  %v1259_v54 = vmul.f32 %v2416_v31, %v1240_v40 }
 0x26f   : > { %v1157_v17 = vsel %vm1156_vm13, %v1821_v60, %v1153_v42  ;;  %v1263_v37 = vmul.f32 %v2416_v31, %v1244_v43 }
 0x270   : > { %v1117_v10 = vsel %vm1116_vm14, %v1823_v13, %v1113_v39  ;;  %v1299_v47 = vpack.c.bf16 %v1291_v36, %v1290_v5  ;;  %v1245_v48 = vmul.f32 %v1157_v17, %v2291_v58  ;;  %v1278_v59 = vadd.f32 %v2462_v3, %v1259_v54 }
 0x271   : > { %v1241_v56 = vmul.f32 %v1117_v10, %v2284_v29  ;;  %v1282_v58 = vadd.f32 %v2462_v3, %v1263_v37 }
 0x272   : > { %1411 = vmatmul.bf16.gmra.mxu3 %v1299_v47  ;;  %v1264_v57 = vmul.f32 %v2416_v31, %v1245_v48 }
 0x273   : > { %v1260_v11 = vmul.f32 %v2416_v31, %v1241_v56 }
 0x274   : > { %v1283_v6 = vadd.f32 %v2462_v3, %v1264_v57 }
 0x275   : > { %v1279_v27 = vadd.f32 %v2462_v3, %v1260_v11 }
 0x276   : > { %v1295_v61 = vpack.c.bf16 %v1283_v6, %v1282_v58 }
 0x277   : > { %v1293_v29 = vpack.c.bf16 %v1279_v27, %v1278_v59 }
 0x279   : > { %1381 = vmatmul.bf16.gmra.mxu0 %v1293_v29 }
 0x27b   : > { %1391 = vmatmul.bf16.gmra.mxu1 %v1295_v61 }
 0x2dc   : > { %v1397_v31 = vpop.f32.mrf.mxu2 }
 0x2dd   : > { %v1398_v20 = vadd.f32 %v1791_v8, %v1397_v31 }
 0x2df   : > { %1425 = vst [vmem:[%s2066_s21 + $0x40] sm:$0xff] %v1398_v20 }
 0x2e2   : > { %v1407_v38 = vpop.f32.mrf.mxu3 }
 0x2e3   : > { %v1408_v60 = vadd.f32 %v1791_v8, %v1407_v38 }
 0x2e4   : > { %v1399_v32 = vpop.f32.mrf.mxu2 }
 0x2e5   : > { %v1377_v23 = vpop.f32.mrf.mxu0  ;;  %1429 = vst [vmem:[%s2066_s21 + $0x60] sm:$0xff] %v1408_v60  ;;  %v1400_v14 = vadd.f32 %v1791_v8, %v1399_v32 }
 0x2e6   : > { %v1378_v3 = vadd.f32 %v1791_v8, %v1377_v23 }
 0x2e7   : > { %1426 = vst [vmem:[%s2066_s21 + $0x48] sm:$0xff] %v1400_v14 }
 0x2e8   : > { %1417 = vst [vmem:[%s2066_s21] sm:$0xff] %v1378_v3  ;;  %v1387_v19 = vpop.f32.mrf.mxu1 }
 0x2e9   : > { %v1388_v13 = vadd.f32 %v1791_v8, %v1387_v19 }
 0x2ea   : > { %v1409_v24 = vpop.f32.mrf.mxu3 }
 0x2eb   : > { %1421 = vst [vmem:[%s2066_s21 + $0x20] sm:$0xff] %v1388_v13  ;;  %v1410_v63 = vadd.f32 %v1791_v8, %v1409_v24 }
 0x2ed   : > { %v1379_v49 = vpop.f32.mrf.mxu0  ;;  %1430 = vst [vmem:[%s2066_s21 + $0x68] sm:$0xff] %v1410_v63 }
 0x2ee   : > { %v1380_v62 = vadd.f32 %v1791_v8, %v1379_v49 }
 0x2f0   : > { %1418 = vst [vmem:[%s2066_s21 + $0x8] sm:$0xff] %v1380_v62  ;;  %v1402_v0 = vpop.f32.mrf.mxu2  ;;  %v1389_v25 = vpop.f32.mrf.mxu1 }
 0x2f1   : > { %v1403_v18 = vadd.f32 %v1791_v8, %v1402_v0  ;;  %v1390_v15 = vadd.f32 %v1791_v8, %v1389_v25 }
 0x2f3   : > { %1427 = vst [vmem:[%s2066_s21 + $0x50] sm:$0xff] %v1403_v18 }
 0x2f4   : > { %1422 = vst [vmem:[%s2066_s21 + $0x28] sm:$0xff] %v1390_v15 }
 0x2f5   : > { %v1412_v44 = vpop.f32.mrf.mxu3 }
 0x2f6   : > { %v1413_v33 = vadd.f32 %v1791_v8, %v1412_v44  ;;  %v1382_v26 = vpop.f32.mrf.mxu0 }
 0x2f7   : > { %v1383_v16 = vadd.f32 %v1791_v8, %v1382_v26 }
 0x2f8   : > { %v1404_v28 = vpop.f32.mrf.mxu2  ;;  %1431 = vst [vmem:[%s2066_s21 + $0x70] sm:$0xff] %v1413_v33  ;;  %v1392_v21 = vpop.f32.mrf.mxu1 }
 0x2f9   : > { %v1405_v55 = vadd.f32 %v1791_v8, %v1404_v28  ;;  %1419 = vst [vmem:[%s2066_s21 + $0x10] sm:$0xff] %v1383_v16  ;;  %v1393_v22 = vadd.f32 %v1791_v8, %v1392_v21 }
 0x2fb   : > { %1428 = vst [vmem:[%s2066_s21 + $0x58] sm:$0xff] %v1405_v55 }
 0x2fc   : > { %1423 = vst [vmem:[%s2066_s21 + $0x30] sm:$0xff] %v1393_v22 }
 0x2fd   : > { %v1414_v7 = vpop.f32.mrf.mxu3 }
 0x2fe   : > { %v1415_v53 = vadd.f32 %v1791_v8, %v1414_v7  ;;  %v1384_v46 = vpop.f32.mrf.mxu0 }
 0x2ff   : > { %v1385_v34 = vadd.f32 %v1791_v8, %v1384_v46 }
 0x300   : > { %1432 = vst [vmem:[%s2066_s21 + $0x78] sm:$0xff] %v1415_v53  ;;  %v1394_v9 = vpop.f32.mrf.mxu1 }
 0x301   : > { %1420 = vst [vmem:[%s2066_s21 + $0x18] sm:$0xff] %v1385_v34  ;;  %v1395_v1 = vadd.f32 %v1791_v8, %v1394_v9 }
 0x303   : > { %1424 = vst [vmem:[%s2066_s21 + $0x38] sm:$0xff] %v1395_v1 }
 0x304 PF: > { %s33_s25 = sadd.s32 1, %s1904_s25   ;;  %s2789_s23 = sld [smem:[#allocation8_spill]] }
 0x305   : > { %p30_p1 = scmp.ge.s32.totalorder %s33_s25, 11   ;;  %s2790_s24 = sld [smem:[#allocation9_spill]] }
 0x306   : > { %s2791_s18 = sld [smem:[#allocation10_spill]]  ;;  %s2792_s21 = smov %s1884_s22 }
 0x307   : > { %s2793_s22 = smov %s2025_s30  ;;  %s2794_s0 = smov %s1900_s1 }
 0x308   :  { %32 = sbr.rel (!%p30_p1) target bundleno = 11 (0xb), region = 146 }
 0x30c   : > { %s2795_s1 = smov %s2791_s18 }

// kernel: forward.5
= control target key start
LH: loop header
LB: loop body
LE: loop exit
PB: predicated region body
PF: predicated region fallthrough
CT: control target
= control target key end

     0   :  { %s2030_s19 = smov [#allocation4]   ;;  %s2031_s20 = smov [#allocation5]   ;;  %s2881_s0 = inlined_call_operand.vmem [shape: s32[3,3], index: 0, kind: input, shape index: {}]   ;;  %s2882_s2 = inlined_call_operand.vmem [shape: bf16[384,384], index: 2, kind: input, shape index: {}]   ;;  %s2883_s3 = inlined_call_operand.vmem [shape: bf16[384,128], index: 3, kind: input, shape index: {}]   ;;  %s2884_s4 = inlined_call_operand.vmem [shape: f32[384,128], index: 4, kind: input, shape index: {}]   ;;  %s2885_s5 = inlined_call_operand.vmem [shape: f32[1,128], index: 5, kind: input, shape index: {}]   ;;  %s2886_s6 = inlined_call_operand.vmem [shape: f32[1,128], index: 6, kind: input, shape index: {}]   ;;  %s2887_s7 = inlined_call_operand.vmem [shape: f32[1,128], index: 7, kind: input, shape index: {}]   ;;  %s2888_s8 = inlined_call_operand.vmem [shape: bf16[128,128], index: 8, kind: input, shape index: {}]   ;;  %s2889_s9 = inlined_call_operand.vmem [shape: f32[384,128], index: 9, kind: output, shape index: {0}]   ;;  %s2890_s10 = inlined_call_operand.vmem [shape: bf16[384,128], index: 10, kind: output, shape index: {1}]   ;;  %s2891_s1 = inlined_call_operand.vmem [shape: s32[3], index: 1, kind: input, shape index: {}]  }
   0x1   :  { %2895 = sst [smem:[#allocation11_spill]] %s2882_s2  ;;  %s17_s15 = sshll.u32 %s2881_s0, 4  ;;  %s18_s15 = int_to_ptr.vmem [resolvable:$true] %s17_s15 }
   0x2   :  { %s22_s18 = sshll.u32 %s2891_s1, 4  ;;  %s23_s18 = int_to_ptr.vmem [resolvable:$true] %s22_s18 }
   0x3   :  { %20 = dma.vmem_to_smem %s18_s15, 64, %s2030_s19, [#allocation3] }
   0x4   :  { %25 = dma.vmem_to_smem %s23_s18, 16, %s2031_s20, [#allocation3] }
   0x5   :  { %2000 = dma.done.wait [#allocation3], 80 }
   0x6   :  { %2001 = vsyncadd [#allocation3], 4294967216 }
   0x7   :  { %28 = sfence }
   0x8   :  { %s2094_s21 = smov 0   ;;  %s2096_s22 = smov 0  }
   0x9   :  { %s2098_s23 = smov 0   ;;  %s2100_s0 = smov 0  }
   0xa   :  { %s2102_s24 = smov 0   ;;  %s2104_s1 = smov 0  }
   0xb   :  { %s2106_s25 = smov 0  }
   0xc LB: > { %2896 = sst [smem:[#allocation8_spill]] %s2020_s24  ;;  %s43_s26 = sadd.s32 1, %s2020_s24  ;;  %s2028_s25 = sphi %s2106_s25, %s34_s25   ;;  %s2024_s1 = sphi %s2104_s1, %s2932_s1   ;;  %s2020_s24 = sphi %s2102_s24, %s2927_s24   ;;  %s2016_s0 = sphi %s2100_s0, %s2931_s0   ;;  %s2012_s23 = sphi %s2098_s23, %s2926_s23   ;;  %s2008_s22 = sphi %s2096_s22, %s2930_s22   ;;  %s2004_s21 = sphi %s2094_s21, %s2929_s21  }
   0xd   : > { %s46_s27 = sadd.s32 1, %s2024_s1  ;;  %p44_p0 = scmp.ge.s32.totalorder %s43_s26, 3 }
   0xe   : > { %s50_s28 = sshra.s32 %s2020_s24, 7  ;;  %s55_s30 = sand.u32 127, %s2020_s24 }
   0xf   : > { %s52_s29 = sadd.s32 %s2024_s1, %s50_s28  ;;  %s2934_s26 = smov (%p44_p0, %s43_s26), 0 }
  0x10   : > { %2897 = sst [smem:[#allocation9_spill]] %s2934_s26  ;;  %s2936_s27 = smov (!%p44_p0, %s46_s27), %s2024_s1 }
  0x11   : > { %s1611_s11 = sshll.u32 %s52_s29, 7  ;;  %p48_p1 = scmp.ge.s32.totalorder %s2936_s27, 3 }
  0x12   : > { %s56_s12 = sadd.s32 %s1611_s11, %s55_s30  ;;  %s58_s13 = sshra.s32 %s2934_s26, 7 }
  0x13   : > { %s2938_s27 = smov (%p48_p1, %s2936_s27), 0  ;;  %s63_s14 = sand.u32 127, %s2934_s26 }
  0x14   : > { %2898 = sst [smem:[#allocation10_spill]] %s2938_s27  ;;  %p78_p2 = scmp.ne.s32.totalorder %s2008_s22, %s2004_s21 }
  0x15   : > { %s57_s15 = sld [smem:[#allocation4 + %s56_s12]]  ;;  %s60_s16 = sadd.s32 %s58_s13, %s2938_s27 }
  0x16   : > { %s1612_s17 = sshll.u32 %s60_s16, 7  ;;  %p79_p3 = scmp.eq.s32.totalorder %s2028_s25, 0 }
  0x17   : > { %s64_s18 = sadd.s32 %s1612_s17, %s63_s14  ;;  %s66_s20 = ssub.s32 %s2024_s1, %s2938_s27 }
  0x18   : > { %s65_s19 = sld [smem:[#allocation4 + %s64_s18]]  ;;  %p80_p4 = por %p79_p3, %p78_p2 }
  0x19   : > { %s71_s24 = sadd.s32 1, %s2008_s22  ;;  %p1616_p6 = scmp.ge.s32.totalorder %s2028_s25, 9 }
  0x1e   : > { %s67_s28 = ssub.s32 %s57_s15, %s65_s19  ;;  %320 = sbr.rel (%p1616_p6) target bundleno = 61 (0x3d), region = 32 }
  0x1f   : > { %s68_s29 = sor.u32 %s67_s28, %s66_s20 }
  0x20   : > { %p69_p5 = scmp.eq.s32.totalorder %s68_s29, 0 }
  0x22   : > { %s2149_s30 = scalar_select %p69_p5, %s2008_s22, %s71_s24  }
  0x23   : > { %323 = sbr.rel (!%p80_p4) target bundleno = 61 (0x3d), region = 36  ;;  %s335_s11 = sld [smem:[#allocation4 + %s56_s12]] (%p80_p4) }
  0x24   : > { %s325_s13 = sand.u32 (%p80_p4), 1, %s2008_s22   ;;  %s1853_s16 = smul.u32 (%p80_p4), 48, %s2024_s1 }
  0x25   : > { %s1617_s26 = sshll.u32 (%p80_p4), %s325_s13, 6  ;;  %s2899_s2 = sld [smem:[#allocation11_spill]] (%p80_p4) }
  0x26   : > { %s327_s24 = scalar_lea.vmem (%p80_p4), [#allocation6], %s1617_s26 }
  0x29   : > { %s338_s14 = sadd.s32 %s1853_s16, %s335_s11 }
  0x2a   : > { %s1621_s17 = sshll.u32 %s338_s14, 2 }
  0x2b   : > { %s2157_s15 = scalar_lea.vmem %s2899_s2, %s1621_s17 }
  0x2c   : > { %v357_v0 = vld [vmem:[%s2157_s15] sm:$0xf]  ;;  %v359_v1 = vld [vmem:[%s2157_s15 + $0xc] sm:$0xf]  ;;  %v361_v2 = vld [vmem:[%s2157_s15 + $0x18] sm:$0xf] }
  0x2d   : > { %358 = vst [vmem:[%s327_s24] sm:$0xf] %v357_v0  ;;  %v363_v3 = vld [vmem:[%s2157_s15 + $0x24] sm:$0xf]  ;;  %v365_v4 = vld [vmem:[%s2157_s15 + $0x30] sm:$0xf] }
  0x2e   : > { %360 = vst [vmem:[%s327_s24 + $0x4] sm:$0xf] %v359_v1  ;;  %v367_v5 = vld [vmem:[%s2157_s15 + $0x3c] sm:$0xf]  ;;  %v369_v6 = vld [vmem:[%s2157_s15 + $0x48] sm:$0xf] }
  0x2f   : > { %362 = vst [vmem:[%s327_s24 + $0x8] sm:$0xf] %v361_v2  ;;  %v371_v7 = vld [vmem:[%s2157_s15 + $0x54] sm:$0xf]  ;;  %v373_v8 = vld [vmem:[%s2157_s15 + $0x60] sm:$0xf] }
  0x30   : > { %364 = vst [vmem:[%s327_s24 + $0xc] sm:$0xf] %v363_v3  ;;  %v375_v9 = vld [vmem:[%s2157_s15 + $0x6c] sm:$0xf]  ;;  %v377_v10 = vld [vmem:[%s2157_s15 + $0x78] sm:$0xf] }
  0x31   : > { %366 = vst [vmem:[%s327_s24 + $0x10] sm:$0xf] %v365_v4  ;;  %v379_v11 = vld [vmem:[%s2157_s15 + $0x84] sm:$0xf]  ;;  %v381_v12 = vld [vmem:[%s2157_s15 + $0x90] sm:$0xf] }
  0x32   : > { %368 = vst [vmem:[%s327_s24 + $0x14] sm:$0xf] %v367_v5  ;;  %v383_v13 = vld [vmem:[%s2157_s15 + $0x9c] sm:$0xf]  ;;  %v385_v14 = vld [vmem:[%s2157_s15 + $0xa8] sm:$0xf] }
  0x33   : > { %370 = vst [vmem:[%s327_s24 + $0x18] sm:$0xf] %v369_v6  ;;  %v387_v15 = vld [vmem:[%s2157_s15 + $0xb4] sm:$0xf] }
  0x34   : > { %372 = vst [vmem:[%s327_s24 + $0x1c] sm:$0xf] %v371_v7 }
  0x35   : > { %374 = vst [vmem:[%s327_s24 + $0x20] sm:$0xf] %v373_v8 }
  0x36   : > { %376 = vst [vmem:[%s327_s24 + $0x24] sm:$0xf] %v375_v9 }
  0x37   : > { %378 = vst [vmem:[%s327_s24 + $0x28] sm:$0xf] %v377_v10 }
  0x38   : > { %380 = vst [vmem:[%s327_s24 + $0x2c] sm:$0xf] %v379_v11 }
  0x39   : > { %382 = vst [vmem:[%s327_s24 + $0x30] sm:$0xf] %v381_v12 }
  0x3a   : > { %384 = vst [vmem:[%s327_s24 + $0x34] sm:$0xf] %v383_v13 }
  0x3b   : > { %386 = vst [vmem:[%s327_s24 + $0x38] sm:$0xf] %v385_v14 }
  0x3c   : > { %388 = vst [vmem:[%s327_s24 + $0x3c] sm:$0xf] %v387_v15 }
  0x3d PF: > { %p1622_p7 = scmp.ge.s32.totalorder %s2028_s25, 1  ;;  %p477_p8 = scmp.lt.s32.totalorder %s2028_s25, 10 }
  0x3f   : > { %p478_p9 = pnand %p1622_p7, %p477_p8 }
  0x40   : > { %s484_s26 = sand.u32 (!%p478_p9), 1, %s2004_s21   ;;  %s549_s27 = sshra.s32 (!%p478_p9), %s2012_s23, 7 }
  0x41   : > { %481 = sbr.rel (%p478_p9) target bundleno = 773 (0x305), region = 85  ;;  %s1623_s12 = sshll.u32 (!%p478_p9), %s484_s26, 6 }
  0x42   : > { %s551_s19 = sadd.s32 (!%p478_p9), %s2016_s0, %s549_s27  ;;  %s554_s28 = sand.u32 (!%p478_p9), 127, %s2012_s23 }
  0x43   : > { %s1624_s20 = sshll.u32 (!%p478_p9), %s551_s19, 7  ;;  %s1627_s29 = sshll.u32 (!%p478_p9), %s2016_s0, 4 }
  0x44   : > { %s555_s11 = sadd.s32 (!%p478_p9), %s1624_s20, %s554_s28  ;;  %p572_p10 = scmp.lt.s32.totalorder (!%p478_p9), %s1627_s29, 47 }
  0x45   : > { %s556_s13 = sld [smem:[#allocation4 + %s555_s11]] (!%p478_p9)  ;;  %s2202_s18 = scalar_lea.vmem (!%p478_p9), [#allocation6], %s1623_s12 }
  0x46   : > { %s2940_s29 = smov (!%p572_p10, %s1627_s29), 47  ;;  %p1633_p12 = scmp.ne.s32.totalorder %s2012_s23, 0 }
  0x47   : > { %s1628_s16 = sshll.u32 %s2940_s29, 3  ;;  %s1632_s14 = sshll.u32 %s2940_s29, 2 }
  0x48   : > { %s2185_s15 = scalar_lea.vmem %s2884_s4, %s1628_s16  ;;  %s2190_s21 = scalar_lea.vmem %s2889_s9, %s1628_s16 }
  0x49   : > { %s2195_s19 = scalar_lea.vmem %s2890_s10, %s1632_s14 }
  0x4b   : > { %s1625_s20 = sshll.u32 %s556_s13, 4 }
  0x4c   : > { %p558_p11 = scmp.lt.s32.totalorder %s1625_s20, 47  ;;  %592 = sbr.rel (%p1633_p12) target bundleno = 98 (0x62), region = 93 }
  0x4e   : > { %s2942_s20 = smov (!%p558_p11, %s1625_s20), 47 }
  0x4f   : > { %s1626_s28 = sshll.u32 %s2942_s20, 2 }
  0x50   : > { %s2200_s17 = scalar_lea.vmem %s2883_s3, %s1626_s28 }
  0x51   : > { %v2032_v16 = vmov 0.0  }
  0x52   : > { %593 = vst [vmem:[#allocation2 + $0x30] sm:$0xff] %v2032_v16 }
  0x53   : > { %594 = vst [vmem:[#allocation2] sm:$0xff] %v2032_v16 }
  0x54   : > { %595 = vst [vmem:[#allocation2 + $0x58] sm:$0xff] %v2032_v16 }
  0x55   : > { %596 = vst [vmem:[#allocation2 + $0x18] sm:$0xff] %v2032_v16 }
  0x56   : > { %597 = vst [vmem:[#allocation2 + $0x50] sm:$0xff] %v2032_v16 }
  0x57   : > { %598 = vst [vmem:[#allocation2 + $0x68] sm:$0xff] %v2032_v16 }
  0x58   : > { %599 = vst [vmem:[#allocation2 + $0x8] sm:$0xff] %v2032_v16 }
  0x59   : > { %600 = vst [vmem:[#allocation2 + $0x48] sm:$0xff] %v2032_v16 }
  0x5a   : > { %601 = vst [vmem:[#allocation2 + $0x40] sm:$0xff] %v2032_v16 }
  0x5b   : > { %602 = vst [vmem:[#allocation2 + $0x20] sm:$0xff] %v2032_v16 }
  0x5c   : > { %603 = vst [vmem:[#allocation2 + $0x10] sm:$0xff] %v2032_v16 }
  0x5d   : > { %604 = vst [vmem:[#allocation2 + $0x38] sm:$0xff] %v2032_v16 }
  0x5e   : > { %605 = vst [vmem:[#allocation2 + $0x60] sm:$0xff] %v2032_v16 }
  0x5f   : > { %606 = vst [vmem:[#allocation2 + $0x70] sm:$0xff] %v2032_v16 }
  0x60   : > { %607 = vst [vmem:[#allocation2 + $0x78] sm:$0xff] %v2032_v16 }
  0x61   : > { %608 = vst [vmem:[#allocation2 + $0x28] sm:$0xff] %v2032_v16 }
  0x62 PF: > { %s609_s2 = sld [smem:[#allocation5 + %s2016_s0]] }
  0x68   : > { %p1634_p13 = scmp.ge.s32.totalorder %s2012_s23, %s609_s2 }
  0x6a   : > { %613 = sbr.rel (%p1634_p13) target bundleno = 304 (0x130), region = 97 }
  0x6f   : > { %v1749_v17 = vld [vmem:[%s2200_s17 + $0x38] sm:$0xff]  ;;  %v1748_v18 = vld [vmem:[%s2200_s17 + $0x30] sm:$0xff]  ;;  %v1747_v19 = vld [vmem:[%s2200_s17 + $0x28] sm:$0xff] }
  0x70   : > { %758 = vmatpush.bf16.msra.mxu0 %v1749_v17  ;;  %1805 = vmatpush.bf16.msra.mxu1 %v1749_v17  ;;  %v1746_v20 = vld [vmem:[%s2200_s17 + $0x20] sm:$0xff]  ;;  %v1745_v21 = vld [vmem:[%s2200_s17 + $0x18] sm:$0xff]  ;;  %v1744_v22 = vld [vmem:[%s2200_s17 + $0x10] sm:$0xff] }
  0x71   : > { %1806 = vmatpush.bf16.msra.mxu2 %v1749_v17  ;;  %1807 = vmatpush.bf16.msra.mxu3 %v1749_v17  ;;  %v1743_v23 = vld [vmem:[%s2200_s17 + $0x8] sm:$0xff]  ;;  %v1742_v24 = vld [vmem:[%s2200_s17] sm:$0xff]  ;;  %v1736_v26 = vld [vmem:[%s2202_s18 + $0x10] sm:$0xff] }
  0x72   : > { %v1734_v25 = vld [vmem:[%s2202_s18] sm:$0xff]  ;;  %v1740_v28 = vld [vmem:[%s2202_s18 + $0x30] sm:$0xff]  ;;  %v1735_v29 = vld [vmem:[%s2202_s18 + $0x8] sm:$0xff] }
  0x73   : > { %v1738_v27 = vld [vmem:[%s2202_s18 + $0x20] sm:$0xff]  ;;  %v1737_v30 = vld [vmem:[%s2202_s18 + $0x18] sm:$0xff]  ;;  %v1739_v31 = vld [vmem:[%s2202_s18 + $0x28] sm:$0xff] }
  0x74   : > { %759 = vmatpush.bf16.msra.mxu0 %v1748_v18  ;;  %1808 = vmatpush.bf16.msra.mxu1 %v1748_v18  ;;  %v1741_v32 = vld [vmem:[%s2202_s18 + $0x38] sm:$0xff]  ;;  %v614_v33 = vld [vmem:[#allocation2 + $0x30] sm:$0xff]  ;;  %v622_v39 = vld [vmem:[#allocation2 + $0x40] sm:$0xff] }
  0x75   : > { %1809 = vmatpush.bf16.msra.mxu2 %v1748_v18  ;;  %1810 = vmatpush.bf16.msra.mxu3 %v1748_v18  ;;  %v618_v34 = vld [vmem:[#allocation2 + $0x50] sm:$0xff]  ;;  %v626_v40 = vld [vmem:[#allocation2 + $0x60] sm:$0xff]  ;;  %v619_v42 = vld [vmem:[#allocation2 + $0x68] sm:$0xff] }
  0x76   : > { %v615_v41 = vld [vmem:[#allocation2] sm:$0xff]  ;;  %v627_v52 = vld [vmem:[#allocation2 + $0x70] sm:$0xff]  ;;  %v616_v53 = vld [vmem:[#allocation2 + $0x58] sm:$0xff] }
  0x77   : > { %v623_v51 = vld [vmem:[#allocation2 + $0x20] sm:$0xff]  ;;  %v620_v54 = vld [vmem:[#allocation2 + $0x8] sm:$0xff]  ;;  %v624_v63 = vld [vmem:[#allocation2 + $0x10] sm:$0xff] }
  0x78   : > { %760 = vmatpush.bf16.msra.mxu0 %v1747_v19  ;;  %1811 = vmatpush.bf16.msra.mxu1 %v1747_v19  ;;  %v628_v0 = vld [vmem:[#allocation2 + $0x78] sm:$0xff]  ;;  %v621_v2 = vld [vmem:[#allocation2 + $0x48] sm:$0xff] }
  0x79   : > { %1812 = vmatpush.bf16.msra.mxu2 %v1747_v19  ;;  %1813 = vmatpush.bf16.msra.mxu3 %v1747_v19  ;;  %v617_v1 = vld [vmem:[#allocation2 + $0x18] sm:$0xff]  ;;  %v629_v12 = vld [vmem:[#allocation2 + $0x28] sm:$0xff] }
  0x7a   : > { %v625_v11 = vld [vmem:[#allocation2 + $0x38] sm:$0xff] }
  0x7c   : > { %761 = vmatpush.bf16.msra.mxu0 %v1746_v20  ;;  %1814 = vmatpush.bf16.msra.mxu1 %v1746_v20 }
  0x7d   : > { %1815 = vmatpush.bf16.msra.mxu2 %v1746_v20  ;;  %1816 = vmatpush.bf16.msra.mxu3 %v1746_v20 }
  0x80   : > { %762 = vmatpush.bf16.msra.mxu0 %v1745_v21  ;;  %1817 = vmatpush.bf16.msra.mxu1 %v1745_v21 }
  0x81   : > { %1818 = vmatpush.bf16.msra.mxu2 %v1745_v21  ;;  %1819 = vmatpush.bf16.msra.mxu3 %v1745_v21 }
  0x84   : > { %763 = vmatpush.bf16.msra.mxu0 %v1744_v22  ;;  %1820 = vmatpush.bf16.msra.mxu1 %v1744_v22 }
  0x85   : > { %1821 = vmatpush.bf16.msra.mxu2 %v1744_v22  ;;  %1822 = vmatpush.bf16.msra.mxu3 %v1744_v22 }
  0x88   : > { %764 = vmatpush.bf16.msra.mxu0 %v1743_v23  ;;  %1823 = vmatpush.bf16.msra.mxu1 %v1743_v23 }
  0x89   : > { %1824 = vmatpush.bf16.msra.mxu2 %v1743_v23  ;;  %1825 = vmatpush.bf16.msra.mxu3 %v1743_v23 }
  0x8c   : > { %765 = vmatpush.bf16.msra.mxu0 %v1742_v24  ;;  %1826 = vmatpush.bf16.msra.mxu1 %v1742_v24 }
  0x8d   : > { %1827 = vmatpush.bf16.msra.mxu2 %v1742_v24  ;;  %1828 = vmatpush.bf16.msra.mxu3 %v1742_v24 }
  0x8f   : > { %766 = vmatmul.bf16.vlgmr.msra.gmra.mxu0 %v1734_v25  ;;  %776 = vmatmul.bf16.vlgmr.msra.gmra.mxu1 %v1736_v26 }
  0x90   : > { %786 = vmatmul.bf16.vlgmr.msra.gmra.mxu2 %v1738_v27  ;;  %796 = vmatmul.bf16.vlgmr.msra.gmra.mxu3 %v1740_v28 }
  0x9f   : > { %771 = vmatmul.bf16.gmra.mxu0 %v1735_v29  ;;  %781 = vmatmul.bf16.gmra.mxu1 %v1737_v30 }
  0xa0   : > { %791 = vmatmul.bf16.gmra.mxu2 %v1739_v31  ;;  %801 = vmatmul.bf16.gmra.mxu3 %v1741_v32 }
 0x10c   : > { %v767_v35 = vpop.f32.mrf.mxu0  ;;  %v777_v36 = vpop.f32.mrf.mxu1 }
 0x10d   : > { %v807_v37 = vadd.f32 %v767_v35, %v614_v33  ;;  %v811_v38 = vadd.f32 %v777_v36, %v618_v34 }
 0x10f   : > { %823 = vst [vmem:[#allocation2 + $0x30] sm:$0xff] %v807_v37 }
 0x110   : > { %827 = vst [vmem:[#allocation2 + $0x50] sm:$0xff] %v811_v38 }
 0x113   : > { %v787_v43 = vpop.f32.mrf.mxu2  ;;  %v797_v44 = vpop.f32.mrf.mxu3 }
 0x114   : > { %v815_v45 = vadd.f32 %v787_v43, %v622_v39  ;;  %v819_v46 = vadd.f32 %v797_v44, %v626_v40  ;;  %v769_v47 = vpop.f32.mrf.mxu0  ;;  %v779_v48 = vpop.f32.mrf.mxu1 }
 0x115   : > { %v808_v49 = vadd.f32 %v769_v47, %v615_v41  ;;  %v812_v50 = vadd.f32 %v779_v48, %v619_v42 }
 0x116   : > { %831 = vst [vmem:[#allocation2 + $0x40] sm:$0xff] %v815_v45 }
 0x117   : > { %835 = vst [vmem:[#allocation2 + $0x60] sm:$0xff] %v819_v46 }
 0x118   : > { %824 = vst [vmem:[#allocation2] sm:$0xff] %v808_v49 }
 0x119   : > { %828 = vst [vmem:[#allocation2 + $0x68] sm:$0xff] %v812_v50 }
 0x11b   : > { %v789_v55 = vpop.f32.mrf.mxu2  ;;  %v799_v56 = vpop.f32.mrf.mxu3 }
 0x11c   : > { %v816_v57 = vadd.f32 %v789_v55, %v623_v51  ;;  %v820_v58 = vadd.f32 %v799_v56, %v627_v52  ;;  %v772_v59 = vpop.f32.mrf.mxu0  ;;  %v782_v60 = vpop.f32.mrf.mxu1 }
 0x11d   : > { %v809_v61 = vadd.f32 %v772_v59, %v616_v53  ;;  %v813_v62 = vadd.f32 %v782_v60, %v620_v54 }
 0x11e   : > { %832 = vst [vmem:[#allocation2 + $0x20] sm:$0xff] %v816_v57 }
 0x11f   : > { %836 = vst [vmem:[#allocation2 + $0x70] sm:$0xff] %v820_v58 }
 0x120   : > { %825 = vst [vmem:[#allocation2 + $0x58] sm:$0xff] %v809_v61 }
 0x121   : > { %829 = vst [vmem:[#allocation2 + $0x8] sm:$0xff] %v813_v62 }
 0x123   : > { %v792_v3 = vpop.f32.mrf.mxu2  ;;  %v802_v4 = vpop.f32.mrf.mxu3 }
 0x124   : > { %v817_v5 = vadd.f32 %v792_v3, %v624_v63  ;;  %v821_v6 = vadd.f32 %v802_v4, %v628_v0  ;;  %v774_v7 = vpop.f32.mrf.mxu0  ;;  %v784_v8 = vpop.f32.mrf.mxu1 }
 0x125   : > { %v810_v9 = vadd.f32 %v774_v7, %v617_v1  ;;  %v814_v10 = vadd.f32 %v784_v8, %v621_v2 }
 0x126   : > { %833 = vst [vmem:[#allocation2 + $0x10] sm:$0xff] %v817_v5 }
 0x127   : > { %837 = vst [vmem:[#allocation2 + $0x78] sm:$0xff] %v821_v6 }
 0x128   : > { %826 = vst [vmem:[#allocation2 + $0x18] sm:$0xff] %v810_v9 }
 0x129   : > { %830 = vst [vmem:[#allocation2 + $0x48] sm:$0xff] %v814_v10 }
 0x12b   : > { %v794_v13 = vpop.f32.mrf.mxu2  ;;  %v804_v14 = vpop.f32.mrf.mxu3 }
 0x12c   : > { %v818_v15 = vadd.f32 %v794_v13, %v625_v11  ;;  %v822_v16 = vadd.f32 %v804_v14, %v629_v12 }
 0x12e   : > { %834 = vst [vmem:[#allocation2 + $0x38] sm:$0xff] %v818_v15 }
 0x12f   : > { %838 = vst [vmem:[#allocation2 + $0x28] sm:$0xff] %v822_v16 }
 0x130 PF: > { %p1699_p0 = scmp.ne.s32.totalorder %s2012_s23, 2 }
 0x132   : > { %842 = sbr.rel (%p1699_p0) target bundleno = 773 (0x305), region = 101 }
 0x137   : > { %v855_v17 = vld [vmem:[#allocation2 + $0x60] sm:$0xff]  ;;  %v843_v20 = vld [vmem:[#allocation2 + $0x30] sm:$0xff]  ;;  %v872_v39 = vld [vmem:[%s2185_s15 + $0x68] sm:$0xff] }
 0x138   : > { %v2227_v18 = vld [vmem:[%s2885_s5] ss:$0 sm:$0xff]  ;;  %v856_v21 = vld [vmem:[#allocation2 + $0x70] sm:$0xff]  ;;  %v868_v42 = vld [vmem:[%s2185_s15 + $0x48] sm:$0xff] }
 0x139   : > { %v851_v19 = vld [vmem:[#allocation2 + $0x40] sm:$0xff]  ;;  %v893_v23 = vadd.f32 %v2227_v18, %v855_v17  ;;  %v881_v25 = vadd.f32 %v2227_v18, %v843_v20  ;;  %v894_v29 = vadd.f32 %v2227_v18, %v856_v21  ;;  %v847_v44 = vld [vmem:[#allocation2 + $0x50] sm:$0xff]  ;;  %v848_v45 = vld [vmem:[#allocation2 + $0x68] sm:$0xff] }
 0x13a   : > { %v871_v22 = vld [vmem:[%s2185_s15 + $0x60] sm:$0xff]  ;;  %v889_v24 = vadd.f32 %v2227_v18, %v851_v19  ;;  %v860_v46 = vld [vmem:[%s2185_s15 + $0x8] sm:$0xff]  ;;  %v853_v47 = vld [vmem:[#allocation2 + $0x10] sm:$0xff]  ;;  %v885_v50 = vadd.f32 %v2227_v18, %v847_v44  ;;  %v886_v51 = vadd.f32 %v2227_v18, %v848_v45 }
 0x13b   : > { %v852_v26 = vld [vmem:[#allocation2 + $0x20] sm:$0xff]  ;;  %v909_v31 = vmax.f32 %v893_v23, 0.0  ;;  %v897_v33 = vmax.f32 %v881_v25, 0.0  ;;  %v910_v40 = vmax.f32 %v894_v29, 0.0  ;;  %v891_v53 = vadd.f32 %v2227_v18, %v853_v47  ;;  %v864_v58 = vld [vmem:[%s2185_s15 + $0x28] sm:$0xff]  ;;  %v854_v59 = vld [vmem:[#allocation2 + $0x38] sm:$0xff] }
 0x13c   : > { %v867_v27 = vld [vmem:[%s2185_s15 + $0x40] sm:$0xff]  ;;  %v905_v32 = vmax.f32 %v889_v24, 0.0  ;;  %v890_v34 = vadd.f32 %v2227_v18, %v852_v26  ;;  %v901_v55 = vmax.f32 %v885_v50, 0.0  ;;  %v902_v56 = vmax.f32 %v886_v51, 0.0  ;;  %v857_v60 = vld [vmem:[#allocation2 + $0x78] sm:$0xff]  ;;  %v869_v61 = vld [vmem:[%s2185_s15 + $0x50] sm:$0xff] }
 0x13d   : > { %v859_v28 = vld [vmem:[%s2185_s15] sm:$0xff]  ;;  %v2238_v36 = vadd.f32 %v909_v31, %v871_v22  ;;  %v2250_v48 = vadd.f32 %v910_v40, %v872_v39  ;;  %v907_v57 = vmax.f32 %v891_v53, 0.0  ;;  %v858_v62 = vld [vmem:[#allocation2 + $0x28] sm:$0xff]  ;;  %v892_v1 = vadd.f32 %v2227_v18, %v854_v59  ;;  %v870_v5 = vld [vmem:[%s2185_s15 + $0x58] sm:$0xff] }
 0x13e   : > { %v844_v30 = vld [vmem:[#allocation2] sm:$0xff]  ;;  %v2240_v37 = vadd.f32 %v905_v32, %v867_v27  ;;  %v2242_v38 = vadd.f32 %v897_v33, %v859_v28  ;;  %v906_v41 = vmax.f32 %v890_v34, 0.0  ;;  %v2267_v0 = vadd.f32 %v902_v56, %v864_v58  ;;  %v873_v9 = vld [vmem:[%s2185_s15 + $0x70] sm:$0xff]  ;;  %v845_v10 = vld [vmem:[#allocation2 + $0x58] sm:$0xff] }
 0x13f   : > { %v882_v35 = vadd.f32 %v2227_v18, %v844_v30  ;;  %956 = vadd.xlane.f32.xlu1 %v2238_v36  ;;  %v863_v54 = vld [vmem:[%s2185_s15 + $0x20] sm:$0xff]  ;;  %v895_v2 = vadd.f32 %v2227_v18, %v857_v60  ;;  %v2271_v3 = vadd.f32 %v907_v57, %v869_v61  ;;  %v896_v4 = vadd.f32 %v2227_v18, %v858_v62  ;;  %v846_v11 = vld [vmem:[#allocation2 + $0x18] sm:$0xff]  ;;  %v849_v13 = vld [vmem:[#allocation2 + $0x8] sm:$0xff] }
 0x140   : > { %948 = vadd.xlane.f32.xlu0 %v2240_v37  ;;  %932 = vadd.xlane.f32.xlu2 %v2242_v38  ;;  %v2252_v49 = vadd.f32 %v906_v41, %v868_v42  ;;  %v2265_v63 = vadd.f32 %v901_v55, %v863_v54  ;;  %v908_v6 = vmax.f32 %v892_v1, 0.0  ;;  %v874_v12 = vld [vmem:[%s2185_s15 + $0x78] sm:$0xff]  ;;  %v883_v16 = vadd.f32 %v2227_v18, %v845_v10  ;;  %v861_v23 = vld [vmem:[%s2185_s15 + $0x10] sm:$0xff]  ;;  %v850_v26 = vld [vmem:[#allocation2 + $0x48] sm:$0xff] }
 0x141   : > { %v898_v43 = vmax.f32 %v882_v35, 0.0  ;;  %v911_v7 = vmax.f32 %v895_v2, 0.0  ;;  %v912_v8 = vmax.f32 %v896_v4, 0.0  ;;  %v884_v17 = vadd.f32 %v2227_v18, %v846_v11  ;;  %v862_v25 = vld [vmem:[%s2185_s15 + $0x18] sm:$0xff]  ;;  %v865_v27 = vld [vmem:[%s2185_s15 + $0x30] sm:$0xff] }
 0x142   : > { %v2280_v14 = vadd.f32 %v908_v6, %v870_v5  ;;  %v887_v20 = vadd.f32 %v2227_v18, %v849_v13  ;;  %v899_v21 = vmax.f32 %v883_v16, 0.0  ;;  %v888_v30 = vadd.f32 %v2227_v18, %v850_v26  ;;  %v866_v33 = vld [vmem:[%s2185_s15 + $0x38] sm:$0xff] }
 0x143   : > { %v2256_v52 = vadd.f32 %v898_v43, %v860_v46  ;;  %v2282_v15 = vadd.f32 %v911_v7, %v873_v9  ;;  %v2286_v19 = vadd.f32 %v912_v8, %v874_v12  ;;  %v900_v22 = vmax.f32 %v884_v17, 0.0 }
 0x144   : > { %v903_v24 = vmax.f32 %v887_v20, 0.0  ;;  %v2295_v28 = vadd.f32 %v899_v21, %v861_v23  ;;  %v904_v32 = vmax.f32 %v888_v30, 0.0  ;;  %v929_v35 = vlaneseq }
 0x145   : > { %v2297_v29 = vadd.f32 %v900_v22, %v862_v25 }
 0x146   : > { %v2300_v31 = vadd.f32 %v903_v24, %v865_v27  ;;  %v2306_v34 = vadd.f32 %v904_v32, %v866_v33  ;;  %v2309_v39 = vand.u32 127, %v929_v35 }
 0x147   : > { %958 = vadd.xlane.f32.xlu1 %v2250_v48 }
 0x148   : > { %950 = vadd.xlane.f32.xlu0 %v2252_v49  ;;  %934 = vadd.xlane.f32.xlu2 %v2256_v52  ;;  %vm931_vm0 = vcmp.lt.s32.totalorder %v2309_v39, 32  ;;  %v1755_v39 = vld [vmem:[%s2888_s8 + $0x28] sm:$0xff] }
 0x14f   : > { %942 = vadd.xlane.f32.xlu1 %v2267_v0 }
 0x150   : > { %940 = vadd.xlane.f32.xlu0 %v2265_v63  ;;  %952 = vadd.xlane.f32.xlu2 %v2271_v3 }
 0x157   : > { %960 = vadd.xlane.f32.xlu1 %v2282_v15 }
 0x158   : > { %954 = vadd.xlane.f32.xlu0 %v2280_v14  ;;  %962 = vadd.xlane.f32.xlu2 %v2286_v19 }
 0x15f   : > { %938 = vadd.xlane.f32.xlu1 %v2297_v29 }
 0x160   : > { %936 = vadd.xlane.f32.xlu0 %v2295_v28  ;;  %944 = vadd.xlane.f32.xlu2 %v2300_v31 }
 0x168   : > { %946 = vadd.xlane.f32.xlu0 %v2306_v34 }
 0x1b2   : > { %v957_v40 = vpop.xlane.xlu1 %956 }
 0x1b3   : > { %v949_v41 = vpop.xlane.xlu0 %948  ;;  %v976_v18 = vmul.f32 0.03125, %v957_v40  ;;  %v933_v43 = vpop.xlane.xlu2 %932 }
 0x1b4   : > { %v972_v42 = vmul.f32 0.03125, %v949_v41  ;;  %v964_v57 = vmul.f32 0.03125, %v933_v43 }
 0x1b5   : > { %v992_v44 = vsub.f32 %v2238_v36, %v976_v18 }
 0x1b6   : > { %v988_v45 = vsub.f32 %v2240_v37, %v972_v42 }
 0x1b7   : > { %v2320_v47 = vsel %vm931_vm0, %v992_v44, 0.0 }
 0x1b8   : > { %v2316_v46 = vsel %vm931_vm0, %v988_v45, 0.0  ;;  %v1024_v51 = vmul.f32 %v2320_v47, %v2320_v47 }
 0x1b9   : > { %v1020_v50 = vmul.f32 %v2316_v46, %v2316_v46 }
 0x1ba   : > { %v959_v53 = vpop.xlane.xlu1 %958  ;;  %1052 = vadd.xlane.f32.xlu0 %v1024_v51 }
 0x1bb   : > { %v951_v54 = vpop.xlane.xlu0 %950  ;;  %1044 = vadd.xlane.f32.xlu1 %v1020_v50  ;;  %v977_v36 = vmul.f32 0.03125, %v959_v53  ;;  %v935_v55 = vpop.xlane.xlu2 %934 }
 0x1bc   : > { %v973_v37 = vmul.f32 0.03125, %v951_v54  ;;  %v965_v56 = vmul.f32 0.03125, %v935_v55 }
 0x1bd   : > { %v993_v58 = vsub.f32 %v2250_v48, %v977_v36 }
 0x1be   : > { %v989_v59 = vsub.f32 %v2252_v49, %v973_v37  ;;  %v981_v60 = vsub.f32 %v2256_v52, %v965_v56  ;;  %v980_v49 = vsub.f32 %v2242_v38, %v964_v57 }
 0x1bf   : > { %v2331_v61 = vsel %vm931_vm0, %v993_v58, 0.0 }
 0x1c0   : > { %v2335_v62 = vsel %vm931_vm0, %v989_v59, 0.0  ;;  %v1025_v1 = vmul.f32 %v2331_v61, %v2331_v61  ;;  %v2343_v48 = vsel %vm931_vm0, %v981_v60, 0.0  ;;  %v2351_v11 = vsel %vm931_vm0, %v980_v49, 0.0  ;;  %v1757_v60 = vld [vmem:[%s2888_s8 + $0x38] sm:$0xff]  ;;  %v1752_v49 = vld [vmem:[%s2888_s8 + $0x10] sm:$0xff] }
 0x1c1   : > { %v1021_v2 = vmul.f32 %v2335_v62, %v2335_v62  ;;  %v1013_v52 = vmul.f32 %v2343_v48, %v2343_v48  ;;  %v1012_v17 = vmul.f32 %v2351_v11, %v2351_v11  ;;  %1830 = vmatpush.bf16.msra.mxu2 %v1757_v60  ;;  %1831 = vmatpush.bf16.msra.mxu3 %v1757_v60 }
 0x1c2   : > { %v943_v5 = vpop.xlane.xlu1 %942  ;;  %1394 = vmatpush.bf16.msra.mxu0 %v1757_v60  ;;  %1829 = vmatpush.bf16.msra.mxu1 %v1757_v60 }
 0x1c3   : > { %v941_v4 = vpop.xlane.xlu0 %940  ;;  %1054 = vadd.xlane.f32.xlu1 %v1025_v1  ;;  %1046 = vadd.xlane.f32.xlu2 %v1021_v2  ;;  %v953_v7 = vpop.xlane.xlu2 %952  ;;  %v969_v8 = vmul.f32 0.03125, %v943_v5  ;;  %v1754_v1 = vld [vmem:[%s2888_s8 + $0x20] sm:$0xff]  ;;  %v1753_v2 = vld [vmem:[%s2888_s8 + $0x18] sm:$0xff] }
 0x1c4   : > { %v968_v6 = vmul.f32 0.03125, %v941_v4  ;;  %1030 = vadd.xlane.f32.xlu0 %v1013_v52  ;;  %v974_v9 = vmul.f32 0.03125, %v953_v7  ;;  %v1751_v7 = vld [vmem:[%s2888_s8 + $0x8] sm:$0xff] }
 0x1c5   : > { %v985_v12 = vsub.f32 %v2267_v0, %v969_v8 }
 0x1c6   : > { %v984_v10 = vsub.f32 %v2265_v63, %v968_v6  ;;  %v990_v38 = vsub.f32 %v2271_v3, %v974_v9 }
 0x1c7   : > { %v2371_v24 = vsel %vm931_vm0, %v985_v12, 0.0 }
 0x1c8   : > { %v2357_v13 = vsel %vm931_vm0, %v984_v10, 0.0  ;;  %v2365_v63 = vsel %vm931_vm0, %v990_v38, 0.0  ;;  %v1017_v30 = vmul.f32 %v2371_v24, %v2371_v24  ;;  %v1750_v10 = vld [vmem:[%s2888_s8] sm:$0xff] }
 0x1c9   : > { %v1016_v16 = vmul.f32 %v2357_v13, %v2357_v13  ;;  %v1022_v20 = vmul.f32 %v2365_v63, %v2365_v63 }
 0x1ca   : > { %v961_v0 = vpop.xlane.xlu1 %960 }
 0x1cb   : > { %v955_v3 = vpop.xlane.xlu0 %954  ;;  %1036 = vadd.xlane.f32.xlu1 %v1016_v16  ;;  %1028 = vadd.xlane.f32.xlu2 %v1012_v17  ;;  %v963_v22 = vpop.xlane.xlu2 %962  ;;  %v978_v23 = vmul.f32 0.03125, %v961_v0 }
 0x1cc   : > { %v975_v21 = vmul.f32 0.03125, %v955_v3  ;;  %1048 = vadd.xlane.f32.xlu0 %v1022_v20  ;;  %v979_v25 = vmul.f32 0.03125, %v963_v22 }
 0x1cd   : > { %v994_v32 = vsub.f32 %v2282_v15, %v978_v23 }
 0x1ce   : > { %v991_v26 = vsub.f32 %v2280_v14, %v975_v21  ;;  %v995_v27 = vsub.f32 %v2286_v19, %v979_v25 }
 0x1cf   : > { %v2392_v43 = vsel %vm931_vm0, %v994_v32, 0.0 }
 0x1d0   : > { %v2380_v33 = vsel %vm931_vm0, %v991_v26, 0.0  ;;  %v2386_v40 = vsel %vm931_vm0, %v995_v27, 0.0  ;;  %v1026_v51 = vmul.f32 %v2392_v43, %v2392_v43 }
 0x1d1   : > { %v1023_v35 = vmul.f32 %v2380_v33, %v2380_v33  ;;  %v1027_v14 = vmul.f32 %v2386_v40, %v2386_v40 }
 0x1d2   : > { %v939_v41 = vpop.xlane.xlu1 %938 }
 0x1d3   : > { %1050 = vadd.xlane.f32.xlu1 %v1023_v35  ;;  %v937_v19 = vpop.xlane.xlu0 %936  ;;  %1038 = vadd.xlane.f32.xlu2 %v1017_v30  ;;  %v945_v15 = vpop.xlane.xlu2 %944  ;;  %v967_v42 = vmul.f32 0.03125, %v939_v41 }
 0x1d4   : > { %v966_v18 = vmul.f32 0.03125, %v937_v19  ;;  %1058 = vadd.xlane.f32.xlu0 %v1027_v14  ;;  %v970_v44 = vmul.f32 0.03125, %v945_v15 }
 0x1d5   : > { %v983_v53 = vsub.f32 %v2297_v29, %v967_v42 }
 0x1d6   : > { %v982_v45 = vsub.f32 %v2295_v28, %v966_v18  ;;  %v986_v50 = vsub.f32 %v2300_v31, %v970_v44 }
 0x1d7   : > { %v2413_v29 = vsel %vm931_vm0, %v983_v53, 0.0 }
 0x1d8   : > { %v2401_v54 = vsel %vm931_vm0, %v982_v45, 0.0  ;;  %v2407_v37 = vsel %vm931_vm0, %v986_v50, 0.0  ;;  %v1015_v57 = vmul.f32 %v2413_v29, %v2413_v29 }
 0x1d9   : > { %v1014_v36 = vmul.f32 %v2401_v54, %v2401_v54  ;;  %v1018_v28 = vmul.f32 %v2407_v37, %v2407_v37 }
 0x1db   : > { %1032 = vadd.xlane.f32.xlu1 %v1014_v36  ;;  %v947_v31 = vpop.xlane.xlu0 %946  ;;  %1056 = vadd.xlane.f32.xlu2 %v1026_v51 }
 0x1dc   : > { %v971_v55 = vmul.f32 0.03125, %v947_v31  ;;  %1040 = vadd.xlane.f32.xlu0 %v1018_v28 }
 0x1de   : > { %v987_v56 = vsub.f32 %v2306_v34, %v971_v55  ;;  %v1756_v34 = vld [vmem:[%s2888_s8 + $0x30] sm:$0xff] }
 0x1df   : > { %1833 = vmatpush.bf16.msra.mxu2 %v1756_v34  ;;  %1834 = vmatpush.bf16.msra.mxu3 %v1756_v34 }
 0x1e0   : > { %v2420_v58 = vsel %vm931_vm0, %v987_v56, 0.0  ;;  %1395 = vmatpush.bf16.msra.mxu0 %v1756_v34  ;;  %1832 = vmatpush.bf16.msra.mxu1 %v1756_v34 }
 0x1e1   : > { %v1019_v59 = vmul.f32 %v2420_v58, %v2420_v58 }
 0x1e3   : > { %1042 = vadd.xlane.f32.xlu1 %v1019_v59  ;;  %1034 = vadd.xlane.f32.xlu2 %v1015_v57 }
 0x1e4   : > { %1836 = vmatpush.bf16.msra.mxu2 %v1755_v39  ;;  %1837 = vmatpush.bf16.msra.mxu3 %v1755_v39 }
 0x1e5   : > { %1396 = vmatpush.bf16.msra.mxu0 %v1755_v39  ;;  %1835 = vmatpush.bf16.msra.mxu1 %v1755_v39 }
 0x1e8   : > { %1839 = vmatpush.bf16.msra.mxu2 %v1754_v1  ;;  %1840 = vmatpush.bf16.msra.mxu3 %v1754_v1 }
 0x1e9   : > { %1397 = vmatpush.bf16.msra.mxu0 %v1754_v1  ;;  %1838 = vmatpush.bf16.msra.mxu1 %v1754_v1 }
 0x1ec   : > { %1842 = vmatpush.bf16.msra.mxu2 %v1753_v2  ;;  %1843 = vmatpush.bf16.msra.mxu3 %v1753_v2 }
 0x1ed   : > { %1398 = vmatpush.bf16.msra.mxu0 %v1753_v2  ;;  %1841 = vmatpush.bf16.msra.mxu1 %v1753_v2 }
 0x1f0   : > { %1845 = vmatpush.bf16.msra.mxu2 %v1752_v49  ;;  %1846 = vmatpush.bf16.msra.mxu3 %v1752_v49 }
 0x1f1   : > { %1399 = vmatpush.bf16.msra.mxu0 %v1752_v49  ;;  %1844 = vmatpush.bf16.msra.mxu1 %v1752_v49 }
 0x1f4   : > { %1848 = vmatpush.bf16.msra.mxu2 %v1751_v7  ;;  %1849 = vmatpush.bf16.msra.mxu3 %v1751_v7 }
 0x1f5   : > { %1400 = vmatpush.bf16.msra.mxu0 %v1751_v7  ;;  %1847 = vmatpush.bf16.msra.mxu1 %v1751_v7 }
 0x1f8   : > { %1851 = vmatpush.bf16.msra.mxu2 %v1750_v10  ;;  %1852 = vmatpush.bf16.msra.mxu3 %v1750_v10 }
 0x1f9   : > { %1401 = vmatpush.bf16.msra.mxu0 %v1750_v10  ;;  %1850 = vmatpush.bf16.msra.mxu1 %v1750_v10 }
 0x22d   : > { %v1053_v4 = vpop.xlane.xlu0 %1052 }
 0x22e   : > { %v1045_v52 = vpop.xlane.xlu1 %1044  ;;  %v1072_v6 = vmul.f32 0.03125, %v1053_v4 }
 0x22f   : > { %v1068_v5 = vmul.f32 0.03125, %v1045_v52 }
 0x230   : > { %v2445_v9 = vadd.f32 1e-05, %v1072_v6 }
 0x231   : > { %v1084_v8 = vadd.f32 1e-05, %v1068_v5 }
 0x232   : > { %vm1218_vm5 = vweird.f32 %v2445_v9 }
 0x233   : > { %1916 = vrsqrt.f32 %v1084_v8  ;;  %vm1178_vm2 = vweird.f32 %v1084_v8 }
 0x234   : > { %1918 = vrsqrt.f32 %v2445_v9 }
 0x236   : > { %v1055_v38 = vpop.xlane.xlu1 %1054  ;;  %v1047_v12 = vpop.xlane.xlu2 %1046 }
 0x237   : > { %v1073_v16 = vmul.f32 0.03125, %v1055_v38  ;;  %v1031_v17 = vpop.xlane.xlu0 %1030  ;;  %v1069_v20 = vmul.f32 0.03125, %v1047_v12 }
 0x238   : > { %v1061_v3 = vmul.f32 0.03125, %v1031_v17 }
 0x239   : > { %v1917_v0 = vpop.eup %1916  ;;  %v2451_v21 = vadd.f32 1e-05, %v1073_v16  ;;  %v2453_v22 = vadd.f32 1e-05, %v1069_v20  ;;  %v2504_v16 = vld [vmem:[%s2886_s6] ss:$0 sm:$0xff] }
 0x23a   : > { %v1173_v23 = vmul.f32 %v1917_v0, %v1084_v8  ;;  %v2455_v25 = vadd.f32 1e-05, %v1061_v3  ;;  %v2458_v26 = vpop.eup %1918  ;;  %vm1179_vm1 = vweird.f32 %v1917_v0 }
 0x23b   : > { %1920 = vrsqrt.f32 %v2451_v21  ;;  %v1213_v14 = vmul.f32 %v2458_v26, %v2445_v9  ;;  %vm2482_vm3 = vmor %vm1178_vm2, %vm1179_vm1  ;;  %vm1219_vm4 = vweird.f32 %v2458_v26  ;;  %vm1188_vm6 = vweird.f32 %v2453_v22 }
 0x23c   : > { %v1174_v27 = vmul.f32 %v1917_v0, %v1173_v23  ;;  %1922 = vrsqrt.f32 %v2455_v25  ;;  %vm1228_vm8 = vweird.f32 %v2451_v21  ;;  %vm1108_vm11 = vweird.f32 %v2455_v25  ;;  %vm2570_vm13 = vmor %vm1218_vm5, %vm1219_vm4 }
 0x23d   : > { %1924 = vrsqrt.f32 %v2453_v22  ;;  %v1214_v55 = vmul.f32 %v2458_v26, %v1213_v14 }
 0x23e   : > { %v1175_v30 = vmul.f32 0.5, %v1174_v27  ;;  %v1037_v32 = vpop.xlane.xlu1 %1036  ;;  %v1029_v35 = vpop.xlane.xlu2 %1028 }
 0x23f   : > { %v1064_v19 = vmul.f32 0.03125, %v1037_v32  ;;  %v1049_v41 = vpop.xlane.xlu0 %1048  ;;  %v1060_v18 = vmul.f32 0.03125, %v1029_v35  ;;  %v1215_v49 = vmul.f32 0.5, %v1214_v55 }
 0x240   : > { %v1176_v15 = vsub.f32 1.5, %v1175_v30  ;;  %v1070_v42 = vmul.f32 0.03125, %v1049_v41 }
 0x241   : > { %v2464_v44 = vpop.eup %1920  ;;  %v2466_v45 = vadd.f32 1e-05, %v1064_v19  ;;  %v2474_v28 = vadd.f32 1e-05, %v1060_v18  ;;  %v1216_v27 = vsub.f32 1.5, %v1215_v49 }
 0x242   : > { %v2468_v50 = vpop.eup %1922  ;;  %v1177_v51 = vmul.f32 %v1917_v0, %v1176_v15  ;;  %v1223_v53 = vmul.f32 %v2464_v44, %v2451_v21  ;;  %v2472_v36 = vadd.f32 1e-05, %v1070_v42  ;;  %v2532_v15 = vld [vmem:[%s2887_s7] ss:$0 sm:$0xff]  ;;  %vm1229_vm9 = vweird.f32 %v2464_v44 }
 0x243   : > { %v2476_v31 = vpop.eup %1924  ;;  %1926 = vrsqrt.f32 %v2466_v45  ;;  %v1103_v59 = vmul.f32 %v2468_v50, %v2455_v25  ;;  %vm1109_vm12 = vweird.f32 %v2468_v50  ;;  %vm1098_vm15 = vweird.f32 %v2474_v28  ;;  %vm2600_vm0 = vmor %vm1228_vm8, %vm1229_vm9 }
 0x244   : > { %v1183_v56 = vmul.f32 %v2476_v31, %v2453_v22  ;;  %1928 = vrsqrt.f32 %v2472_v36  ;;  %v1224_v60 = vmul.f32 %v2464_v44, %v1223_v53  ;;  %v1181_v2 = vsel %vm2482_vm3, %v1917_v0, %v1177_v51 }
 0x245   : > { %1930 = vrsqrt.f32 %v2474_v28  ;;  %v1104_v10 = vmul.f32 %v2468_v50, %v1103_v59  ;;  %v1260_v12 = vmul.f32 %v1181_v2, %v2316_v46  ;;  %vm1189_vm7 = vweird.f32 %v2476_v31 }
 0x246   : > { %v1184_v34 = vmul.f32 %v2476_v31, %v1183_v56  ;;  %v1051_v39 = vpop.xlane.xlu1 %1050  ;;  %v1039_v1 = vpop.xlane.xlu2 %1038  ;;  %v1225_v17 = vmul.f32 0.5, %v1224_v60  ;;  %vm2541_vm10 = vmor %vm1188_vm6, %vm1189_vm7  ;;  %vm1198_vm1 = vweird.f32 %v2472_v36  ;;  %vm1138_vm4 = vweird.f32 %v2466_v45 }
 0x247   : > { %v1071_v52 = vmul.f32 0.03125, %v1051_v39  ;;  %v1059_v4 = vpop.xlane.xlu0 %1058  ;;  %v1065_v5 = vmul.f32 0.03125, %v1039_v1  ;;  %v1105_v19 = vmul.f32 0.5, %v1104_v10  ;;  %v1279_v18 = vmul.f32 %v2504_v16, %v1260_v12 }
 0x248   : > { %v1185_v6 = vmul.f32 0.5, %v1184_v34  ;;  %v1075_v7 = vmul.f32 0.03125, %v1059_v4  ;;  %v1226_v42 = vsub.f32 1.5, %v1225_v17  ;;  %v1217_v1 = vmul.f32 %v2458_v26, %v1216_v27 }
 0x249   : > { %v2494_v8 = vpop.eup %1926  ;;  %v2498_v38 = vadd.f32 1e-05, %v1071_v52  ;;  %v2509_v0 = vadd.f32 1e-05, %v1065_v5  ;;  %v1106_v22 = vsub.f32 1.5, %v1105_v19 }
 0x24a   : > { %v1186_v20 = vsub.f32 1.5, %v1185_v6  ;;  %v1133_v3 = vmul.f32 %v2494_v8, %v2466_v45  ;;  %v2511_v23 = vpop.eup %1928  ;;  %v2515_v46 = vadd.f32 1e-05, %v1075_v7  ;;  %v2555_v7 = vadd.f32 %v2532_v15, %v1279_v18 }
 0x24b   : > { %1932 = vrsqrt.f32 %v2498_v38  ;;  %v2517_v30 = vpop.eup %1930  ;;  %v1193_v14 = vmul.f32 %v2511_v23, %v2472_v36  ;;  %v1227_v10 = vmul.f32 %v2464_v44, %v1226_v42  ;;  %v2589_v18 = vmul.f32 %v2468_v50, %v1106_v22 }
 0x24c   : > { %v1187_v32 = vmul.f32 %v2476_v31, %v1186_v20  ;;  %v1134_v35 = vmul.f32 %v2494_v8, %v1133_v3  ;;  %v1093_v41 = vmul.f32 %v2517_v30, %v2474_v28  ;;  %1934 = vrsqrt.f32 %v2515_v46  ;;  %1314 = vst [vmem:[%s2190_s21 + $0x40] sm:$0xff] %v2555_v7 }
 0x24d   : > { %v1194_v51 = vmul.f32 %v2511_v23, %v1193_v14  ;;  %1936 = vrsqrt.f32 %v2509_v0  ;;  %vm1139_vm14 = vweird.f32 %v2494_v8  ;;  %vm1199_vm2 = vweird.f32 %v2511_v23 }
 0x24e   : > { %v1033_v53 = vpop.xlane.xlu1 %1032  ;;  %v1057_v55 = vpop.xlane.xlu2 %1056  ;;  %v1135_v57 = vmul.f32 0.5, %v1134_v35  ;;  %v1094_v59 = vmul.f32 %v2517_v30, %v1093_v41  ;;  %v1191_v52 = vsel %vm2541_vm10, %v2476_v31, %v1187_v32  ;;  %v1221_v41 = vsel %vm2570_vm13, %v2458_v26, %v1217_v1  ;;  %vm2652_vm10 = vmor %vm1108_vm11, %vm1109_vm12 }
 0x24f   : > { %v1062_v60 = vmul.f32 0.03125, %v1033_v53  ;;  %v1041_v34 = vpop.xlane.xlu0 %1040  ;;  %v1074_v39 = vmul.f32 0.03125, %v1057_v55  ;;  %v1195_v2 = vmul.f32 0.5, %v1194_v51  ;;  %v1261_v32 = vmul.f32 %v1191_v52, %v2335_v62  ;;  %vm2689_vm12 = vmor %vm1138_vm4, %vm1139_vm14 }
 0x250   : > { %v1066_v49 = vmul.f32 0.03125, %v1041_v34  ;;  %v1095_v5 = vmul.f32 0.5, %v1094_v59  ;;  %v1136_v3 = vsub.f32 1.5, %v1135_v57  ;;  %vm1099_vm3 = vweird.f32 %v2517_v30 }
 0x251   : > { %v2550_v4 = vpop.eup %1932  ;;  %v2552_v6 = vadd.f32 1e-05, %v1062_v60  ;;  %v2562_v31 = vadd.f32 1e-05, %v1074_v39  ;;  %v1196_v14 = vsub.f32 1.5, %v1195_v2  ;;  %v1280_v56 = vmul.f32 %v2504_v16, %v1261_v32  ;;  %vm2666_vm11 = vmor %vm1098_vm15, %vm1099_vm3 }
 0x252   : > { %v1203_v12 = vmul.f32 %v2550_v4, %v2498_v38  ;;  %v2564_v17 = vpop.eup %1934  ;;  %v2575_v27 = vadd.f32 1e-05, %v1066_v49  ;;  %v1096_v62 = vsub.f32 1.5, %v1095_v5  ;;  %v2610_v55 = vmul.f32 %v2494_v8, %v1136_v3 }
 0x253   : > { %1938 = vrsqrt.f32 %v2552_v6  ;;  %v2580_v35 = vpop.eup %1936  ;;  %v1243_v9 = vmul.f32 %v2564_v17, %v2515_v46  ;;  %v1231_v57 = vsel %vm2600_vm0, %v2464_v44, %v1227_v10  ;;  %v2619_v34 = vmul.f32 %v2511_v23, %v1196_v14 }
 0x254   : > { %v1204_v19 = vmul.f32 %v2550_v4, %v1203_v12  ;;  %v1143_v42 = vmul.f32 %v2580_v35, %v2509_v0  ;;  %1940 = vrsqrt.f32 %v2575_v27  ;;  %v1264_v1 = vmul.f32 %v1221_v41, %v2320_v47 }
 0x255   : > { %v1244_v53 = vmul.f32 %v2564_v17, %v1243_v9  ;;  %1942 = vrsqrt.f32 %v2562_v31  ;;  %v1265_v2 = vmul.f32 %v1231_v57, %v2331_v61  ;;  %v1097_v52 = vmul.f32 %v2517_v30, %v1096_v62 }
 0x256   : > { %v1205_v26 = vmul.f32 0.5, %v1204_v19  ;;  %v1144_v21 = vmul.f32 %v2580_v35, %v1143_v42  ;;  %v1043_v59 = vpop.xlane.xlu1 %1042  ;;  %v1035_v60 = vpop.xlane.xlu2 %1034  ;;  %vm1209_vm5 = vweird.f32 %v2550_v4  ;;  %vm1148_vm6 = vweird.f32 %v2509_v0 }
 0x257   : > { %v1245_v22 = vmul.f32 0.5, %v1244_v53  ;;  %v1299_v44 = vadd.f32 %v2532_v15, %v1280_v56  ;;  %vm1149_vm7 = vweird.f32 %v2580_v35  ;;  %v1067_v10 = vmul.f32 0.03125, %v1043_v59 }
 0x258   : > { %v1206_v39 = vsub.f32 1.5, %v1205_v26  ;;  %v1145_v5 = vmul.f32 0.5, %v1144_v21  ;;  %v1063_v12 = vmul.f32 0.03125, %v1035_v60  ;;  %vm1208_vm8 = vweird.f32 %v2498_v38  ;;  %vm2712_vm4 = vmor %vm1148_vm6, %vm1149_vm7 }
 0x259   : > { %v2623_v49 = vpop.eup %1938  ;;  %1315 = vst [vmem:[%s2190_s21 + $0x48] sm:$0xff] %v1299_v44  ;;  %v1326_v3 = vpack.c.bf16 %v1299_v44, %v2555_v7  ;;  %v1283_v32 = vmul.f32 %v2504_v16, %v1264_v1  ;;  %v1284_v14 = vmul.f32 %v2504_v16, %v1265_v2  ;;  %vm1158_vm9 = vweird.f32 %v2575_v27 }
 0x25a   : > { %v1113_v47 = vmul.f32 %v2623_v49, %v2552_v6  ;;  %v2632_v61 = vpop.eup %1940  ;;  %v1146_v20 = vsub.f32 1.5, %v1145_v5  ;;  %v2642_v9 = vmul.f32 %v2550_v4, %v1206_v39  ;;  %v1246_v42 = vsub.f32 1.5, %v1245_v22 }
 0x25b   : > { %v2639_v19 = vpop.eup %1942  ;;  %v1153_v62 = vmul.f32 %v2632_v61, %v2575_v27  ;;  %vm1248_vm13 = vweird.f32 %v2515_v46  ;;  %vm1249_vm0 = vweird.f32 %v2564_v17  ;;  %1422 = vmatmul.bf16.vlgmr.msra.gmra.mxu2 %v1326_v3  ;;  %v1302_v53 = vadd.f32 %v2532_v15, %v1283_v32 }
 0x25c   : > { %v1114_v41 = vmul.f32 %v2623_v49, %v1113_v47  ;;  %v1147_v51 = vmul.f32 %v2580_v35, %v1146_v20  ;;  %v1233_v26 = vmul.f32 %v2639_v19, %v2562_v31  ;;  %v1303_v57 = vadd.f32 %v2532_v15, %v1284_v14  ;;  %vm2774_vm7 = vmor %vm1248_vm13, %vm1249_vm0 }
 0x25d   : > { %v1154_v56 = vmul.f32 %v2632_v61, %v1153_v62  ;;  %v2672_v59 = vadd.f32 1e-05, %v1067_v10  ;;  %1318 = vst [vmem:[%s2190_s21 + $0x60] sm:$0xff] %v1302_v53  ;;  %v2676_v39 = vadd.f32 1e-05, %v1063_v12  ;;  %v1101_v28 = vsel %vm2666_vm11, %v2517_v30, %v1097_v52 }
 0x25e   : > { %v1115_v21 = vmul.f32 0.5, %v1114_v41  ;;  %v1234_v60 = vmul.f32 %v2639_v19, %v1233_v26  ;;  %v1111_v1 = vsel %vm2652_vm10, %v2468_v50, %v2589_v18  ;;  %vm1119_vm15 = vweird.f32 %v2623_v49  ;;  %1319 = vst [vmem:[%s2190_s21 + $0x68] sm:$0xff] %v1303_v57  ;;  %vm2701_vm10 = vmor %vm1198_vm1, %vm1199_vm2 }
 0x25f   : > { %v1155_v22 = vmul.f32 0.5, %v1154_v56  ;;  %vm1238_vm3 = vweird.f32 %v2562_v31  ;;  %v1328_v30 = vpack.c.bf16 %v1303_v57, %v1302_v53  ;;  %1944 = vrsqrt.f32 %v2672_v59  ;;  %vm2734_vm2 = vmor %vm1208_vm8, %vm1209_vm5 }
 0x260   : > { %v1247_v45 = vmul.f32 %v2564_v17, %v1246_v42  ;;  %vm1159_vm14 = vweird.f32 %v2632_v61  ;;  %v1235_v18 = vmul.f32 0.5, %v1234_v60  ;;  %1946 = vrsqrt.f32 %v2676_v39 }
 0x261   : > { %v1116_v36 = vsub.f32 1.5, %v1115_v21  ;;  %vm1118_vm1 = vweird.f32 %v2552_v6  ;;  %v1156_v5 = vsub.f32 1.5, %v1155_v22  ;;  %1432 = vmatmul.bf16.vlgmr.msra.gmra.mxu3 %v1328_v30  ;;  %v1252_v44 = vmul.f32 %v1101_v28, %v2351_v11  ;;  %vm2762_vm5 = vmor %vm1158_vm9, %vm1159_vm14 }
 0x262   : > { %v1253_v47 = vmul.f32 %v1111_v1, %v2343_v48  ;;  %v1236_v10 = vsub.f32 1.5, %v1235_v18  ;;  %v1141_v12 = vsel %vm2689_vm12, %v2494_v8, %v2610_v55  ;;  %v1151_v0 = vsel %vm2712_vm4, %v2580_v35, %v1147_v51  ;;  %vm1120_vm13 = vmor %vm1118_vm1, %vm1119_vm15 }
 0x263   : > { %v1201_v20 = vsel %vm2701_vm10, %v2511_v23, %v2619_v34  ;;  %v1157_v11 = vmul.f32 %v2632_v61, %v1156_v5  ;;  %v1271_v8 = vmul.f32 %v2504_v16, %v1252_v44  ;;  %v1256_v35 = vmul.f32 %v1141_v12, %v2357_v13 }
 0x264   : > { %v1272_v55 = vmul.f32 %v2504_v16, %v1253_v47  ;;  %vm1239_vm6 = vweird.f32 %v2639_v19  ;;  %v1257_v23 = vmul.f32 %v1151_v0, %v2371_v24  ;;  %v1211_v38 = vsel %vm2734_vm2, %v2550_v4, %v2642_v9 }
 0x265   : > { %v1262_v34 = vmul.f32 %v1201_v20, %v2365_v63  ;;  %v2749_v3 = vpop.eup %1944  ;;  %v1237_v32 = vmul.f32 %v2639_v19, %v1236_v10  ;;  %v1290_v14 = vadd.f32 %v2532_v15, %v1271_v8  ;;  %v1275_v41 = vmul.f32 %v2504_v16, %v1256_v35  ;;  %vm2789_vm8 = vmor %vm1238_vm3, %vm1239_vm6 }
 0x266   : > { %v1291_v13 = vadd.f32 %v2532_v15, %v1272_v55  ;;  %v2755_v24 = vpop.eup %1946  ;;  %v1117_v62 = vmul.f32 %v2623_v49, %v1116_v36  ;;  %v1163_v4 = vmul.f32 %v2749_v3, %v2672_v59  ;;  %v1276_v9 = vmul.f32 %v2504_v16, %v1257_v23 }
 0x267   : > { %v1263_v7 = vmul.f32 %v1211_v38, %v2380_v33  ;;  %v1161_v27 = vsel %vm2762_vm5, %v2632_v61, %v1157_v11  ;;  %v1123_v51 = vmul.f32 %v2755_v24, %v2676_v39  ;;  %1306 = vst [vmem:[%s2190_s21] sm:$0xff] %v1290_v14  ;;  %v1294_v33 = vadd.f32 %v2532_v15, %v1275_v41 }
 0x268   : > { %v1322_v26 = vpack.c.bf16 %v1291_v13, %v1290_v14  ;;  %v1164_v53 = vmul.f32 %v2749_v3, %v1163_v4  ;;  %1307 = vst [vmem:[%s2190_s21 + $0x8] sm:$0xff] %v1291_v13  ;;  %v1295_v61 = vadd.f32 %v2532_v15, %v1276_v9  ;;  %v1281_v25 = vmul.f32 %v2504_v16, %v1262_v34 }
 0x269   : > { %v1282_v21 = vmul.f32 %v2504_v16, %v1263_v7  ;;  %vm1169_vm9 = vweird.f32 %v2749_v3  ;;  %v1124_v56 = vmul.f32 %v2755_v24, %v1123_v51  ;;  %1310 = vst [vmem:[%s2190_s21 + $0x20] sm:$0xff] %v1294_v33  ;;  %v1241_v31 = vsel %vm2789_vm8, %v2639_v19, %v1237_v32 }
 0x26a   : > { %1402 = vmatmul.bf16.vlgmr.msra.gmra.mxu0 %v1322_v26  ;;  %v1251_v57 = vsel %vm2774_vm7, %v2564_v17, %v1247_v45  ;;  %v1165_v60 = vmul.f32 0.5, %v1164_v53  ;;  %1311 = vst [vmem:[%s2190_s21 + $0x28] sm:$0xff] %v1295_v61  ;;  %v1324_v28 = vpack.c.bf16 %v1295_v61, %v1294_v33  ;;  %v1300_v1 = vadd.f32 %v2532_v15, %v1281_v25 }
 0x26b   : > { %v1301_v2 = vadd.f32 %v2532_v15, %v1282_v21  ;;  %v1125_v22 = vmul.f32 0.5, %v1124_v56  ;;  %v1266_v19 = vmul.f32 %v1241_v31, %v2392_v43  ;;  %v1267_v30 = vmul.f32 %v1251_v57, %v2386_v40 }
 0x26c   : > { %v1121_v17 = vsel %vm1120_vm13, %v2623_v49, %v1117_v62  ;;  %v1166_v50 = vsub.f32 1.5, %v1165_v60  ;;  %1412 = vmatmul.bf16.vlgmr.msra.gmra.mxu1 %v1324_v28  ;;  %1316 = vst [vmem:[%s2190_s21 + $0x50] sm:$0xff] %v1300_v1  ;;  %v1258_v18 = vmul.f32 %v1161_v27, %v2407_v37  ;;  %vm1129_vm0 = vweird.f32 %v2755_v24 }
 0x26d   : > { %v1327_v6 = vpack.c.bf16 %v1301_v2, %v1300_v1  ;;  %v1254_v45 = vmul.f32 %v1121_v17, %v2401_v54  ;;  %v1126_v52 = vsub.f32 1.5, %v1125_v22  ;;  %1317 = vst [vmem:[%s2190_s21 + $0x58] sm:$0xff] %v1301_v2  ;;  %v1285_v36 = vmul.f32 %v2504_v16, %v1266_v19 }
 0x26e   : > { %v1286_v43 = vmul.f32 %v2504_v16, %v1267_v30  ;;  %v1167_v40 = vmul.f32 %v2749_v3, %v1166_v50  ;;  %vm1168_vm11 = vweird.f32 %v2672_v59  ;;  %v1277_v54 = vmul.f32 %v2504_v16, %v1258_v18 }
 0x26f   : > { %1427 = vmatmul.bf16.gmra.mxu2 %v1327_v6  ;;  %v1273_v49 = vmul.f32 %v2504_v16, %v1254_v45  ;;  %vm1170_vm12 = vmor %vm1168_vm11, %vm1169_vm9  ;;  %v1127_v37 = vmul.f32 %v2755_v24, %v1126_v52  ;;  %vm1128_vm15 = vweird.f32 %v2676_v39  ;;  %v1304_v5 = vadd.f32 %v2532_v15, %v1285_v36 }
 0x270   : > { %v1305_v44 = vadd.f32 %v2532_v15, %v1286_v43  ;;  %v1171_v59 = vsel %vm1170_vm12, %v2749_v3, %v1167_v40  ;;  %vm1130_vm3 = vmor %vm1128_vm15, %vm1129_vm0  ;;  %v1296_v10 = vadd.f32 %v2532_v15, %v1277_v54 }
 0x271   : > { %v1292_v47 = vadd.f32 %v2532_v15, %v1273_v49  ;;  %v1131_v12 = vsel %vm1130_vm3, %v2755_v24, %v1127_v37  ;;  %1320 = vst [vmem:[%s2190_s21 + $0x70] sm:$0xff] %v1304_v5  ;;  %v1259_v0 = vmul.f32 %v1171_v59, %v2420_v58 }
 0x272   : > { %v1329_v39 = vpack.c.bf16 %v1305_v44, %v1304_v5  ;;  %1321 = vst [vmem:[%s2190_s21 + $0x78] sm:$0xff] %v1305_v44  ;;  %v1255_v20 = vmul.f32 %v1131_v12, %v2413_v29 }
 0x273   : > { %1308 = vst [vmem:[%s2190_s21 + $0x10] sm:$0xff] %v1292_v47  ;;  %v1278_v48 = vmul.f32 %v2504_v16, %v1259_v0 }
 0x274   : > { %1437 = vmatmul.bf16.gmra.mxu3 %v1329_v39  ;;  %v1274_v11 = vmul.f32 %v2504_v16, %v1255_v20  ;;  %1312 = vst [vmem:[%s2190_s21 + $0x30] sm:$0xff] %v1296_v10 }
 0x275   : > { %v1297_v8 = vadd.f32 %v2532_v15, %v1278_v48 }
 0x276   : > { %v1293_v55 = vadd.f32 %v2532_v15, %v1274_v11 }
 0x277   : > { %1313 = vst [vmem:[%s2190_s21 + $0x38] sm:$0xff] %v1297_v8  ;;  %v1325_v58 = vpack.c.bf16 %v1297_v8, %v1296_v10 }
 0x278   : > { %1309 = vst [vmem:[%s2190_s21 + $0x18] sm:$0xff] %v1293_v55  ;;  %v1323_v35 = vpack.c.bf16 %v1293_v55, %v1292_v47 }
 0x27a   : > { %1407 = vmatmul.bf16.gmra.mxu0 %v1323_v35 }
 0x27c   : > { %1417 = vmatmul.bf16.gmra.mxu1 %v1325_v58 }
 0x2de   : > { %v1423_v29 = vpop.f32.mrf.mxu2 }
 0x2e4   : > { %v1433_v23 = vpop.f32.mrf.mxu3 }
 0x2e6   : > { %v1425_v34 = vpop.f32.mrf.mxu2 }
 0x2e7   : > { %v1403_v38 = vpop.f32.mrf.mxu0  ;;  %v1781_v16 = vpack.c.bf16 %v1425_v34, %v1423_v29 }
 0x2e9   : > { %v1413_v3 = vpop.f32.mrf.mxu1  ;;  %1801 = vst [vmem:[%s2195_s19 + $0x20] sm:$0xff] %v1781_v16  }
 0x2ec   : > { %v1435_v32 = vpop.f32.mrf.mxu3 }
 0x2ed   : > { %v1791_v14 = vpack.c.bf16 %v1435_v32, %v1433_v23 }
 0x2ef   : > { %v1405_v15 = vpop.f32.mrf.mxu0  ;;  %1803 = vst [vmem:[%s2195_s19 + $0x30] sm:$0xff] %v1791_v14  }
 0x2f0   : > { %v1761_v13 = vpack.c.bf16 %v1405_v15, %v1403_v38 }
 0x2f1   : > { %v1415_v24 = vpop.f32.mrf.mxu1 }
 0x2f2   : > { %1762 = vst [vmem:[%s2195_s19] sm:$0xff] %v1761_v13   ;;  %v1428_v41 = vpop.f32.mrf.mxu2  ;;  %v1771_v62 = vpack.c.bf16 %v1415_v24, %v1413_v3 }
 0x2f4   : > { %1799 = vst [vmem:[%s2195_s19 + $0x10] sm:$0xff] %v1771_v62  }
 0x2f7   : > { %v1438_v63 = vpop.f32.mrf.mxu3  ;;  %v1408_v4 = vpop.f32.mrf.mxu0 }
 0x2f9   : > { %v1418_v7 = vpop.f32.mrf.mxu1 }
 0x2fa   : > { %v1430_v9 = vpop.f32.mrf.mxu2 }
 0x2fb   : > { %v1786_v42 = vpack.c.bf16 %v1430_v9, %v1428_v41 }
 0x2fd   : > { %1802 = vst [vmem:[%s2195_s19 + $0x28] sm:$0xff] %v1786_v42  }
 0x2ff   : > { %v1440_v27 = vpop.f32.mrf.mxu3  ;;  %v1410_v26 = vpop.f32.mrf.mxu0 }
 0x300   : > { %v1796_v51 = vpack.c.bf16 %v1440_v27, %v1438_v63  ;;  %v1766_v33 = vpack.c.bf16 %v1410_v26, %v1408_v4 }
 0x301   : > { %v1420_v46 = vpop.f32.mrf.mxu1 }
 0x302   : > { %1804 = vst [vmem:[%s2195_s19 + $0x38] sm:$0xff] %v1796_v51   ;;  %v1776_v53 = vpack.c.bf16 %v1420_v46, %v1418_v7 }
 0x303   : > { %1798 = vst [vmem:[%s2195_s19 + $0x8] sm:$0xff] %v1766_v33  }
 0x304   : > { %1800 = vst [vmem:[%s2195_s19 + $0x18] sm:$0xff] %v1776_v53  }
 0x305 PF: > { %s34_s25 = sadd.s32 1, %s2028_s25   ;;  %s2926_s23 = sld [smem:[#allocation8_spill]] }
 0x306   : > { %p31_p1 = scmp.ge.s32.totalorder %s34_s25, 11   ;;  %s2927_s24 = sld [smem:[#allocation9_spill]] }
 0x307   : > { %s2928_s14 = sld [smem:[#allocation10_spill]]  ;;  %s2929_s21 = smov %s2008_s22 }
 0x308   : > { %s2930_s22 = smov %s2149_s30  ;;  %s2931_s0 = smov %s2024_s1 }
 0x309   :  { %33 = sbr.rel (!%p31_p1) target bundleno = 12 (0xc), region = 154 }
 0x30d   : > { %s2932_s1 = smov %s2928_s14 }

</bundles_post_ra>
